<compile_context>
chip_gen: v7x
topology: tpu7x:2x2x1
jax: 0.10.0
libtpu: 0.0.40
codegen_flags: <defaults>
</compile_context>

<pallas_src>
import functools

import jax
import jax.numpy as jnp
from jax.experimental import pallas as pl
from jax.experimental.pallas import tpu as pltpu

HYP = {'dropout': 0.05, 'f_fc1': 512, 'f_fc2': 1024, 'g_layers': [511, 512],
       'question_injection_position': 1, 'rl_in_size': 14, 'rl_out_size': 1}

LANE = 128


def _round_up(n, m):
    return (n + m - 1) // m * m


def _pick_tb(b, max_tb=8):
    """Largest divisor of b <= max_tb that still leaves >= 2 grid steps
    (keeps both v7x TensorCores busy); falls back to a single step only if
    forced (b == 1 or no such divisor)."""
    for cand in range(min(b, max_tb), 0, -1):
        if b % cand == 0 and b // cand >= 2:
            return cand
    return b


# ----------------------------- fused kernel ----------------------------------

def _rn_fused_kernel(x_ref, q_ref,
                     w0i_ref, w0j_ref, b0_ref,
                     w1x_ref, w1q_ref, b1_ref,
                     wf1_ref, bf1_ref, wf2_ref, bf2_ref, wf3_ref, bf3_ref,
                     out_ref, *, n_out):
    # x_ref: (TB, d, k); q_ref: (TB, 1, Q); out_ref: (TB, 1, OUTP)
    tb, d, k = x_ref.shape
    g0p = w0i_ref.shape[1]          # padded g0 (multiple of 128)
    g1 = w1x_ref.shape[1]
    q = q_ref.shape[2]

    # ---- g layer 0: pair(a, c) = concat(x[c], x[a]); split W0 so we never
    #      materialize the (d*d, 2k) pair matrix.
    x = x_ref[...].reshape(tb * d, k)
    a_part = jnp.dot(x, w0i_ref[...],
                     preferred_element_type=jnp.float32).reshape(tb, d, g0p)  # indexed by c
    b_part = jnp.dot(x, w0j_ref[...],
                     preferred_element_type=jnp.float32).reshape(tb, d, g0p)  # indexed by a
    h0 = a_part[:, None, :, :] + b_part[:, :, None, :] + b0_ref[...][None, None, :, :]
    h0 = jnp.maximum(h0, 0.0).reshape(tb * d * d, g0p)

    # ---- g layer 1 (question injection): concat(h0, qst) @ W1 = h0@W1x + qst@W1q
    qst = q_ref[...].reshape(tb, q)
    q_proj = jnp.dot(qst, w1q_ref[...], preferred_element_type=jnp.float32)   # (tb, g1)
    h1 = jnp.dot(h0, w1x_ref[...],
                 preferred_element_type=jnp.float32).reshape(tb, d * d, g1)
    h1 = h1 + q_proj[:, None, :] + b1_ref[...][None, :, :]
    h1 = jnp.maximum(h1, 0.0)

    x_g = jnp.sum(h1, axis=1)                                                  # (tb, g1)

    # ---- f MLP fused in the epilogue
    f = jnp.dot(x_g, wf1_ref[...], preferred_element_type=jnp.float32) + bf1_ref[...]
    f = jnp.maximum(f, 0.0)
    f = jnp.dot(f, wf2_ref[...], preferred_element_type=jnp.float32) + bf2_ref[...]
    # TODO(synk): nn.Dropout(p=0.05) implemented as identity (inference/eval mode).
    f = jnp.maximum(f, 0.0)
    logits = jnp.dot(f, wf3_ref[...],
                     preferred_element_type=jnp.float32) + bf3_ref[...]        # (tb, OUTP)

    # ---- log_softmax over the n_out real classes (padded lanes masked out)
    col = jax.lax.broadcasted_iota(jnp.int32, logits.shape, 1)
    valid = col < n_out
    masked = jnp.where(valid, logits, jnp.float32(-1e30))
    m = jnp.max(masked, axis=1, keepdims=True)
    lse = m + jnp.log(jnp.sum(jnp.where(valid, jnp.exp(masked - m), 0.0),
                              axis=1, keepdims=True))
    out_ref[...] = jnp.where(valid, masked - lse, 0.0)[:, None, :]


# ----------------------------- wrapper ---------------------------------------

def relational_layer_forward(x, qst, params, max_tb=8):
    b, d, k = x.shape
    q = qst.shape[1]
    g0 = params['w_g0'].shape[1]
    g1 = params['w_g1'].shape[1]
    f1 = params['w_f1'].shape[1]
    f2 = params['w_f2'].shape[1]
    n_out = params['w_f3'].shape[1]

    g0p = _round_up(g0, LANE)       # 511 -> 512: lane-aligned, mathematically inert
    outp = _round_up(n_out, LANE)   # lane-dense output block

    f32 = jnp.float32
    pad0 = ((0, 0), (0, g0p - g0))
    # Split + pad the concatenated-input weights (pure-JAX glue, done once).
    w0i = jnp.pad(params['w_g0'][:k].astype(f32), pad0)                 # multiplies x_i (= x[c])
    w0j = jnp.pad(params['w_g0'][k:].astype(f32), pad0)                 # multiplies x_j (= x[a])
    b_g0 = jnp.pad(params['b_g0'].astype(f32).reshape(1, g0), pad0)
    w1x = jnp.pad(params['w_g1'][:g0].astype(f32), ((0, g0p - g0), (0, 0)))
    w1q = params['w_g1'][g0:].astype(f32)
    b_g1 = params['b_g1'].astype(f32).reshape(1, g1)
    w_f1 = params['w_f1'].astype(f32)
    b_f1 = params['b_f1'].astype(f32).reshape(1, f1)
    w_f2 = params['w_f2'].astype(f32)
    b_f2 = params['b_f2'].astype(f32).reshape(1, f2)
    w_f3 = jnp.pad(params['w_f3'].astype(f32), ((0, 0), (0, outp - n_out)))
    b_f3 = jnp.pad(params['b_f3'].astype(f32).reshape(1, n_out),
                   ((0, 0), (0, outp - n_out)))

    x = x.astype(f32)
    qst3 = qst.astype(f32).reshape(b, 1, q)

    tb = _pick_tb(b, max_tb)
    grid = (b // tb,)

    const2 = lambda i: (0, 0)
    kernel = functools.partial(_rn_fused_kernel, n_out=n_out)

    out_padded = pl.pallas_call(
        kernel,
        out_shape=jax.ShapeDtypeStruct((b, 1, outp), jnp.float32),
        grid=grid,
        in_specs=[
            pl.BlockSpec((tb, d, k), lambda i: (i, 0, 0)),
            pl.BlockSpec((tb, 1, q), lambda i: (i, 0, 0)),
            pl.BlockSpec((k, g0p), const2),
            pl.BlockSpec((k, g0p), const2),
            pl.BlockSpec((1, g0p), const2),
            pl.BlockSpec((g0p, g1), const2),
            pl.BlockSpec((q, g1), const2),
            pl.BlockSpec((1, g1), const2),
            pl.BlockSpec((g1, f1), const2),
            pl.BlockSpec((1, f1), const2),
            pl.BlockSpec((f1, f2), const2),
            pl.BlockSpec((1, f2), const2),
            pl.BlockSpec((f2, outp), const2),
            pl.BlockSpec((1, outp), const2),
        ],
        out_specs=pl.BlockSpec((tb, 1, outp), lambda i: (i, 0, 0)),
        compiler_params=pltpu.CompilerParams(
            dimension_semantics=("parallel",),
            vmem_limit_bytes=32 * 1024 * 1024),
    )(x, qst3, w0i, w0j, b_g0, w1x, w1q, b_g1,
      w_f1, b_f1, w_f2, b_f2, w_f3, b_f3)

    return out_padded[:, 0, :n_out]


# ----------------------- params & pure-JAX reference -------------------------

def init_params(key, k, qst_size, hyp, out_size):
    in_size = 2 * k
    g0, g1 = hyp['g_layers']
    f1, f2 = hyp['f_fc1'], hyp['f_fc2']
    shapes = [
        ('w_g0', (in_size, g0)), ('b_g0', (g0,)),
        ('w_g1', (g0 + qst_size, g1)), ('b_g1', (g1,)),
        ('w_f1', (g1, f1)), ('b_f1', (f1,)),
        ('w_f2', (f1, f2)), ('b_f2', (f2,)),
        ('w_f3', (f2, out_size)), ('b_f3', (out_size,)),
    ]
    params = {}
    keys = jax.random.split(key, len(shapes))
    for kk, (name, shape) in zip(keys, shapes):
        fan_in = shape[0]
        bound = 1.0 / jnp.sqrt(jnp.float32(fan_in))
        params[name] = jax.random.uniform(kk, shape, jnp.float32, -bound, bound)
    return params


def reference_forward(x, qst, params):
    hp = jax.lax.Precision.HIGHEST
    b, d, k = x.shape
    q = qst.shape[1]
    g0 = params['w_g0'].shape[1]
    g1 = params['w_g1'].shape[1]
    x_i = jnp.broadcast_to(x[:, None, :, :], (b, d, d, k))
    x_j = jnp.broadcast_to(x[:, :, None, :], (b, d, d, k))
    pair = jnp.concatenate([x_i, x_j], axis=3).reshape(b * d * d, 2 * k)
    h = jnp.maximum(jnp.dot(pair, params['w_g0'], precision=hp) + params['b_g0'], 0.0)
    h_img = h.reshape(b, d, d, g0)
    q_rep = jnp.broadcast_to(qst[:, None, None, :], (b, d, d, q))
    h = jnp.concatenate([h_img, q_rep], axis=3).reshape(b * d * d, g0 + q)
    h = jnp.maximum(jnp.dot(h, params['w_g1'], precision=hp) + params['b_g1'], 0.0)
    x_g = h.reshape(b, d * d, g1).sum(axis=1)
    f = jnp.maximum(jnp.dot(x_g, params['w_f1'], precision=hp) + params['b_f1'], 0.0)
    f = jnp.maximum(jnp.dot(f, params['w_f2'], precision=hp) + params['b_f2'], 0.0)
    logits = jnp.dot(f, params['w_f3'], precision=hp) + params['b_f3']
    return jax.nn.log_softmax(logits, axis=1)


if __name__ == "__main__":
    key = jax.random.PRNGKey(0)
    b, d, k = 2, 8, 7            # in_size = 2*k = 14 = HYP['rl_in_size']
    qst_size = 32
    out_size = 10

    kx, kq, kp = jax.random.split(key, 3)
    x = jax.random.normal(kx, (b, d, k), jnp.float32)
    qst = jax.random.normal(kq, (b, qst_size), jnp.float32)
    params = init_params(kp, k, qst_size, HYP, out_size)

    out = relational_layer_forward(x, qst, params)
    out = jax.block_until_ready(out)

    ref = reference_forward(x, qst, params)
    assert out.shape == (b, out_size)
    assert bool(jnp.allclose(out, ref, atol=1e-2, rtol=1e-2)), (out, ref)
    print("KERNEL_OK")
</pallas_src>

<mosaic_0001>
module attributes {stable_mosaic.version = 11 : i64} {
  func.func @_rn_fused_kernel(%arg0: i32, %arg1: memref<1x8x7xf32, #tpu.memory_space<vmem>>, %arg2: memref<1x1x32xf32, #tpu.memory_space<vmem>>, %arg3: memref<7x512xf32, #tpu.memory_space<vmem>>, %arg4: memref<7x512xf32, #tpu.memory_space<vmem>>, %arg5: memref<1x512xf32, #tpu.memory_space<vmem>>, %arg6: memref<512x512xf32, #tpu.memory_space<vmem>>, %arg7: memref<32x512xf32, #tpu.memory_space<vmem>>, %arg8: memref<1x512xf32, #tpu.memory_space<vmem>>, %arg9: memref<512x512xf32, #tpu.memory_space<vmem>>, %arg10: memref<1x512xf32, #tpu.memory_space<vmem>>, %arg11: memref<512x1024xf32, #tpu.memory_space<vmem>>, %arg12: memref<1x1024xf32, #tpu.memory_space<vmem>>, %arg13: memref<1024x128xf32, #tpu.memory_space<vmem>>, %arg14: memref<1x128xf32, #tpu.memory_space<vmem>>, %arg15: memref<1x1x128xf32, #tpu.memory_space<vmem>>) attributes {dimension_semantics = [#tpu.dimension_semantics<parallel>], iteration_bounds = array<i64: 2>, scalar_prefetch = 0 : i64, scratch_operands = 0 : i64, tpu.core_type = #tpu.core_type<tc>, window_params = [{transform_indices = @transform_0, window_bounds = array<i64: 1, 8, 7>}, {transform_indices = @transform_1, window_bounds = array<i64: 1, 1, 32>}, {pipeline_mode = #tpu.pipeline_mode<synchronous>, transform_indices = @transform_2, window_bounds = array<i64: 7, 512>}, {pipeline_mode = #tpu.pipeline_mode<synchronous>, transform_indices = @transform_3, window_bounds = array<i64: 7, 512>}, {pipeline_mode = #tpu.pipeline_mode<synchronous>, transform_indices = @transform_4, window_bounds = array<i64: 1, 512>}, {pipeline_mode = #tpu.pipeline_mode<synchronous>, transform_indices = @transform_5, window_bounds = array<i64: 512, 512>}, {pipeline_mode = #tpu.pipeline_mode<synchronous>, transform_indices = @transform_6, window_bounds = array<i64: 32, 512>}, {pipeline_mode = #tpu.pipeline_mode<synchronous>, transform_indices = @transform_7, window_bounds = array<i64: 1, 512>}, {pipeline_mode = #tpu.pipeline_mode<synchronous>, transform_indices = @transform_8, window_bounds = array<i64: 512, 512>}, {pipeline_mode = #tpu.pipeline_mode<synchronous>, transform_indices = @transform_9, window_bounds = array<i64: 1, 512>}, {pipeline_mode = #tpu.pipeline_mode<synchronous>, transform_indices = @transform_10, window_bounds = array<i64: 512, 1024>}, {pipeline_mode = #tpu.pipeline_mode<synchronous>, transform_indices = @transform_11, window_bounds = array<i64: 1, 1024>}, {pipeline_mode = #tpu.pipeline_mode<synchronous>, transform_indices = @transform_12, window_bounds = array<i64: 1024, 128>}, {pipeline_mode = #tpu.pipeline_mode<synchronous>, transform_indices = @transform_13, window_bounds = array<i64: 1, 128>}, {transform_indices = @transform_14, window_bounds = array<i64: 1, 1, 128>}]} {
    %c0 = arith.constant 0 : index
    %c0_0 = arith.constant 0 : index
    %c0_1 = arith.constant 0 : index
    %0 = vector.load %arg1[%c0, %c0_0, %c0_1] : memref<1x8x7xf32, #tpu.memory_space<vmem>>, vector<1x8x7xf32>
    %1 = vector.shape_cast %0 : vector<1x8x7xf32> to vector<8x7xf32>
    %c0_2 = arith.constant 0 : index
    %c0_3 = arith.constant 0 : index
    %2 = vector.load %arg3[%c0_2, %c0_3] : memref<7x512xf32, #tpu.memory_space<vmem>>, vector<7x512xf32>
    %cst = arith.constant dense<0.000000e+00> : vector<8x512xf32>
    %3 = tpu.matmul %1, %2, %cst {dimension_numbers = #tpu.dot_dimension_numbers<[1], [0], [0], [1], [0, 0, 1, 1], [], []>} : vector<8x7xf32>, vector<7x512xf32>, vector<8x512xf32> -> vector<8x512xf32>
    %4 = vector.shape_cast %3 : vector<8x512xf32> to vector<1x8x512xf32>
    %c0_4 = arith.constant 0 : index
    %c0_5 = arith.constant 0 : index
    %5 = vector.load %arg4[%c0_4, %c0_5] : memref<7x512xf32, #tpu.memory_space<vmem>>, vector<7x512xf32>
    %cst_6 = arith.constant dense<0.000000e+00> : vector<8x512xf32>
    %6 = tpu.matmul %1, %5, %cst_6 {dimension_numbers = #tpu.dot_dimension_numbers<[1], [0], [0], [1], [0, 0, 1, 1], [], []>} : vector<8x7xf32>, vector<7x512xf32>, vector<8x512xf32> -> vector<8x512xf32>
    %7 = vector.shape_cast %6 : vector<8x512xf32> to vector<1x8x512xf32>
    %8 = vector.shape_cast %4 : vector<1x8x512xf32> to vector<1x1x8x512xf32>
    %9 = vector.shape_cast %7 : vector<1x8x512xf32> to vector<1x8x1x512xf32>
    %10 = vector.broadcast %8 : vector<1x1x8x512xf32> to vector<1x8x8x512xf32>
    %11 = vector.broadcast %9 : vector<1x8x1x512xf32> to vector<1x8x8x512xf32>
    %12 = arith.addf %10, %11 : vector<1x8x8x512xf32>
    %c0_7 = arith.constant 0 : index
    %c0_8 = arith.constant 0 : index
    %13 = vector.load %arg5[%c0_7, %c0_8] : memref<1x512xf32, #tpu.memory_space<vmem>>, vector<1x512xf32>
    %14 = vector.shape_cast %13 : vector<1x512xf32> to vector<1x1x1x512xf32>
    %15 = vector.broadcast %14 : vector<1x1x1x512xf32> to vector<1x8x8x512xf32>
    %16 = arith.addf %12, %15 : vector<1x8x8x512xf32>
    %cst_9 = arith.constant 0.000000e+00 : f32
    %17 = vector.broadcast %cst_9 : f32 to vector<1x8x8x512xf32>
    %18 = arith.maximumf %16, %17 : vector<1x8x8x512xf32>
    %19 = vector.shape_cast %18 : vector<1x8x8x512xf32> to vector<64x512xf32>
    %c0_10 = arith.constant 0 : index
    %c0_11 = arith.constant 0 : index
    %c0_12 = arith.constant 0 : index
    %20 = vector.load %arg2[%c0_10, %c0_11, %c0_12] : memref<1x1x32xf32, #tpu.memory_space<vmem>>, vector<1x1x32xf32>
    %21 = vector.shape_cast %20 : vector<1x1x32xf32> to vector<1x32xf32>
    %c0_13 = arith.constant 0 : index
    %c0_14 = arith.constant 0 : index
    %22 = vector.load %arg7[%c0_13, %c0_14] : memref<32x512xf32, #tpu.memory_space<vmem>>, vector<32x512xf32>
    %cst_15 = arith.constant dense<0.000000e+00> : vector<1x512xf32>
    %23 = tpu.matmul %21, %22, %cst_15 {dimension_numbers = #tpu.dot_dimension_numbers<[1], [0], [0], [1], [0, 0, 1, 1], [], []>} : vector<1x32xf32>, vector<32x512xf32>, vector<1x512xf32> -> vector<1x512xf32>
    %c0_16 = arith.constant 0 : index
    %c0_17 = arith.constant 0 : index
    %24 = vector.load %arg6[%c0_16, %c0_17] : memref<512x512xf32, #tpu.memory_space<vmem>>, vector<512x512xf32>
    %cst_18 = arith.constant dense<0.000000e+00> : vector<64x512xf32>
    %25 = tpu.matmul %19, %24, %cst_18 {dimension_numbers = #tpu.dot_dimension_numbers<[1], [0], [0], [1], [0, 0, 1, 1], [], []>} : vector<64x512xf32>, vector<512x512xf32>, vector<64x512xf32> -> vector<64x512xf32>
    %26 = vector.shape_cast %25 : vector<64x512xf32> to vector<1x64x512xf32>
    %27 = vector.shape_cast %23 : vector<1x512xf32> to vector<1x1x512xf32>
    %28 = vector.broadcast %27 : vector<1x1x512xf32> to vector<1x64x512xf32>
    %29 = arith.addf %26, %28 : vector<1x64x512xf32>
    %c0_19 = arith.constant 0 : index
    %c0_20 = arith.constant 0 : index
    %30 = vector.load %arg8[%c0_19, %c0_20] : memref<1x512xf32, #tpu.memory_space<vmem>>, vector<1x512xf32>
    %31 = vector.shape_cast %30 : vector<1x512xf32> to vector<1x1x512xf32>
    %32 = vector.broadcast %31 : vector<1x1x512xf32> to vector<1x64x512xf32>
    %33 = arith.addf %29, %32 : vector<1x64x512xf32>
    %cst_21 = arith.constant 0.000000e+00 : f32
    %34 = vector.broadcast %cst_21 : f32 to vector<1x64x512xf32>
    %35 = arith.maximumf %33, %34 : vector<1x64x512xf32>
    %cst_22 = arith.constant dense<0.000000e+00> : vector<1x512xf32>
    %36 = vector.multi_reduction <add>, %35, %cst_22 [1] : vector<1x64x512xf32> to vector<1x512xf32>
    %c0_23 = arith.constant 0 : index
    %c0_24 = arith.constant 0 : index
    %37 = vector.load %arg9[%c0_23, %c0_24] : memref<512x512xf32, #tpu.memory_space<vmem>>, vector<512x512xf32>
    %cst_25 = arith.constant dense<0.000000e+00> : vector<1x512xf32>
    %38 = tpu.matmul %36, %37, %cst_25 {dimension_numbers = #tpu.dot_dimension_numbers<[1], [0], [0], [1], [0, 0, 1, 1], [], []>} : vector<1x512xf32>, vector<512x512xf32>, vector<1x512xf32> -> vector<1x512xf32>
    %c0_26 = arith.constant 0 : index
    %c0_27 = arith.constant 0 : index
    %39 = vector.load %arg10[%c0_26, %c0_27] : memref<1x512xf32, #tpu.memory_space<vmem>>, vector<1x512xf32>
    %40 = arith.addf %38, %39 : vector<1x512xf32>
    %cst_28 = arith.constant 0.000000e+00 : f32
    %41 = vector.broadcast %cst_28 : f32 to vector<1x512xf32>
    %42 = arith.maximumf %40, %41 : vector<1x512xf32>
    %c0_29 = arith.constant 0 : index
    %c0_30 = arith.constant 0 : index
    %43 = vector.load %arg11[%c0_29, %c0_30] : memref<512x1024xf32, #tpu.memory_space<vmem>>, vector<512x1024xf32>
    %cst_31 = arith.constant dense<0.000000e+00> : vector<1x1024xf32>
    %44 = tpu.matmul %42, %43, %cst_31 {dimension_numbers = #tpu.dot_dimension_numbers<[1], [0], [0], [1], [0, 0, 1, 1], [], []>} : vector<1x512xf32>, vector<512x1024xf32>, vector<1x1024xf32> -> vector<1x1024xf32>
    %c0_32 = arith.constant 0 : index
    %c0_33 = arith.constant 0 : index
    %45 = vector.load %arg12[%c0_32, %c0_33] : memref<1x1024xf32, #tpu.memory_space<vmem>>, vector<1x1024xf32>
    %46 = arith.addf %44, %45 : vector<1x1024xf32>
    %cst_34 = arith.constant 0.000000e+00 : f32
    %47 = vector.broadcast %cst_34 : f32 to vector<1x1024xf32>
    %48 = arith.maximumf %46, %47 : vector<1x1024xf32>
    %c0_35 = arith.constant 0 : index
    %c0_36 = arith.constant 0 : index
    %49 = vector.load %arg13[%c0_35, %c0_36] : memref<1024x128xf32, #tpu.memory_space<vmem>>, vector<1024x128xf32>
    %cst_37 = arith.constant dense<0.000000e+00> : vector<1x128xf32>
    %50 = tpu.matmul %48, %49, %cst_37 {dimension_numbers = #tpu.dot_dimension_numbers<[1], [0], [0], [1], [0, 0, 1, 1], [], []>} : vector<1x1024xf32>, vector<1024x128xf32>, vector<1x128xf32> -> vector<1x128xf32>
    %c0_38 = arith.constant 0 : index
    %c0_39 = arith.constant 0 : index
    %51 = vector.load %arg14[%c0_38, %c0_39] : memref<1x128xf32, #tpu.memory_space<vmem>>, vector<1x128xf32>
    %52 = arith.addf %50, %51 : vector<1x128xf32>
    %53 = tpu.iota {dimensions = array<i32: 1>} : vector<1x128xi32>
    %c10_i32 = arith.constant 10 : i32
    %54 = vector.broadcast %c10_i32 : i32 to vector<1x128xi32>
    %55 = arith.cmpi slt, %53, %54 : vector<1x128xi32>
    %cst_40 = arith.constant -1.000000e+30 : f32
    %56 = vector.broadcast %cst_40 : f32 to vector<1x128xf32>
    %57 = arith.select %55, %52, %56 : vector<1x128xi1>, vector<1x128xf32>
    %cst_41 = arith.constant dense<0xFF800000> : vector<1xf32>
    %58 = vector.multi_reduction <maximumf>, %57, %cst_41 [1] : vector<1x128xf32> to vector<1xf32>
    %59 = vector.shape_cast %58 : vector<1xf32> to vector<1x1xf32>
    %60 = vector.broadcast %59 : vector<1x1xf32> to vector<1x128xf32>
    %61 = arith.subf %57, %60 : vector<1x128xf32>
    %62 = math.exp %61 : vector<1x128xf32>
    %cst_42 = arith.constant 0.000000e+00 : f32
    %63 = vector.broadcast %cst_42 : f32 to vector<1x128xf32>
    %64 = arith.select %55, %62, %63 : vector<1x128xi1>, vector<1x128xf32>
    %cst_43 = arith.constant dense<0.000000e+00> : vector<1xf32>
    %65 = vector.multi_reduction <add>, %64, %cst_43 [1] : vector<1x128xf32> to vector<1xf32>
    %66 = vector.shape_cast %65 : vector<1xf32> to vector<1x1xf32>
    %67 = math.log %66 : vector<1x1xf32>
    %68 = arith.addf %59, %67 : vector<1x1xf32>
    %69 = vector.broadcast %68 : vector<1x1xf32> to vector<1x128xf32>
    %70 = arith.subf %57, %69 : vector<1x128xf32>
    %cst_44 = arith.constant 0.000000e+00 : f32
    %71 = vector.broadcast %cst_44 : f32 to vector<1x128xf32>
    %72 = arith.select %55, %70, %71 : vector<1x128xi1>, vector<1x128xf32>
    %73 = vector.shape_cast %72 : vector<1x128xf32> to vector<1x1x128xf32>
    %c0_45 = arith.constant 0 : index
    %c0_46 = arith.constant 0 : index
    %c0_47 = arith.constant 0 : index
    %74 = vector.load %arg15[%c0_45, %c0_46, %c0_47] : memref<1x1x128xf32, #tpu.memory_space<vmem>>, vector<1x1x128xf32>
    tpu.vector_store %arg15[%c0_45, %c0_46, %c0_47], %73 {strides = array<i32>} : memref<1x1x128xf32, #tpu.memory_space<vmem>>, vector<1x1x128xf32>,
    return
  }
  func.func @transform_0(%arg0: i32) -> (i32, i32, i32) {
    %c0_i32 = arith.constant 0 : i32
    %c0_i32_0 = arith.constant 0 : i32
    %c0_i32_1 = arith.constant 0 : i32
    return %arg0, %c0_i32, %c0_i32_0 : i32, i32, i32
  }
  func.func @transform_1(%arg0: i32) -> (i32, i32, i32) {
    %c0_i32 = arith.constant 0 : i32
    %c0_i32_0 = arith.constant 0 : i32
    %c0_i32_1 = arith.constant 0 : i32
    return %arg0, %c0_i32, %c0_i32_0 : i32, i32, i32
  }
  func.func @transform_2(%arg0: i32) -> (i32, i32) {
    %c0_i32 = arith.constant 0 : i32
    %c0_i32_0 = arith.constant 0 : i32
    %c0_i32_1 = arith.constant 0 : i32
    return %c0_i32, %c0_i32_0 : i32, i32
  }
  func.func @transform_3(%arg0: i32) -> (i32, i32) {
    %c0_i32 = arith.constant 0 : i32
    %c0_i32_0 = arith.constant 0 : i32
    %c0_i32_1 = arith.constant 0 : i32
    return %c0_i32, %c0_i32_0 : i32, i32
  }
  func.func @transform_4(%arg0: i32) -> (i32, i32) {
    %c0_i32 = arith.constant 0 : i32
    %c0_i32_0 = arith.constant 0 : i32
    %c0_i32_1 = arith.constant 0 : i32
    return %c0_i32, %c0_i32_0 : i32, i32
  }
  func.func @transform_5(%arg0: i32) -> (i32, i32) {
    %c0_i32 = arith.constant 0 : i32
    %c0_i32_0 = arith.constant 0 : i32
    %c0_i32_1 = arith.constant 0 : i32
    return %c0_i32, %c0_i32_0 : i32, i32
  }
  func.func @transform_6(%arg0: i32) -> (i32, i32) {
    %c0_i32 = arith.constant 0 : i32
    %c0_i32_0 = arith.constant 0 : i32
    %c0_i32_1 = arith.constant 0 : i32
    return %c0_i32, %c0_i32_0 : i32, i32
  }
  func.func @transform_7(%arg0: i32) -> (i32, i32) {
    %c0_i32 = arith.constant 0 : i32
    %c0_i32_0 = arith.constant 0 : i32
    %c0_i32_1 = arith.constant 0 : i32
    return %c0_i32, %c0_i32_0 : i32, i32
  }
  func.func @transform_8(%arg0: i32) -> (i32, i32) {
    %c0_i32 = arith.constant 0 : i32
    %c0_i32_0 = arith.constant 0 : i32
    %c0_i32_1 = arith.constant 0 : i32
    return %c0_i32, %c0_i32_0 : i32, i32
  }
  func.func @transform_9(%arg0: i32) -> (i32, i32) {
    %c0_i32 = arith.constant 0 : i32
    %c0_i32_0 = arith.constant 0 : i32
    %c0_i32_1 = arith.constant 0 : i32
    return %c0_i32, %c0_i32_0 : i32, i32
  }
  func.func @transform_10(%arg0: i32) -> (i32, i32) {
    %c0_i32 = arith.constant 0 : i32
    %c0_i32_0 = arith.constant 0 : i32
    %c0_i32_1 = arith.constant 0 : i32
    return %c0_i32, %c0_i32_0 : i32, i32
  }
  func.func @transform_11(%arg0: i32) -> (i32, i32) {
    %c0_i32 = arith.constant 0 : i32
    %c0_i32_0 = arith.constant 0 : i32
    %c0_i32_1 = arith.constant 0 : i32
    return %c0_i32, %c0_i32_0 : i32, i32
  }
  func.func @transform_12(%arg0: i32) -> (i32, i32) {
    %c0_i32 = arith.constant 0 : i32
    %c0_i32_0 = arith.constant 0 : i32
    %c0_i32_1 = arith.constant 0 : i32
    return %c0_i32, %c0_i32_0 : i32, i32
  }
  func.func @transform_13(%arg0: i32) -> (i32, i32) {
    %c0_i32 = arith.constant 0 : i32
    %c0_i32_0 = arith.constant 0 : i32
    %c0_i32_1 = arith.constant 0 : i32
    return %c0_i32, %c0_i32_0 : i32, i32
  }
  func.func @transform_14(%arg0: i32) -> (i32, i32, i32) {
    %c0_i32 = arith.constant 0 : i32
    %c0_i32_0 = arith.constant 0 : i32
    %c0_i32_1 = arith.constant 0 : i32
    return %arg0, %c0_i32, %c0_i32_0 : i32, i32, i32
  }
}

</mosaic_0001>

<bundles_post_ra>
// kernel: tpu_custom_call.1
= control target key start
LH: loop header
LB: loop body
LE: loop exit
PB: predicated region body
PF: predicated region fallthrough
CT: control target
= control target key end

     0   :  { %s8011_s0 = inlined_call_operand.vmem [shape: f32[2,8,7], index: 0, kind: input, shape index: {}]   ;;  %s8012_s1 = inlined_call_operand.hbm [shape: f32[2,1,32], index: 1, kind: input, shape index: {}]   ;;  %s8013_s2 = inlined_call_operand.hbm [shape: f32[7,512], index: 2, kind: input, shape index: {}]   ;;  %s8014_s3 = inlined_call_operand.hbm [shape: f32[7,512], index: 3, kind: input, shape index: {}]   ;;  %s8015_s4 = inlined_call_operand.hbm [shape: f32[1,512], index: 4, kind: input, shape index: {}]   ;;  %s8016_s5 = inlined_call_operand.hbm [shape: f32[512,512], index: 5, kind: input, shape index: {}]   ;;  %s8017_s6 = inlined_call_operand.hbm [shape: f32[32,512], index: 6, kind: input, shape index: {}]   ;;  %s8018_s7 = inlined_call_operand.hbm [shape: f32[1,512], index: 7, kind: input, shape index: {}]   ;;  %s8019_s8 = inlined_call_operand.hbm [shape: f32[512,512], index: 8, kind: input, shape index: {}]   ;;  %s8020_s9 = inlined_call_operand.hbm [shape: f32[1,512], index: 9, kind: input, shape index: {}]   ;;  %s8021_s10 = inlined_call_operand.hbm [shape: f32[512,1024], index: 10, kind: input, shape index: {}]   ;;  %s8022_s11 = inlined_call_operand.hbm [shape: f32[1,1024], index: 11, kind: input, shape index: {}]   ;;  %s8023_s12 = inlined_call_operand.hbm [shape: f32[1024,128], index: 12, kind: input, shape index: {}]   ;;  %s8024_s13 = inlined_call_operand.hbm [shape: f32[1,128], index: 13, kind: input, shape index: {}]   ;;  %s8025_s14 = inlined_call_operand.hbm [shape: f32[2,1,128], index: 14, kind: output, shape index: {}]  }
   0x1   :  { %8056 = sst [smem:[#allocation55_spill]] %s8011_s0 }
   0x2   :  { %8057 = sst [smem:[#allocation56_spill]] %s8012_s1 }
   0x3   :  { %8058 = sst [smem:[#allocation57_spill]] %s8013_s2 }
   0x4   :  { %8059 = sst [smem:[#allocation58_spill]] %s8015_s4 }
   0x5   :  { %8060 = sst [smem:[#allocation59_spill]] %s8025_s14 }
   0x6   :  { %19 = vsyncpa [#allocation3], 0 }
   0x7   :  { %21 = vsyncpa [#allocation3 + $0x1], 0 }
   0x8   :  { %22 = vsyncpa [#allocation6], 0 }
   0x9   :  { %23 = vsyncpa [#allocation9], 0 }
   0xa   :  { %24 = vsyncpa [#allocation12], 0 }
   0xb   :  { %25 = vsyncpa [#allocation15], 0 }
   0xc   :  { %26 = vsyncpa [#allocation18], 0 }
   0xd   :  { %27 = vsyncpa [#allocation21], 0 }
   0xe   :  { %28 = vsyncpa [#allocation4], 0 }
   0xf   :  { %30 = vsyncpa [#allocation4 + $0x1], 0  ;;  %s6858_s29 = smov 0   ;;  %s6860_s30 = smov 0  }
  0x10   :  { %s6862_s15 = smov 0   ;;  %s6864_s16 = smov 0  }
  0x11 LB: > { %8061 = sst [smem:[#allocation32_spill]] %s6747_s29  ;;  %s6761_s17 = smov [#allocation5]   ;;  %s6759_s16 = sphi %s6864_s16, %s8165_s16   ;;  %s6755_s15 = sphi %s6862_s15, %s8164_s15   ;;  %s6751_s30 = sphi %s6860_s30, %s8163_s30   ;;  %s6747_s29 = sphi %s6858_s29, %s8162_s29  }
  0x12   : > { %s384_s18 = sshll.u32 %s6761_s17, 4  ;;  %s6879_s19 = sadd.s32 4294967295, %s6759_s16   ;;  %s385_s18 = int_to_ptr.vmem [resolvable:$true] %s384_s18 }
  0x13   : > { %8062 = sst [smem:[#allocation33_spill]] %s6879_s19  ;;  %p4714_p0 = scmp.ge.s32.totalorder %s6759_s16, 1 }
  0x14   : > { %p8027_p1 = scmp.eq.s32.totalorder %s6879_s19, 0  ;;  %p371_p2 = scmp.lt.s32.totalorder %s6759_s16, 3 }
  0x15   : > { %s6762_s21 = smov [#allocation8]   ;;  %s6763_s24 = smov [#allocation11]  }
  0x16   : > { %p6884_p3 = pnand %p4714_p0, %p371_p2  ;;  %s406_s22 = sshll.u32 %s6762_s21, 4  ;;  %s6891_s22 = int_to_ptr.vmem [resolvable:$true] %s406_s22 }
  0x17   : > { %s429_s25 = sshll.u32 %s6763_s24, 4  ;;  %s8066_s2 = sld [smem:[#allocation57_spill]]  ;;  %s6899_s25 = int_to_ptr.vmem [resolvable:$true] %s429_s25 }
  0x18   : > { %s8063_s20 = scalar_select %p6884_p3, 1, 0 }
  0x19   : > { %p6176_p5 = pneg %p6884_p3 }
  0x1a   : > { %8064 = sst [smem:[#allocation34_spill]] %s8063_s20 }
  0x1b   : > { %p6895_p6 = pnand %p6176_p5, %p8027_p1 }
  0x1d   : > { %s6303_s28 = scalar_lea.hbm %s8066_s2, 512  ;;  %p6909_p8 = pneg %p6895_p6 }
  0x1e   : > { %p6304_p7 = scmp.ne.s32.totalorder %s8066_s2, %s6303_s28  ;;  %p6310_p11 = scmp.lt.u32.totalorder %s6303_s28, %s8066_s2 }
  0x20   : > { %p6306_p9 = pnand %p6909_p8, %p6304_p7 }
  0x22   : > { %p6307_p10 = pneg %p6306_p9 }
  0x24   : > { %p6312_p12 = pnand %p6310_p11, %p6307_p10 }
  0x26   : > { %6315 = shalt.err (!%p6312_p12)
}
  0x27   : > { %s6316_s26 = scalar_lea.vmem %s385_s18, 512  ;;  %p6324_p5 = scmp.lt.s32.totalorder %s385_s18, %s385_s18 }
  0x28   : > { %p6317_p13 = scmp.ne.s32.totalorder %s385_s18, %s6316_s26  ;;  %p6325_p4 = scmp.lt.s32.totalorder %s6316_s26, %s6316_s26 }
  0x2a   : > { %p6319_p0 = pnand %p6317_p13, %p6909_p8  ;;  %p6326_p1 = por %p6325_p4, %p6324_p5 }
  0x2c   : > { %p6320_p2 = pneg %p6319_p0 }
  0x2e   : > { %p6327_p3 = pnand %p6326_p1, %p6320_p2 }
  0x30   : > { %6330 = shalt.err (!%p6327_p3)
}
  0x31   : > { %6179 = dma.hbm_to_vmem [thread:$0]  (!%p6895_p6), %s8066_s2, 512, %s385_s18, [#allocation6]  }
  0x32   : > { %s8068_s4 = sld [smem:[#allocation58_spill]] }
  0x38   : > { %s6331_s17 = scalar_lea.hbm %s8068_s4, 64 }
  0x39   : > { %p6332_p7 = scmp.ne.s32.totalorder %s8068_s4, %s6331_s17  ;;  %p6338_p1 = scmp.lt.u32.totalorder %s6331_s17, %s8068_s4 }
  0x3b   : > { %p6334_p9 = pnand %p6332_p7, %p6909_p8 }
  0x3d   : > { %p6335_p4 = pneg %p6334_p9 }
  0x3f   : > { %p6340_p3 = pnand %p6338_p1, %p6335_p4 }
  0x41   : > { %6343 = shalt.err (!%p6340_p3)
}
  0x42   : > { %s6344_s18 = scalar_lea.vmem %s6891_s22, 64  ;;  %p6352_p13 = scmp.lt.s32.totalorder %s6891_s22, %s6891_s22 }
  0x43   : > { %p6345_p10 = scmp.ne.s32.totalorder %s6891_s22, %s6344_s18  ;;  %p6353_p0 = scmp.lt.s32.totalorder %s6344_s18, %s6344_s18 }
  0x45   : > { %p6347_p11 = pnand %p6345_p10, %p6909_p8  ;;  %p6354_p2 = por %p6353_p0, %p6352_p13 }
  0x47   : > { %p6348_p12 = pneg %p6347_p11 }
  0x49   : > { %p6355_p5 = pnand %p6354_p2, %p6348_p12 }
  0x4b   : > { %6358 = shalt.err (!%p6355_p5)
}
  0x4c   : > { %6185 = dma.hbm_to_vmem [thread:$0]  (!%p6895_p6), %s8068_s4, 64, %s6891_s22, [#allocation9]  }
  0x4d   : > { %s6359_s0 = scalar_lea.hbm %s8017_s6, 2048 }
  0x4e   : > { %p6360_p7 = scmp.ne.s32.totalorder %s8017_s6, %s6359_s0  ;;  %p6366_p1 = scmp.lt.u32.totalorder %s6359_s0, %s8017_s6 }
  0x50   : > { %p6362_p9 = pnand %p6360_p7, %p6909_p8 }
  0x52   : > { %p6363_p4 = pneg %p6362_p9 }
  0x54   : > { %p6368_p3 = pnand %p6366_p1, %p6363_p4 }
  0x56   : > { %6371 = shalt.err (!%p6368_p3)
}
  0x57   : > { %s6372_s22 = scalar_lea.vmem %s6899_s25, 2048  ;;  %p6380_p13 = scmp.lt.s32.totalorder %s6899_s25, %s6899_s25 }
  0x58   : > { %p6373_p10 = scmp.ne.s32.totalorder %s6899_s25, %s6372_s22  ;;  %p6381_p0 = scmp.lt.s32.totalorder %s6372_s22, %s6372_s22 }
  0x5a   : > { %p6375_p11 = pnand %p6373_p10, %p6909_p8  ;;  %p6382_p2 = por %p6381_p0, %p6380_p13 }
  0x5c   : > { %p6376_p12 = pneg %p6375_p11 }
  0x5e   : > { %p6383_p5 = pnand %p6382_p2, %p6376_p12 }
  0x60   : > { %6386 = shalt.err (!%p6383_p5)
}
  0x61   : > { %s6764_s18 = smov 512   ;;  %s6765_s1 = smov 32  }
  0x62   : > { %6191 = dma.hbm_to_vmem [thread:$0]  (!%p6895_p6), %s8017_s6, 2048, %s6899_s25, [#allocation12], %s6764_s18, %s6764_s18, %s6765_s1  }
  0x63   : > { %s6766_s27 = smov [#allocation14]   ;;  %s6767_s28 = smov [#allocation17]  }
  0x64   : > { %s453_s0 = sshll.u32 %s6766_s27, 4  ;;  %s477_s17 = sshll.u32 %s6767_s28, 4  ;;  %s454_s0 = int_to_ptr.vmem [resolvable:$true] %s453_s0  ;;  %s478_s17 = int_to_ptr.vmem [resolvable:$true] %s477_s17 }
  0x65   : > { %s6387_s22 = scalar_lea.hbm %s8019_s8, 32768 }
  0x66   : > { %p6388_p7 = scmp.ne.s32.totalorder %s8019_s8, %s6387_s22  ;;  %p6394_p1 = scmp.lt.u32.totalorder %s6387_s22, %s8019_s8 }
  0x68   : > { %p6390_p9 = pnand %p6388_p7, %p6909_p8 }
  0x6a   : > { %p6391_p4 = pneg %p6390_p9 }
  0x6c   : > { %p6396_p3 = pnand %p6394_p1, %p6391_p4 }
  0x6e   : > { %6399 = shalt.err (!%p6396_p3)
}
  0x6f   : > { %s6400_s25 = scalar_lea.vmem %s454_s0, 32768  ;;  %p6408_p13 = scmp.lt.s32.totalorder %s454_s0, %s454_s0 }
  0x70   : > { %p6401_p10 = scmp.ne.s32.totalorder %s454_s0, %s6400_s25  ;;  %p6409_p0 = scmp.lt.s32.totalorder %s6400_s25, %s6400_s25 }
  0x72   : > { %p6403_p11 = pnand %p6401_p10, %p6909_p8  ;;  %p6410_p2 = por %p6409_p0, %p6408_p13 }
  0x74   : > { %p6404_p12 = pneg %p6403_p11 }
  0x76   : > { %p6411_p5 = pnand %p6410_p2, %p6404_p12 }
  0x78   : > { %6414 = shalt.err (!%p6411_p5)
}
  0x79   : > { %6197 = dma.hbm_to_vmem [thread:$0]  (!%p6895_p6), %s8019_s8, 32768, %s454_s0, [#allocation15], %s6764_s18, %s6764_s18, %s6765_s1  }
  0x7a   : > { %s6415_s20 = scalar_lea.hbm %s8021_s10, 65536 }
  0x7b   : > { %p6416_p7 = scmp.ne.s32.totalorder %s8021_s10, %s6415_s20  ;;  %p6422_p1 = scmp.lt.u32.totalorder %s6415_s20, %s8021_s10 }
  0x7d   : > { %p6418_p9 = pnand %p6416_p7, %p6909_p8 }
  0x7f   : > { %p6419_p4 = pneg %p6418_p9 }
  0x81   : > { %p6424_p3 = pnand %p6422_p1, %p6419_p4 }
  0x83   : > { %6427 = shalt.err (!%p6424_p3)
}
  0x84   : > { %s6428_s26 = scalar_lea.vmem %s478_s17, 65536  ;;  %p6436_p13 = scmp.lt.s32.totalorder %s478_s17, %s478_s17 }
  0x85   : > { %p6429_p10 = scmp.ne.s32.totalorder %s478_s17, %s6428_s26  ;;  %p6437_p0 = scmp.lt.s32.totalorder %s6428_s26, %s6428_s26 }
  0x87   : > { %p6431_p11 = pnand %p6429_p10, %p6909_p8  ;;  %p6438_p2 = por %p6437_p0, %p6436_p13 }
  0x89   : > { %p6432_p12 = pneg %p6431_p11 }
  0x8b   : > { %p6439_p5 = pnand %p6438_p2, %p6432_p12 }
  0x8d   : > { %6442 = shalt.err (!%p6439_p5)
}
  0x8e   : > { %s6768_s0 = smov 1024   ;;  %s6769_s22 = smov 64  }
  0x8f   : > { %6203 = dma.hbm_to_vmem [thread:$0]  (!%p6895_p6), %s8021_s10, 65536, %s478_s17, [#allocation18], %s6768_s0, %s6768_s0, %s6769_s22  }
  0x90   : > { %s6770_s4 = smov [#allocation20]   ;;  %s6443_s14 = scalar_lea.hbm %s8023_s12, 16384 }
  0x91   : > { %s501_s29 = sshll.u32 %s6770_s4, 4  ;;  %p6444_p7 = scmp.ne.s32.totalorder %s8023_s12, %s6443_s14  ;;  %s502_s29 = int_to_ptr.vmem [resolvable:$true] %s501_s29 }
  0x92   : > { %p6450_p1 = scmp.lt.u32.totalorder %s6443_s14, %s8023_s12 }
  0x93   : > { %p6446_p9 = pnand %p6444_p7, %p6909_p8 }
  0x95   : > { %p6447_p4 = pneg %p6446_p9 }
  0x97   : > { %p6452_p3 = pnand %p6450_p1, %p6447_p4 }
  0x99   : > { %6455 = shalt.err (!%p6452_p3)
}
  0x9a   : > { %s6456_s17 = scalar_lea.vmem %s502_s29, 16384  ;;  %p6464_p13 = scmp.lt.s32.totalorder %s502_s29, %s502_s29 }
  0x9b   : > { %p6457_p10 = scmp.ne.s32.totalorder %s502_s29, %s6456_s17  ;;  %p6465_p0 = scmp.lt.s32.totalorder %s6456_s17, %s6456_s17 }
  0x9d   : > { %p6459_p11 = pnand %p6457_p10, %p6909_p8  ;;  %p6466_p2 = por %p6465_p0, %p6464_p13 }
  0x9f   : > { %p6460_p12 = pneg %p6459_p11 }
  0xa1   : > { %p6467_p5 = pnand %p6466_p2, %p6460_p12 }
  0xa3   : > { %6470 = shalt.err (!%p6467_p5)
}
  0xa4   : > { %s6771_s0 = smov 128   ;;  %s6772_s22 = smov 8  }
  0xa5   : > { %6209 = dma.hbm_to_vmem [thread:$0]  (!%p6895_p6), %s8023_s12, 16384, %s502_s29, [#allocation21], %s6771_s0, %s6771_s0, %s6772_s22  }
  0xa6   : > { %s6773_s4 = smov [#allocation7]   ;;  %s6774_s20 = smov [#allocation10]  }
  0xa7   : > { %s395_s19 = sshll.u32 %s6773_s4, 4  ;;  %s416_s14 = sshll.u32 %s6774_s20, 4  ;;  %s396_s19 = int_to_ptr.vmem [resolvable:$true] %s395_s19  ;;  %s7031_s14 = int_to_ptr.vmem [resolvable:$true] %s416_s14 }
  0xa8   : > { %s6471_s24 = scalar_lea.hbm %s8014_s3, 512 }
  0xa9   : > { %p6472_p7 = scmp.ne.s32.totalorder %s8014_s3, %s6471_s24  ;;  %p6478_p1 = scmp.lt.u32.totalorder %s6471_s24, %s8014_s3 }
  0xab   : > { %p6474_p9 = pnand %p6472_p7, %p6909_p8 }
  0xad   : > { %p6475_p4 = pneg %p6474_p9 }
  0xaf   : > { %p6480_p3 = pnand %p6478_p1, %p6475_p4 }
  0xb1   : > { %6483 = shalt.err (!%p6480_p3)
}
  0xb2   : > { %s6484_s0 = scalar_lea.vmem %s396_s19, 512  ;;  %p6492_p13 = scmp.lt.s32.totalorder %s396_s19, %s396_s19 }
  0xb3   : > { %p6485_p10 = scmp.ne.s32.totalorder %s396_s19, %s6484_s0  ;;  %p6493_p0 = scmp.lt.s32.totalorder %s6484_s0, %s6484_s0 }
  0xb5   : > { %p6487_p11 = pnand %p6485_p10, %p6909_p8  ;;  %p6494_p2 = por %p6493_p0, %p6492_p13 }
  0xb7   : > { %p6488_p12 = pneg %p6487_p11 }
  0xb9   : > { %p6495_p5 = pnand %p6494_p2, %p6488_p12 }
  0xbb   : > { %6498 = shalt.err (!%p6495_p5)
}
  0xbc   : > { %6182 = dma.hbm_to_vmem [thread:$0]  (!%p6895_p6), %s8014_s3, 512, %s396_s19, [#allocation6]  }
  0xbd   : > { %s6499_s27 = scalar_lea.hbm %s8016_s5, 32768 }
  0xbe   : > { %p6500_p7 = scmp.ne.s32.totalorder %s8016_s5, %s6499_s27  ;;  %p6506_p1 = scmp.lt.u32.totalorder %s6499_s27, %s8016_s5 }
  0xc0   : > { %p6502_p9 = pnand %p6500_p7, %p6909_p8 }
  0xc2   : > { %p6503_p4 = pneg %p6502_p9 }
  0xc4   : > { %p6508_p3 = pnand %p6506_p1, %p6503_p4 }
  0xc6   : > { %6511 = shalt.err (!%p6508_p3)
}
  0xc7   : > { %s6512_s19 = scalar_lea.vmem %s7031_s14, 32768  ;;  %p6520_p13 = scmp.lt.s32.totalorder %s7031_s14, %s7031_s14 }
  0xc8   : > { %p6513_p10 = scmp.ne.s32.totalorder %s7031_s14, %s6512_s19  ;;  %p6521_p0 = scmp.lt.s32.totalorder %s6512_s19, %s6512_s19 }
  0xca   : > { %p6515_p11 = pnand %p6513_p10, %p6909_p8  ;;  %p6522_p2 = por %p6521_p0, %p6520_p13 }
  0xcc   : > { %p6516_p12 = pneg %p6515_p11 }
  0xce   : > { %p6523_p5 = pnand %p6522_p2, %p6516_p12 }
  0xd0   : > { %6526 = shalt.err (!%p6523_p5)
}
  0xd1   : > { %6188 = dma.hbm_to_vmem [thread:$0]  (!%p6895_p6), %s8016_s5, 32768, %s7031_s14, [#allocation9], %s6764_s18, %s6764_s18, %s6765_s1  }
  0xd2   : > { %s6775_s0 = smov [#allocation13]   ;;  %s6776_s2 = smov [#allocation16]  }
  0xd3   : > { %s443_s22 = sshll.u32 %s6775_s0, 4  ;;  %s467_s4 = sshll.u32 %s6776_s2, 4  ;;  %s444_s22 = int_to_ptr.vmem [resolvable:$true] %s443_s22  ;;  %s7077_s4 = int_to_ptr.vmem [resolvable:$true] %s467_s4 }
  0xd4   : > { %s6527_s28 = scalar_lea.hbm %s8018_s7, 64 }
  0xd5   : > { %p6528_p7 = scmp.ne.s32.totalorder %s8018_s7, %s6527_s28  ;;  %p6534_p1 = scmp.lt.u32.totalorder %s6527_s28, %s8018_s7 }
  0xd7   : > { %p6530_p9 = pnand %p6528_p7, %p6909_p8 }
  0xd9   : > { %p6531_p4 = pneg %p6530_p9 }
  0xdb   : > { %p6536_p3 = pnand %p6534_p1, %p6531_p4 }
  0xdd   : > { %6539 = shalt.err (!%p6536_p3)
}
  0xde   : > { %s6540_s1 = scalar_lea.vmem %s444_s22, 64  ;;  %p6548_p13 = scmp.lt.s32.totalorder %s444_s22, %s444_s22 }
  0xdf   : > { %p6541_p10 = scmp.ne.s32.totalorder %s444_s22, %s6540_s1  ;;  %p6549_p0 = scmp.lt.s32.totalorder %s6540_s1, %s6540_s1 }
  0xe1   : > { %p6543_p11 = pnand %p6541_p10, %p6909_p8  ;;  %p6550_p2 = por %p6549_p0, %p6548_p13 }
  0xe3   : > { %p6544_p12 = pneg %p6543_p11 }
  0xe5   : > { %p6551_p5 = pnand %p6550_p2, %p6544_p12 }
  0xe7   : > { %6554 = shalt.err (!%p6551_p5)
}
  0xe8   : > { %6194 = dma.hbm_to_vmem [thread:$0]  (!%p6895_p6), %s8018_s7, 64, %s444_s22, [#allocation12]  }
  0xe9   : > { %s6555_s0 = scalar_lea.hbm %s8020_s9, 64 }
  0xea   : > { %p6556_p7 = scmp.ne.s32.totalorder %s8020_s9, %s6555_s0  ;;  %p6562_p1 = scmp.lt.u32.totalorder %s6555_s0, %s8020_s9 }
  0xec   : > { %p6558_p9 = pnand %p6556_p7, %p6909_p8 }
  0xee   : > { %p6559_p4 = pneg %p6558_p9 }
  0xf0   : > { %p6564_p3 = pnand %p6562_p1, %p6559_p4 }
  0xf2   : > { %6567 = shalt.err (!%p6564_p3)
}
  0xf3   : > { %s6568_s22 = scalar_lea.vmem %s7077_s4, 64  ;;  %p6576_p13 = scmp.lt.s32.totalorder %s7077_s4, %s7077_s4 }
  0xf4   : > { %p6569_p10 = scmp.ne.s32.totalorder %s7077_s4, %s6568_s22  ;;  %p6577_p0 = scmp.lt.s32.totalorder %s6568_s22, %s6568_s22 }
  0xf6   : > { %p6571_p11 = pnand %p6569_p10, %p6909_p8  ;;  %p6578_p2 = por %p6577_p0, %p6576_p13 }
  0xf8   : > { %p6572_p12 = pneg %p6571_p11 }
  0xfa   : > { %p6579_p5 = pnand %p6578_p2, %p6572_p12 }
  0xfc   : > { %6582 = shalt.err (!%p6579_p5)
}
  0xfd   : > { %6200 = dma.hbm_to_vmem [thread:$0]  (!%p6895_p6), %s8020_s9, 64, %s7077_s4, [#allocation15]  }
  0xfe   : > { %s6777_s17 = smov [#allocation19]   ;;  %s6778_s1 = smov [#allocation22]  }
  0xff   : > { %s491_s18 = sshll.u32 %s6777_s17, 4  ;;  %s515_s14 = sshll.u32 %s6778_s1, 4  ;;  %s492_s18 = int_to_ptr.vmem [resolvable:$true] %s491_s18  ;;  %s7120_s14 = int_to_ptr.vmem [resolvable:$true] %s515_s14 }
 0x100   : > { %s6583_s29 = scalar_lea.hbm %s8022_s11, 128 }
 0x101   : > { %p6584_p7 = scmp.ne.s32.totalorder %s8022_s11, %s6583_s29  ;;  %p6590_p1 = scmp.lt.u32.totalorder %s6583_s29, %s8022_s11 }
 0x103   : > { %p6586_p9 = pnand %p6584_p7, %p6909_p8 }
 0x105   : > { %p6587_p4 = pneg %p6586_p9 }
 0x107   : > { %p6592_p3 = pnand %p6590_p1, %p6587_p4 }
 0x109   : > { %6595 = shalt.err (!%p6592_p3)
}
 0x10a   : > { %s6596_s27 = scalar_lea.vmem %s492_s18, 128  ;;  %p6604_p13 = scmp.lt.s32.totalorder %s492_s18, %s492_s18 }
 0x10b   : > { %p6597_p10 = scmp.ne.s32.totalorder %s492_s18, %s6596_s27  ;;  %p6605_p0 = scmp.lt.s32.totalorder %s6596_s27, %s6596_s27 }
 0x10d   : > { %p6599_p11 = pnand %p6597_p10, %p6909_p8  ;;  %p6606_p2 = por %p6605_p0, %p6604_p13 }
 0x10f   : > { %p6600_p12 = pneg %p6599_p11 }
 0x111   : > { %p6607_p5 = pnand %p6606_p2, %p6600_p12 }
 0x113   : > { %6610 = shalt.err (!%p6607_p5)
}
 0x114   : > { %6206 = dma.hbm_to_vmem [thread:$0]  (!%p6895_p6), %s8022_s11, 128, %s492_s18, [#allocation18]  }
 0x115   : > { %s6611_s17 = scalar_lea.hbm %s8024_s13, 16 }
 0x116   : > { %p6612_p7 = scmp.ne.s32.totalorder %s8024_s13, %s6611_s17  ;;  %p6618_p1 = scmp.lt.u32.totalorder %s6611_s17, %s8024_s13 }
 0x118   : > { %p6614_p9 = pnand %p6612_p7, %p6909_p8 }
 0x11a   : > { %p6615_p4 = pneg %p6614_p9 }
 0x11c   : > { %p6620_p3 = pnand %p6618_p1, %p6615_p4 }
 0x11e   : > { %6623 = shalt.err (!%p6620_p3)
}
 0x11f   : > { %s6624_s18 = scalar_lea.vmem %s7120_s14, 16  ;;  %s6631_s0 = scalar_lea.vmem %s7120_s14, 32 }
 0x120   : > { %p6625_p10 = scmp.ne.s32.totalorder %s7120_s14, %s6624_s18  ;;  %p6632_p13 = scmp.lt.s32.totalorder %s7120_s14, %s7120_s14 }
 0x121   : > { %p6633_p0 = scmp.lt.s32.totalorder %s6631_s0, %s6624_s18 }
 0x122   : > { %p6627_p11 = pnand %p6625_p10, %p6909_p8 }
 0x123   : > { %p6634_p2 = por %p6633_p0, %p6632_p13 }
 0x124   : > { %p6628_p12 = pneg %p6627_p11 }
 0x126   : > { %p6635_p5 = pnand %p6634_p2, %p6628_p12 }
 0x128   : > { %6638 = shalt.err (!%p6635_p5)
}
 0x129   : > { %s8069_s21 = sld [smem:[#allocation32_spill]]  ;;  %s8070_s4 = sld [smem:[#allocation33_spill]] }
 0x12a   : > { %6212 = dma.hbm_to_vmem [thread:$0]  (!%p6895_p6), %s8024_s13, 16, %s7120_s14, [#allocation21]  }
 0x12b   : > { %s4713_s23 = sadd.s32 4294967294, %s6759_s16   ;;  %s7166_s27 = sadd.s32 1, %s6759_s16  }
 0x12c   : > { %s66_s28 = ssub.s32 %s6759_s16, %s7166_s27  ;;  %s69_s22 = sadd.s32 1, %s6755_s15 }
 0x12d   : > { %p67_p8 = scmp.eq.s32.totalorder %s66_s28, 0  ;;  %p76_p7 = scmp.ne.s32.totalorder %s6755_s15, %s6751_s30 }
 0x12e   : > { %p77_p9 = scmp.eq.s32.totalorder %s6759_s16, 0  ;;  %p364_p11 = scmp.eq.s32.totalorder %s4713_s23, 1 }
 0x12f   : > { %p82_p4 = scmp.ne.s32.totalorder %s6751_s30, %s8069_s21  ;;  %p8072_p3 = scmp.eq.s32.totalorder %s8070_s4, 0 }
 0x130   : > { %s7177_s24 = scalar_select %p67_p8, %s6755_s15, %s69_s22  }
 0x131   : > { %p7179_p1 = por %p77_p9, %p76_p7  ;;  %p7185_p6 = por %p8072_p3, %p82_p4 }
 0x132   : > { %p358_p10 = scmp.eq.s32.totalorder %s8070_s4, 1  ;;  %p6233_p12 = scmp.lt.s32.totalorder %s6759_s16, 2 }
 0x133   : > { %s533_s17 = sand.u32 1, %s6755_s15   ;;  %p7196_p0 = por %p364_p11, %p82_p4 }
 0x134   : > { %p7192_p13 = por %p358_p10, %p76_p7  ;;  %s4728_s25 = sshll.u32 %s6759_s16, 4 }
 0x135   : > { %s8075_s19 = scalar_select %p7196_p0, 1, 0 }
 0x136   : > { %s8074_s1 = scalar_select %p7192_p13, 1, 0 }
 0x137   : > { %s536_s29 = scalar_lea.vmem [#allocation2], %s533_s17  ;;  %s8076_s20 = sld [smem:[#allocation56_spill]] }
 0x138   : > { %s543_s18 = sshll.u32 %s536_s29, 4  ;;  %p7210_p2 = pnand %p6233_p12, %p7179_p1  ;;  %s7206_s18 = int_to_ptr.vmem [resolvable:$true] %s543_s18 }
 0x139   : > { %s534_s23 = scalar_lea.sflag [#allocation3], %s533_s17 }
 0x13a   : > { %p6641_p8 = pneg %p7210_p2 }
 0x13d   : > { %s7204_s21 = scalar_lea.hbm %s8076_s20, %s4728_s25  ;;  %s6644_s29 = scalar_lea.hbm %s8076_s20, 32 }
 0x13e   : > { %s6639_s28 = scalar_lea.hbm %s7204_s21, 16  ;;  %p6645_p4 = scmp.lt.u32.totalorder %s7204_s21, %s8076_s20 }
 0x13f   : > { %p6640_p5 = scmp.ne.s32.totalorder %s7204_s21, %s6639_s28  ;;  %p6646_p1 = scmp.lt.u32.totalorder %s6644_s29, %s6639_s28 }
 0x140   : > { %p6648_p10 = scmp.lt.u32.totalorder %s6639_s28, %s7204_s21 }
 0x141   : > { %p6642_p7 = pnand %p6641_p8, %p6640_p5  ;;  %p6647_p3 = por %p6646_p1, %p6645_p4 }
 0x143   : > { %p6643_p9 = pneg %p6642_p7  ;;  %p6649_p11 = por %p6648_p10, %p6647_p3 }
 0x145   : > { %p6650_p12 = pnand %p6649_p11, %p6643_p9 }
 0x147   : > { %6653 = shalt.err (!%p6650_p12)
}
 0x148   : > { %s6654_s17 = scalar_lea.vmem %s7206_s18, 16  ;;  %s6779_s2 = smov [#allocation2]  }
 0x149   : > { %p6655_p5 = scmp.ne.s32.totalorder %s7206_s18, %s6654_s17  ;;  %s6659_s22 = sshll.u32 %s6779_s2, 4  ;;  %s6660_s22 = int_to_ptr.vmem [resolvable:$false] %s6659_s22 }
 0x14a   : > { %s6661_s25 = scalar_lea.vmem %s6660_s22, 32  ;;  %p6662_p13 = scmp.lt.s32.totalorder %s7206_s18, %s6660_s22 }
 0x14b   : > { %p6657_p7 = pnand %p6655_p5, %p6641_p8  ;;  %p6663_p4 = scmp.lt.s32.totalorder %s6661_s25, %s6654_s17 }
 0x14d   : > { %p6658_p0 = pneg %p6657_p7  ;;  %p6664_p1 = por %p6663_p4, %p6662_p13 }
 0x14f   : > { %p6665_p3 = pnand %p6664_p1, %p6658_p0 }
 0x151   : > { %6668 = shalt.err (!%p6665_p3)
}
 0x152   : > { %6216 = dma.hbm_to_vmem [thread:$0]  (!%p7210_p2), %s7204_s21, 16, %s7206_s18, %s534_s23  }
 0x153   : > { %s8078_s28 = sld [smem:[#allocation34_spill]] }
 0x159   : > { %p8079_p9 = scmp.ne.s32.totalorder %s8078_s28, 0 }
 0x15b   : > { %552 = sbr.rel (%p8079_p9) target bundleno = 2200 (0x898), region = 76 }
 0x162   : > { %s7242_s29 = sand.u32 1, %s6751_s30  }
 0x163   : > { %s555_s26 = scalar_lea.sflag [#allocation3], %s7242_s29  ;;  %s557_s0 = scalar_lea.vmem [#allocation2], %s7242_s29 }
 0x164   : > { %6714 = dma.done.wait (%p7185_p6), %s555_s26, 16  }
 0x165   : > { %6716 = vsyncadd (%p7185_p6), %s555_s26, 4294967280  ;;  %s8080_s4 = sld [smem:[#allocation33_spill]] }
 0x16b   : > { %p8081_p13 = scmp.eq.s32.totalorder %s8080_s4, 0 }
 0x16d   : > { %6718 = dma.done.wait (%p8081_p13), [#allocation6], 1024   ;;  %p8082_p0 = pmov %p8081_p13 }
 0x16f   : > { %6720 = vsyncadd (%p8082_p0), [#allocation6], 4294966272  ;;  %p8083_p2 = pmov %p8082_p0 }
 0x170   : > { %p8084_p8 = pmov %p8082_p0 }
 0x171   : > { %6722 = dma.done.wait (%p8083_p2), [#allocation9], 32832  }
 0x172   : > { %6724 = vsyncadd (%p8084_p8), [#allocation9], 4294934464  ;;  %p8085_p10 = pmov %p8082_p0 }
 0x173   : > { %p8086_p11 = pmov %p8082_p0 }
 0x174   : > { %6726 = dma.done.wait (%p8085_p10), [#allocation12], 2112  }
 0x175   : > { %6728 = vsyncadd (%p8086_p11), [#allocation12], 4294965184  ;;  %p8087_p6 = pmov %p8082_p0 }
 0x176   : > { %p8088_p12 = pmov %p8082_p0 }
 0x177   : > { %6730 = dma.done.wait (%p8087_p6), [#allocation15], 32832  }
 0x178   : > { %6732 = vsyncadd (%p8088_p12), [#allocation15], 4294934464  ;;  %p8089_p5 = pmov %p8082_p0 }
 0x179   : > { %p8090_p7 = pmov %p8082_p0 }
 0x17a   : > { %6734 = dma.done.wait (%p8089_p5), [#allocation18], 65664  }
 0x17b   : > { %6736 = vsyncadd (%p8090_p7), [#allocation18], 4294901632  ;;  %p8091_p4 = pmov %p8082_p0 }
 0x17c   : > { %p8092_p1 = pmov %p8082_p0 }
 0x17d   : > { %6738 = dma.done.wait (%p8091_p4), [#allocation21], 16400  }
 0x17e   : > { %6740 = vsyncadd (%p8092_p1), [#allocation21], 4294950896  ;;  %p652_p3 = scmp.lt.s32.totalorder %s8080_s4, 1  ;;  %v6780_v0 = vmov 0.0   ;;  %vm665_vm0 = vcmask 1046528   ;;  %s8093_s17 = sld [smem:[#allocation55_spill]] }
 0x17f   : > { %742 = vmatprep.mubr.f32.mxu0 %v6780_v0  ;;  %813 = vmatprep.mubr.f32.mxu1 %v6780_v0  ;;  %vm661_vm1 = vcmask 56320   ;;  %v658_v1 = vld [vmem:[#allocation5 + $0x8] sm:$0x7f]  ;;  %v660_v2 = vld [vmem:[#allocation5 + $0x18] sm:$0x7f]  ;;  %vm1345_vm2 = vcmask 261120  }
 0x180   : > { %s653_s14 = scalar_select %p652_p3, %s8080_s4, 1  ;;  %v657_v3 = vld [vmem:[#allocation5] sm:$0x7f]  ;;  %4743 = vmatprep.subr.msk.mxu0 %vm665_vm0, %v658_v1  ;;  %4746 = vmatprep.subr.msk.mxu1 %vm665_vm0, %v660_v2  ;;  %v659_v4 = vld [vmem:[#allocation5 + $0x10] sm:$0x7f]  ;;  %vm4494_vm4 = vcmask 1040384  }
 0x181   : > { %v821_v6 = vld [vmem:[#allocation7 + $0x8] sm:$0x7f]  ;;  %4744 = vmatpush1.msk.msra.mxu0 %vm665_vm0, %v657_v3  ;;  %4747 = vmatpush1.msk.msra.mxu1 %vm665_vm0, %v659_v4  ;;  %v823_v7 = vld [vmem:[#allocation7 + $0x18] sm:$0x7f]  ;;  %v820_v8 = vld [vmem:[#allocation7] sm:$0x7f] }
 0x182   : > { %s4742_s18 = sshll.u32 %s653_s14, 3  ;;  %v822_v9 = vld [vmem:[#allocation7 + $0x10] sm:$0x7f]  ;;  %v1332_v12 = vld [vmem:[#allocation11 + $0x18] sm:$0xff]  ;;  %4749 = vmatprep.subr.msk.mxu0 %vm665_vm0, %v821_v6  ;;  %4752 = vmatprep.subr.msk.mxu1 %vm665_vm0, %v823_v7  ;;  %v1329_v15 = vld [vmem:[#allocation11] sm:$0xff]  ;;  %s4757_s22 = sshll.u32 %s8080_s4, 4 }
 0x183   : > { %v1330_v10 = vld [vmem:[#allocation11 + $0x8] sm:$0xff]  ;;  %v1336_v14 = vld [vmem:[#allocation11 + $0x38] sm:$0xff]  ;;  %v1333_v16 = vld [vmem:[#allocation11 + $0x20] sm:$0xff]  ;;  %s651_s25 = scalar_lea.vmem [#allocation23], %s7242_s29  ;;  %s8157_s14 = sld [smem:[#allocation59_spill]] }
 0x184   : > { %s655_s2 = scalar_lea.vmem %s8093_s17, %s4742_s18  ;;  %v1334_v11 = vld [vmem:[#allocation11 + $0x28] sm:$0xff]  ;;  %v4908_v17 = vpack.c.bf16 %v1336_v14, %v1332_v12  ;;  %v4902_v18 = vpack.c.bf16 %v1333_v16, %v1329_v15  ;;  %v1331_v19 = vld [vmem:[#allocation11 + $0x10] sm:$0xff]  ;;  %v1340_v24 = vld [vmem:[#allocation11 + $0x58] sm:$0xff]  ;;  %s4524_s28 = sshll.u32 %s651_s25, 4  ;;  %s7968_s28 = int_to_ptr.vmem [resolvable:$true] %s4524_s28 }
 0x185   : > { %v656_v5 = vld [vmem:[%s655_s2] sm:$0xff]  ;;  %v4900_v13 = vpack.c.bf16 %v1334_v11, %v1330_v10  ;;  %v1335_v20 = vld [vmem:[#allocation11 + $0x30] sm:$0xff]  ;;  %v1338_v21 = vld [vmem:[#allocation11 + $0x48] sm:$0xff]  ;;  %s4512_s21 = scalar_lea.sflag [#allocation4], %s7242_s29  ;;  %s6669_s23 = scalar_lea.vmem %s7968_s28, 16 }
 0x186   : > { %4745 = vmatmul.mubr.msk.f32.vlgmr.msra.gmra.mrb[0].mxu0 %vm661_vm1, %v656_v5  ;;  %4748 = vmatmul.mubr.msk.f32.vlgmr.msra.gmra.mrb[0].mxu1 %vm661_vm1, %v656_v5  ;;  %v4910_v22 = vpack.c.bf16 %v1335_v20, %v1331_v19  ;;  %v1342_v23 = vld [vmem:[#allocation11 + $0x68] sm:$0xff]  ;;  %v1344_v25 = vld [vmem:[#allocation11 + $0x78] sm:$0xff]  ;;  %v1337_v28 = vld [vmem:[#allocation11 + $0x40] sm:$0xff]  ;;  %p6670_p9 = scmp.ne.s32.totalorder %s7968_s28, %s6669_s23  ;;  %p8158_p13 = scmp.ne.s32.totalorder %s8074_s1, 0 }
 0x187   : > { %4750 = vmatpush1.msk.msra.mxu0 %vm665_vm0, %v820_v8  ;;  %4753 = vmatpush1.msk.msra.mxu1 %vm665_vm0, %v822_v9  ;;  %v4904_v26 = vpack.c.bf16 %v1342_v23, %v1338_v21  ;;  %v4912_v27 = vpack.c.bf16 %v1344_v25, %v1340_v24  ;;  %v1341_v29 = vld [vmem:[#allocation11 + $0x60] sm:$0xff]  ;;  %v1339_v30 = vld [vmem:[#allocation11 + $0x50] sm:$0xff]  ;;  %v1492_v32 = vld [vmem:[#allocation10 + $0x8] sm:$0xff]  ;;  %s6782_s4 = smov [#allocation23]  }
 0x188   : > { %900 = vmatprep.mubr.f32.mxu0 %v6780_v0  ;;  %971 = vmatprep.mubr.f32.mxu1 %v6780_v0  ;;  %v1343_v31 = vld [vmem:[#allocation11 + $0x70] sm:$0xff]  ;;  %v1496_v33 = vld [vmem:[#allocation10 + $0x28] sm:$0xff]  ;;  %v4906_v34 = vpack.c.bf16 %v1341_v29, %v1337_v28  ;;  %v1494_v36 = vld [vmem:[#allocation10 + $0x18] sm:$0xff]  ;;  %p6671_p0 = pnand %p6670_p9, %p8158_p13  ;;  %s6673_s17 = sshll.u32 %s6782_s4, 4  ;;  %s6674_s17 = int_to_ptr.vmem [resolvable:$false] %s6673_s17 }
 0x189   : > { %4901 = vmatprep.subr.bf16.mxu0 %v4900_v13  ;;  %4909 = vmatprep.subr.bf16.mxu1 %v4908_v17  ;;  %v4914_v35 = vpack.c.bf16 %v1343_v31, %v1339_v30  ;;  %v1498_v37 = vld [vmem:[#allocation10 + $0x38] sm:$0xff]  ;;  %v4916_v38 = vpack.c.bf16 %v1496_v33, %v1492_v32  ;;  %v1491_v40 = vld [vmem:[#allocation10] sm:$0xff]  ;;  %v1493_v42 = vld [vmem:[#allocation10 + $0x10] sm:$0xff]  ;;  %s7966_s18 = scalar_lea.hbm %s8157_s14, %s4757_s22  ;;  %s6675_s2 = scalar_lea.vmem %s6674_s17, 32 }
 0x18a   : > { %4751 = vmatmul.mubr.msk.f32.vlgmr.msra.gmra.mrb[2].mxu0 %vm661_vm1, %v656_v5  ;;  %4754 = vmatmul.mubr.msk.f32.vlgmr.msra.gmra.mrb[2].mxu1 %vm661_vm1, %v656_v5  ;;  %v5044_v39 = vpack.c.bf16 %v1498_v37, %v1494_v36  ;;  %v1495_v41 = vld [vmem:[#allocation10 + $0x20] sm:$0xff]  ;;  %v1497_v43 = vld [vmem:[#allocation10 + $0x30] sm:$0xff]  ;;  %v1500_v44 = vld [vmem:[#allocation10 + $0x48] sm:$0xff]  ;;  %p6672_p2 = pneg %p6671_p0  ;;  %p6676_p8 = scmp.lt.s32.totalorder %s7968_s28, %s6674_s17 }
 0x18b   : > { %4903 = vmatpush1.bf16.msra.mxu0 %v4902_v18  ;;  %4911 = vmatpush1.bf16.msra.mxu1 %v4910_v22  ;;  %v1504_v45 = vld [vmem:[#allocation10 + $0x68] sm:$0xff]  ;;  %v1502_v46 = vld [vmem:[#allocation10 + $0x58] sm:$0xff]  ;;  %v4918_v49 = vpack.c.bf16 %v1495_v41, %v1491_v40  ;;  %v5046_v50 = vpack.c.bf16 %v1497_v43, %v1493_v42  ;;  %v1499_v51 = vld [vmem:[#allocation10 + $0x40] sm:$0xff]  ;;  %p6677_p10 = scmp.lt.s32.totalorder %s6675_s2, %s6669_s23 }
 0x18c   : > { %4905 = vmatprep.subr.bf16.mxu0 %v4904_v26  ;;  %4913 = vmatprep.subr.bf16.mxu1 %v4912_v27  ;;  %v1506_v47 = vld [vmem:[#allocation10 + $0x78] sm:$0xff]  ;;  %v1503_v52 = vld [vmem:[#allocation10 + $0x60] sm:$0xff]  ;;  %v4920_v53 = vpack.c.bf16 %v1504_v45, %v1500_v44  ;;  %v1501_v55 = vld [vmem:[#allocation10 + $0x50] sm:$0xff] }
 0x18d   : > { %1413 = vmatprep.mubr.f32.mxu0 %v6780_v0  ;;  %1484 = vmatprep.mubr.f32.mxu1 %v6780_v0  ;;  %v1328_v48 = vld [vmem:[%s557_s0] sm:$0x1]  ;;  %v5048_v54 = vpack.c.bf16 %v1506_v47, %v1502_v46  ;;  %v1505_v56 = vld [vmem:[#allocation10 + $0x70] sm:$0xff]  ;;  %v1508_v57 = vld [vmem:[#allocation10 + $0x88] sm:$0xff]  ;;  %v4922_v61 = vpack.c.bf16 %v1503_v52, %v1499_v51  ;;  %p6678_p11 = por %p6677_p10, %p6676_p8 }
 0x18e   : > { %v1512_v58 = vld [vmem:[#allocation10 + $0xa8] sm:$0xff]  ;;  %v1510_v59 = vld [vmem:[#allocation10 + $0x98] sm:$0xff]  ;;  %v5050_v62 = vpack.c.bf16 %v1505_v56, %v1501_v55  ;;  %v1507_v63 = vld [vmem:[#allocation10 + $0x80] sm:$0xff] }
 0x18f   : > { %4907 = vmatpush1.bf16.msra.mxu0 %v4906_v34  ;;  %4915 = vmatpush1.bf16.msra.mxu1 %v4914_v35  ;;  %v1514_v60 = vld [vmem:[#allocation10 + $0xb8] sm:$0xff]  ;;  %v1511_v0 = vld [vmem:[#allocation10 + $0xa0] sm:$0xff]  ;;  %v4924_v1 = vpack.c.bf16 %v1512_v58, %v1508_v57  ;;  %v1509_v3 = vld [vmem:[#allocation10 + $0x90] sm:$0xff]  ;;  %p6679_p6 = pnand %p6678_p11, %p6672_p2 }
 0x190   : > { %4917 = vmatprep.subr.bf16.mxu0 %v4916_v38  ;;  %5045 = vmatprep.subr.bf16.mxu1 %v5044_v39  ;;  %v5052_v2 = vpack.c.bf16 %v1514_v60, %v1510_v59  ;;  %v1513_v4 = vld [vmem:[#allocation10 + $0xb0] sm:$0xff]  ;;  %v1516_v5 = vld [vmem:[#allocation10 + $0xc8] sm:$0xff]  ;;  %v1518_v7 = vld [vmem:[#allocation10 + $0xd8] sm:$0xff]  ;;  %v4926_v9 = vpack.c.bf16 %v1511_v0, %v1507_v63 }
 0x191   : > { %v1520_v6 = vld [vmem:[#allocation10 + $0xe8] sm:$0xff]  ;;  %v1522_v8 = vld [vmem:[#allocation10 + $0xf8] sm:$0xff]  ;;  %v5054_v10 = vpack.c.bf16 %v1513_v4, %v1509_v3  ;;  %v1515_v11 = vld [vmem:[#allocation10 + $0xc0] sm:$0xff] }
 0x192   : > { %4755 = vmatmul.mubr.msk.f32.vlgmr.msra.gmra.mrb[4].mxu0 %vm1345_vm2, %v1328_v48  ;;  %4756 = vmatmul.mubr.msk.f32.vlgmr.msra.gmra.mrb[4].mxu1 %vm1345_vm2, %v1328_v48  ;;  %v1519_v12 = vld [vmem:[#allocation10 + $0xe0] sm:$0xff]  ;;  %v4928_v13 = vpack.c.bf16 %v1520_v6, %v1516_v5  ;;  %v5056_v14 = vpack.c.bf16 %v1522_v8, %v1518_v7  ;;  %v1517_v15 = vld [vmem:[#allocation10 + $0xd0] sm:$0xff]  ;;  %v1524_v17 = vld [vmem:[#allocation10 + $0x108] sm:$0xff] }
 0x193   : > { %4919 = vmatpush1.bf16.msra.mxu0 %v4918_v49  ;;  %5047 = vmatpush1.bf16.msra.mxu1 %v5046_v50  ;;  %v1521_v16 = vld [vmem:[#allocation10 + $0xf0] sm:$0xff]  ;;  %v1528_v18 = vld [vmem:[#allocation10 + $0x128] sm:$0xff]  ;;  %v1526_v19 = vld [vmem:[#allocation10 + $0x118] sm:$0xff]  ;;  %v4930_v21 = vpack.c.bf16 %v1519_v12, %v1515_v11 }
 0x194   : > { %4921 = vmatprep.subr.bf16.mxu0 %v4920_v53  ;;  %5049 = vmatprep.subr.bf16.mxu1 %v5048_v54  ;;  %v1530_v20 = vld [vmem:[#allocation10 + $0x138] sm:$0xff]  ;;  %v5058_v22 = vpack.c.bf16 %v1521_v16, %v1517_v15  ;;  %v1523_v23 = vld [vmem:[#allocation10 + $0x100] sm:$0xff]  ;;  %v4932_v25 = vpack.c.bf16 %v1528_v18, %v1524_v17  ;;  %v1525_v27 = vld [vmem:[#allocation10 + $0x110] sm:$0xff] }
 0x195   : > { %v1527_v24 = vld [vmem:[#allocation10 + $0x120] sm:$0xff]  ;;  %v5060_v26 = vpack.c.bf16 %v1530_v20, %v1526_v19  ;;  %v1529_v28 = vld [vmem:[#allocation10 + $0x130] sm:$0xff]  ;;  %v1532_v29 = vld [vmem:[#allocation10 + $0x148] sm:$0xff] }
 0x196   : > { %v1536_v30 = vld [vmem:[#allocation10 + $0x168] sm:$0xff]  ;;  %v1534_v31 = vld [vmem:[#allocation10 + $0x158] sm:$0xff]  ;;  %v4934_v33 = vpack.c.bf16 %v1527_v24, %v1523_v23  ;;  %v5062_v34 = vpack.c.bf16 %v1529_v28, %v1525_v27  ;;  %v1531_v35 = vld [vmem:[#allocation10 + $0x140] sm:$0xff] }
 0x197   : > { %4923 = vmatpush1.bf16.msra.mxu0 %v4922_v61  ;;  %5051 = vmatpush1.bf16.msra.mxu1 %v5050_v62  ;;  %v1538_v32 = vld [vmem:[#allocation10 + $0x178] sm:$0xff]  ;;  %v1535_v36 = vld [vmem:[#allocation10 + $0x160] sm:$0xff]  ;;  %v4936_v37 = vpack.c.bf16 %v1536_v30, %v1532_v29  ;;  %v1533_v39 = vld [vmem:[#allocation10 + $0x150] sm:$0xff] }
 0x198   : > { %4925 = vmatprep.subr.bf16.mxu0 %v4924_v1  ;;  %5053 = vmatprep.subr.bf16.mxu1 %v5052_v2  ;;  %v5064_v38 = vpack.c.bf16 %v1538_v32, %v1534_v31  ;;  %v1537_v40 = vld [vmem:[#allocation10 + $0x170] sm:$0xff]  ;;  %v1540_v41 = vld [vmem:[#allocation10 + $0x188] sm:$0xff]  ;;  %v1542_v43 = vld [vmem:[#allocation10 + $0x198] sm:$0xff]  ;;  %v4938_v45 = vpack.c.bf16 %v1535_v36, %v1531_v35 }
 0x199   : > { %v1544_v42 = vld [vmem:[#allocation10 + $0x1a8] sm:$0xff]  ;;  %v1546_v44 = vld [vmem:[#allocation10 + $0x1b8] sm:$0xff]  ;;  %v5066_v46 = vpack.c.bf16 %v1537_v40, %v1533_v39  ;;  %v1539_v47 = vld [vmem:[#allocation10 + $0x180] sm:$0xff] }
 0x19a   : > { %v1543_v48 = vld [vmem:[#allocation10 + $0x1a0] sm:$0xff]  ;;  %v4940_v49 = vpack.c.bf16 %v1544_v42, %v1540_v41  ;;  %v5068_v50 = vpack.c.bf16 %v1546_v44, %v1542_v43  ;;  %v1541_v51 = vld [vmem:[#allocation10 + $0x190] sm:$0xff]  ;;  %v1548_v53 = vld [vmem:[#allocation10 + $0x1c8] sm:$0xff] }
 0x19b   : > { %4927 = vmatpush1.bf16.msra.mxu0 %v4926_v9  ;;  %5055 = vmatpush1.bf16.msra.mxu1 %v5054_v10  ;;  %v1545_v52 = vld [vmem:[#allocation10 + $0x1b0] sm:$0xff]  ;;  %v1552_v54 = vld [vmem:[#allocation10 + $0x1e8] sm:$0xff]  ;;  %v1550_v55 = vld [vmem:[#allocation10 + $0x1d8] sm:$0xff]  ;;  %v4942_v57 = vpack.c.bf16 %v1543_v48, %v1539_v47 }
 0x19c   : > { %4929 = vmatprep.subr.bf16.mxu0 %v4928_v13  ;;  %5057 = vmatprep.subr.bf16.mxu1 %v5056_v14  ;;  %v1554_v56 = vld [vmem:[#allocation10 + $0x1f8] sm:$0xff]  ;;  %v5070_v58 = vpack.c.bf16 %v1545_v52, %v1541_v51  ;;  %v1547_v59 = vld [vmem:[#allocation10 + $0x1c0] sm:$0xff]  ;;  %v4944_v61 = vpack.c.bf16 %v1552_v54, %v1548_v53  ;;  %v1549_v63 = vld [vmem:[#allocation10 + $0x1d0] sm:$0xff] }
 0x19d   : > { %v1551_v60 = vld [vmem:[#allocation10 + $0x1e0] sm:$0xff]  ;;  %v5072_v62 = vpack.c.bf16 %v1554_v56, %v1550_v55  ;;  %v1553_v0 = vld [vmem:[#allocation10 + $0x1f0] sm:$0xff]  ;;  %v1556_v1 = vld [vmem:[#allocation10 + $0x208] sm:$0xff] }
 0x19e   : > { %v1560_v2 = vld [vmem:[#allocation10 + $0x228] sm:$0xff]  ;;  %v1558_v3 = vld [vmem:[#allocation10 + $0x218] sm:$0xff]  ;;  %v4946_v5 = vpack.c.bf16 %v1551_v60, %v1547_v59  ;;  %v5074_v6 = vpack.c.bf16 %v1553_v0, %v1549_v63  ;;  %v1555_v7 = vld [vmem:[#allocation10 + $0x200] sm:$0xff] }
 0x19f   : > { %4931 = vmatpush1.bf16.msra.mxu0 %v4930_v21  ;;  %5059 = vmatpush1.bf16.msra.mxu1 %v5058_v22  ;;  %v1562_v4 = vld [vmem:[#allocation10 + $0x238] sm:$0xff]  ;;  %v1559_v8 = vld [vmem:[#allocation10 + $0x220] sm:$0xff]  ;;  %v4948_v9 = vpack.c.bf16 %v1560_v2, %v1556_v1  ;;  %v1557_v11 = vld [vmem:[#allocation10 + $0x210] sm:$0xff] }
 0x1a0   : > { %4933 = vmatprep.subr.bf16.mxu0 %v4932_v25  ;;  %5061 = vmatprep.subr.bf16.mxu1 %v5060_v26  ;;  %v5076_v10 = vpack.c.bf16 %v1562_v4, %v1558_v3  ;;  %v1561_v12 = vld [vmem:[#allocation10 + $0x230] sm:$0xff]  ;;  %v1564_v13 = vld [vmem:[#allocation10 + $0x248] sm:$0xff]  ;;  %v1566_v15 = vld [vmem:[#allocation10 + $0x258] sm:$0xff]  ;;  %v4950_v17 = vpack.c.bf16 %v1559_v8, %v1555_v7 }
 0x1a1   : > { %v1568_v14 = vld [vmem:[#allocation10 + $0x268] sm:$0xff]  ;;  %v1570_v16 = vld [vmem:[#allocation10 + $0x278] sm:$0xff]  ;;  %v5078_v18 = vpack.c.bf16 %v1561_v12, %v1557_v11  ;;  %v1563_v19 = vld [vmem:[#allocation10 + $0x240] sm:$0xff] }
 0x1a2   : > { %v1567_v20 = vld [vmem:[#allocation10 + $0x260] sm:$0xff]  ;;  %v4952_v21 = vpack.c.bf16 %v1568_v14, %v1564_v13  ;;  %v5080_v22 = vpack.c.bf16 %v1570_v16, %v1566_v15  ;;  %v1565_v23 = vld [vmem:[#allocation10 + $0x250] sm:$0xff]  ;;  %v1572_v25 = vld [vmem:[#allocation10 + $0x288] sm:$0xff] }
 0x1a3   : > { %4935 = vmatpush1.bf16.msra.mxu0 %v4934_v33  ;;  %5063 = vmatpush1.bf16.msra.mxu1 %v5062_v34  ;;  %v1569_v24 = vld [vmem:[#allocation10 + $0x270] sm:$0xff]  ;;  %v1576_v26 = vld [vmem:[#allocation10 + $0x2a8] sm:$0xff]  ;;  %v1574_v27 = vld [vmem:[#allocation10 + $0x298] sm:$0xff]  ;;  %v4954_v29 = vpack.c.bf16 %v1567_v20, %v1563_v19 }
 0x1a4   : > { %4937 = vmatprep.subr.bf16.mxu0 %v4936_v37  ;;  %5065 = vmatprep.subr.bf16.mxu1 %v5064_v38  ;;  %v1578_v28 = vld [vmem:[#allocation10 + $0x2b8] sm:$0xff]  ;;  %v5082_v30 = vpack.c.bf16 %v1569_v24, %v1565_v23  ;;  %v1571_v31 = vld [vmem:[#allocation10 + $0x280] sm:$0xff]  ;;  %v4956_v32 = vpack.c.bf16 %v1576_v26, %v1572_v25  ;;  %v1573_v35 = vld [vmem:[#allocation10 + $0x290] sm:$0xff] }
 0x1a5   : > { %v5084_v33 = vpack.c.bf16 %v1578_v28, %v1574_v27  ;;  %v1575_v34 = vld [vmem:[#allocation10 + $0x2a0] sm:$0xff]  ;;  %v1577_v36 = vld [vmem:[#allocation10 + $0x2b0] sm:$0xff]  ;;  %v1580_v39 = vld [vmem:[#allocation10 + $0x2c8] sm:$0xff] }
 0x1a6   : > { %v4958_v37 = vpack.c.bf16 %v1575_v34, %v1571_v31  ;;  %v5086_v38 = vpack.c.bf16 %v1577_v36, %v1573_v35  ;;  %v1584_v40 = vld [vmem:[#allocation10 + $0x2e8] sm:$0xff]  ;;  %v1582_v41 = vld [vmem:[#allocation10 + $0x2d8] sm:$0xff]  ;;  %v1579_v44 = vld [vmem:[#allocation10 + $0x2c0] sm:$0xff] }
 0x1a7   : > { %4939 = vmatpush1.bf16.msra.mxu0 %v4938_v45  ;;  %5067 = vmatpush1.bf16.msra.mxu1 %v5066_v46  ;;  %v4960_v42 = vpack.c.bf16 %v1584_v40, %v1580_v39  ;;  %v1586_v43 = vld [vmem:[#allocation10 + $0x2f8] sm:$0xff]  ;;  %v1583_v45 = vld [vmem:[#allocation10 + $0x2e0] sm:$0xff]  ;;  %v1581_v48 = vld [vmem:[#allocation10 + $0x2d0] sm:$0xff] }
 0x1a8   : > { %4941 = vmatprep.subr.bf16.mxu0 %v4940_v49  ;;  %5069 = vmatprep.subr.bf16.mxu1 %v5068_v50  ;;  %v5088_v46 = vpack.c.bf16 %v1586_v43, %v1582_v41  ;;  %v4962_v47 = vpack.c.bf16 %v1583_v45, %v1579_v44  ;;  %v1585_v49 = vld [vmem:[#allocation10 + $0x2f0] sm:$0xff]  ;;  %v1588_v51 = vld [vmem:[#allocation10 + $0x308] sm:$0xff]  ;;  %v1590_v53 = vld [vmem:[#allocation10 + $0x318] sm:$0xff]  ;;  %v6781_v41 = vmov 1966171168   ;;  %v8035_v43 = vlaneseq }
 0x1a9   : > { %v5090_v50 = vpack.c.bf16 %v1585_v49, %v1581_v48  ;;  %v1592_v52 = vld [vmem:[#allocation10 + $0x328] sm:$0xff]  ;;  %v1594_v55 = vld [vmem:[#allocation10 + $0x338] sm:$0xff]  ;;  %v1587_v56 = vld [vmem:[#allocation10 + $0x300] sm:$0xff] }
 0x1aa   : > { %v4964_v54 = vpack.c.bf16 %v1592_v52, %v1588_v51  ;;  %v1589_v60 = vld [vmem:[#allocation10 + $0x310] sm:$0xff]  ;;  %v1596_v63 = vld [vmem:[#allocation10 + $0x348] sm:$0xff]  ;;  %v1598_v1 = vld [vmem:[#allocation10 + $0x358] sm:$0xff] }
 0x1ab   : > { %4943 = vmatpush1.bf16.msra.mxu0 %v4942_v57  ;;  %5071 = vmatpush1.bf16.msra.mxu1 %v5070_v58  ;;  %v1591_v57 = vld [vmem:[#allocation10 + $0x320] sm:$0xff]  ;;  %v5092_v58 = vpack.c.bf16 %v1594_v55, %v1590_v53  ;;  %v1600_v0 = vld [vmem:[#allocation10 + $0x368] sm:$0xff]  ;;  %v1602_v3 = vld [vmem:[#allocation10 + $0x378] sm:$0xff] }
 0x1ac   : > { %4945 = vmatprep.subr.bf16.mxu0 %v4944_v61  ;;  %5073 = vmatprep.subr.bf16.mxu1 %v5072_v62  ;;  %v4966_v59 = vpack.c.bf16 %v1591_v57, %v1587_v56  ;;  %v1593_v61 = vld [vmem:[#allocation10 + $0x330] sm:$0xff]  ;;  %v4968_v2 = vpack.c.bf16 %v1600_v0, %v1596_v63  ;;  %v1595_v4 = vld [vmem:[#allocation10 + $0x340] sm:$0xff]  ;;  %v1604_v11 = vld [vmem:[#allocation10 + $0x388] sm:$0xff] }
 0x1ad   : > { %v5094_v62 = vpack.c.bf16 %v1593_v61, %v1589_v60  ;;  %v1597_v8 = vld [vmem:[#allocation10 + $0x350] sm:$0xff]  ;;  %v1608_v12 = vld [vmem:[#allocation10 + $0x3a8] sm:$0xff]  ;;  %v1606_v13 = vld [vmem:[#allocation10 + $0x398] sm:$0xff] }
 0x1ae   : > { %v4972_v14 = vpack.c.bf16 %v1608_v12, %v1604_v11  ;;  %v1610_v15 = vld [vmem:[#allocation10 + $0x3b8] sm:$0xff]  ;;  %v1603_v16 = vld [vmem:[#allocation10 + $0x380] sm:$0xff]  ;;  %v1605_v20 = vld [vmem:[#allocation10 + $0x390] sm:$0xff] }
 0x1af   : > { %4947 = vmatpush1.bf16.msra.mxu0 %v4946_v5  ;;  %5075 = vmatpush1.bf16.msra.mxu1 %v5074_v6  ;;  %v1599_v5 = vld [vmem:[#allocation10 + $0x360] sm:$0xff]  ;;  %v5096_v6 = vpack.c.bf16 %v1602_v3, %v1598_v1  ;;  %v1616_v24 = vld [vmem:[#allocation10 + $0x3e8] sm:$0xff]  ;;  %v1614_v25 = vld [vmem:[#allocation10 + $0x3d8] sm:$0xff] }
 0x1b0   : > { %4949 = vmatprep.subr.bf16.mxu0 %v4948_v9  ;;  %5077 = vmatprep.subr.bf16.mxu1 %v5076_v10  ;;  %v4970_v7 = vpack.c.bf16 %v1599_v5, %v1595_v4  ;;  %v1601_v9 = vld [vmem:[#allocation10 + $0x370] sm:$0xff]  ;;  %v1618_v26 = vld [vmem:[#allocation10 + $0x3f8] sm:$0xff]  ;;  %v1620_v35 = vld [vmem:[#allocation10 + $0x408] sm:$0xff] }
 0x1b1   : > { %v5098_v10 = vpack.c.bf16 %v1601_v9, %v1597_v8  ;;  %v5104_v28 = vpack.c.bf16 %v1618_v26, %v1614_v25  ;;  %v1613_v31 = vld [vmem:[#allocation10 + $0x3d0] sm:$0xff]  ;;  %v1624_v36 = vld [vmem:[#allocation10 + $0x428] sm:$0xff]  ;;  %v1626_v39 = vld [vmem:[#allocation10 + $0x438] sm:$0xff] }
 0x1b2   : > { %v7314_v51 = vld [vmem:[#allocation10 + $0x400] sm:$0xff]  ;;  %v7324_v55 = vld [vmem:[#allocation10 + $0x410] sm:$0xff]  ;;  %v7331_v60 = vld [vmem:[#allocation10 + $0x448] sm:$0xff] }
 0x1b3   : > { %4951 = vmatpush1.bf16.msra.mxu0 %v4950_v17  ;;  %5079 = vmatpush1.bf16.msra.mxu1 %v5078_v18  ;;  %v1607_v17 = vld [vmem:[#allocation10 + $0x3a0] sm:$0xff]  ;;  %v5100_v18 = vpack.c.bf16 %v1610_v15, %v1606_v13  ;;  %v7326_v56 = vld [vmem:[#allocation10 + $0x430] sm:$0xff]  ;;  %v7333_v61 = vld [vmem:[#allocation10 + $0x468] sm:$0xff] }
 0x1b4   : > { %4953 = vmatprep.subr.bf16.mxu0 %v4952_v21  ;;  %5081 = vmatprep.subr.bf16.mxu1 %v5080_v22  ;;  %v4974_v19 = vpack.c.bf16 %v1607_v17, %v1603_v16  ;;  %v1609_v21 = vld [vmem:[#allocation10 + $0x3b0] sm:$0xff]  ;;  %v1612_v22 = vld [vmem:[#allocation10 + $0x3c8] sm:$0xff]  ;;  %v7337_v63 = vld [vmem:[#allocation10 + $0x478] sm:$0xff] }
 0x1b5   : > { %v5102_v23 = vpack.c.bf16 %v1609_v21, %v1605_v20  ;;  %v4976_v27 = vpack.c.bf16 %v1616_v24, %v1612_v22  ;;  %v7347_v4 = vld [vmem:[#allocation10 + $0x440] sm:$0xff]  ;;  %v7353_v11 = vld [vmem:[#allocation10 + $0x470] sm:$0xff]  ;;  %v7355_v12 = vld [vmem:[#allocation10 + $0x488] sm:$0xff] }
 0x1b6   : > { %v7349_v5 = vld [vmem:[#allocation10 + $0x460] sm:$0xff]  ;;  %v7357_v13 = vld [vmem:[#allocation10 + $0x4a8] sm:$0xff]  ;;  %v7363_v16 = vld [vmem:[#allocation10 + $0x498] sm:$0xff] }
 0x1b7   : > { %4955 = vmatpush1.bf16.msra.mxu0 %v4954_v29  ;;  %5083 = vmatpush1.bf16.msra.mxu1 %v5082_v30  ;;  %v1611_v29 = vld [vmem:[#allocation10 + $0x3c0] sm:$0xff]  ;;  %v7365_v17 = vld [vmem:[#allocation10 + $0x4b8] sm:$0xff]  ;;  %v7381_v26 = vld [vmem:[#allocation10 + $0x490] sm:$0xff] }
 0x1b8   : > { %4957 = vmatprep.subr.bf16.mxu0 %v4956_v32  ;;  %5085 = vmatprep.subr.bf16.mxu1 %v5084_v33  ;;  %v1615_v30 = vld [vmem:[#allocation10 + $0x3e0] sm:$0xff]  ;;  %v1617_v33 = vld [vmem:[#allocation10 + $0x3f0] sm:$0xff] }
 0x1b9   : > { %v4978_v32 = vpack.c.bf16 %v1615_v30, %v1611_v29  ;;  %v5106_v34 = vpack.c.bf16 %v1617_v33, %v1613_v31  ;;  %v7379_v25 = vld [vmem:[#allocation10 + $0x4a0] sm:$0xff]  ;;  %v7395_v33 = vld [vmem:[#allocation10 + $0x4e8] sm:$0xff]  ;;  %v7471_v30 = vld [vmem:[#allocation10 + $0x4f0] sm:$0xff] }
 0x1ba   : > { %8097 = vst [vmem:[#allocation38_spill] sm:$0xff] %v7395_v33  ;;  %v7473_v29 = vld [vmem:[#allocation10 + $0x508] sm:$0xff] }
 0x1bb   : > { %4959 = vmatpush1.bf16.msra.mxu0 %v4958_v37  ;;  %5087 = vmatpush1.bf16.msra.mxu1 %v5086_v38  ;;  %v1622_v37 = vld [vmem:[#allocation10 + $0x418] sm:$0xff]  ;;  %v4980_v38 = vpack.c.bf16 %v1624_v36, %v1620_v35  ;;  %8110 = vst [vmem:[#allocation51_spill] sm:$0xff] %v7473_v29  ;;  %v7514_v33 = vld [vmem:[#allocation10 + $0x568] sm:$0xff] }
 0x1bc   : > { %4961 = vmatprep.subr.bf16.mxu0 %v4960_v42  ;;  %5089 = vmatprep.subr.bf16.mxu1 %v5088_v46  ;;  %v5108_v40 = vpack.c.bf16 %v1626_v39, %v1622_v37  ;;  %v987_v42 = vunpack.c.l.s4 %v6781_v41  ;;  %v7399_v39 = vld [vmem:[#allocation10 + $0x4f8] sm:$0xff]  ;;  %v7403_v41 = vld [vmem:[#allocation10 + $0x4e0] sm:$0xff] }
 0x1bd   : > { %8099 = vst [vmem:[#allocation40_spill] sm:$0xff] %v7399_v39  ;;  %8101 = vst [vmem:[#allocation42_spill] sm:$0xff] %v7403_v41  ;;  %v7527_v39 = vld [vmem:[#allocation10 + $0x540] sm:$0xff] }
 0x1be   : > { %v988_v46 = vunpack.c.0.s8 %v987_v42 }
 0x1bf   : > { %4963 = vmatpush1.bf16.msra.mxu0 %v4962_v47  ;;  %5091 = vmatpush1.bf16.msra.mxu1 %v5090_v50  ;;  %v7306_v47 = vshrl.u32 %v8035_v43, 7  ;;  %v7312_v50 = vld [vmem:[#allocation8] sm:$0xf] }
 0x1c0   : > { %4965 = vmatprep.subr.bf16.mxu0 %v4964_v54  ;;  %5093 = vmatprep.subr.bf16.mxu1 %v5092_v58  ;;  %v7322_v54 = vld [vmem:[#allocation10 + $0x420] sm:$0xff] }
 0x1c1   : > { %8094 = vst [vmem:[#allocation35_spill] sm:$0xff] %v7306_v47  ;;  %v7317_v52 = vsub.s32 0, %v7306_v47  ;;  %v7320_v53 = vsub.s32 1, %v7306_v47  ;;  %v7373_v20 = vsub.s32 2, %v7306_v47 }
 0x1c3   : > { %4967 = vmatpush1.bf16.msra.mxu0 %v4966_v59  ;;  %5095 = vmatpush1.bf16.msra.mxu1 %v5094_v62  ;;  %8095 = vst [vmem:[#allocation36_spill] sm:$0xff] %v7320_v53  ;;  %v7329_v59 = vsub.s32 %v988_v46, %v7306_v47  ;;  %v7335_v62 = vld [vmem:[#allocation10 + $0x458] sm:$0xff]  ;;  %v7345_v3 = vrot.slane %v7312_v50, %v7317_v52 }
 0x1c4   : > { %4969 = vmatprep.subr.bf16.mxu0 %v4968_v2  ;;  %5097 = vmatprep.subr.bf16.mxu1 %v5096_v6  ;;  %v7341_v2 = vrot.slane %v7312_v50, %v7320_v53  ;;  %v7351_v6 = vld [vmem:[#allocation10 + $0x450] sm:$0xff] }
 0x1c7   : > { %4971 = vmatpush1.bf16.msra.mxu0 %v4970_v7  ;;  %5099 = vmatpush1.bf16.msra.mxu1 %v5098_v10 }
 0x1c8   : > { %4973 = vmatprep.subr.bf16.mxu0 %v4972_v14  ;;  %5101 = vmatprep.subr.bf16.mxu1 %v5100_v18  ;;  %v7367_v18 = vld [vmem:[#allocation10 + $0x480] sm:$0xff] }
 0x1cb   : > { %4975 = vmatpush1.bf16.msra.mxu0 %v4974_v19  ;;  %5103 = vmatpush1.bf16.msra.mxu1 %v5102_v23  ;;  %v7370_v19 = vsub.s32 3, %v7306_v47  ;;  %v7489_v47 = vld [vmem:[#allocation10 + $0x500] sm:$0xff] }
 0x1cc   : > { %4977 = vmatprep.subr.bf16.mxu0 %v4976_v27  ;;  %5105 = vmatprep.subr.bf16.mxu1 %v5104_v28  ;;  %v7383_v27 = vld [vmem:[#allocation10 + $0x4b0] sm:$0xff]  ;;  %v7475_v28 = vld [vmem:[#allocation10 + $0x528] sm:$0xff] }
 0x1cd   : > { %8111 = vst [vmem:[#allocation52_spill] sm:$0xff] %v7475_v28 }
 0x1cf   : > { %4979 = vmatpush1.bf16.msra.mxu0 %v4978_v32  ;;  %5107 = vmatpush1.bf16.msra.mxu1 %v5106_v34  ;;  %v7393_v32 = vld [vmem:[#allocation10 + $0x4c8] sm:$0xff]  ;;  %v7397_v34 = vld [vmem:[#allocation10 + $0x4d8] sm:$0xff] }
 0x1d0   : > { %4981 = vmatprep.subr.bf16.mxu0 %v4980_v38  ;;  %5109 = vmatprep.subr.bf16.mxu1 %v5108_v40  ;;  %8096 = vst [vmem:[#allocation37_spill] sm:$0xff] %v7393_v32  ;;  %8098 = vst [vmem:[#allocation39_spill] sm:$0xff] %v7397_v34  ;;  %v7401_v40 = vld [vmem:[#allocation10 + $0x4c0] sm:$0xff] }
 0x1d1   : > { %8100 = vst [vmem:[#allocation41_spill] sm:$0xff] %v7401_v40  ;;  %v7498_v40 = vld [vmem:[#allocation10 + $0x510] sm:$0xff]  ;;  %v7529_v32 = vld [vmem:[#allocation10 + $0x560] sm:$0xff] }
 0x1d2   : > { %8112 = vst [vmem:[#allocation53_spill] sm:$0xff] %v7498_v40 }
 0x259   : > { %v7301_v44 = vpop.f32.mrb[0].mxu0  ;;  %v7303_v45 = vpop.f32.mrb[0].mxu1 }
 0x25a   : > { %v7308_v48 = vpop.f32.mrb[1].mxu0  ;;  %v7310_v49 = vpop.f32.mrb[1].mxu1 }
 0x25d   : > { %v902_v57 = vpop.f32.mrb[2].mxu0  ;;  %v973_v58 = vpop.f32.mrb[2].mxu1 }
 0x25e   : > { %v904_v0 = vpop.f32.mrb[3].mxu0  ;;  %v975_v1 = vpop.f32.mrb[3].mxu1 }
 0x25f   : > { %v982_v7 = vcombine.low %v902_v57, %v904_v0  ;;  %v983_v8 = vcombine.high %v902_v57, %v904_v0  ;;  %v984_v9 = vcombine.low %v973_v58, %v975_v1  ;;  %v985_v10 = vcombine.high %v973_v58, %v975_v1  ;;  %v7463_v57 = vld [vmem:[#allocation10 + $0x4d0] sm:$0xff] }
 0x260   : > { %v7413_v58 = vrot.slane %v7312_v50, %v7370_v19 }
 0x261   : > { %v992_v21 = vrot.slane %v982_v7, %v7329_v59  ;;  %v999_v22 = vrot.slane %v983_v8, %v7329_v59  ;;  %v1006_v23 = vrot.slane %v984_v9, %v7329_v59  ;;  %v1013_v24 = vrot.slane %v985_v10, %v7329_v59 }
 0x262   : > { %8102 = vst [vmem:[#allocation43_spill] sm:$0xff] %v7413_v58  ;;  %v7496_v58 = vld [vmem:[#allocation10 + $0x520] sm:$0xff] }
 0x263   : > { %v1014_v35 = vcombine.low %v992_v21, %v1006_v23  ;;  %v1015_v36 = vcombine.high %v992_v21, %v1006_v23  ;;  %v1016_v37 = vcombine.low %v999_v22, %v1013_v24  ;;  %v1017_v38 = vcombine.high %v999_v22, %v1013_v24 }
 0x264   : > { %v7434_v22 = vrot.slane %v7312_v50, %v7373_v20 }
 0x265   : > { %v7416_v0 = vrot.slane %v1014_v35, %v7329_v59  ;;  %v7419_v1 = vrot.slane %v1016_v37, %v7329_v59  ;;  %v7422_v7 = vrot.slane %v1015_v36, %v7329_v59  ;;  %v7436_v23 = vpop.f32.mrb[4].mxu0  ;;  %v7438_v24 = vpop.f32.mrb[4].mxu1  ;;  %v7453_v10 = vrot.slane %v1017_v38, %v7329_v59 }
 0x266   : > { %8103 = vst [vmem:[#allocation44_spill] sm:$0xff] %v7434_v22  ;;  %8104 = vst [vmem:[#allocation45_spill] sm:$0xff] %v7436_v23  ;;  %v7448_v21 = vpop.f32.mrb[5].mxu0  ;;  %v7450_v50 = vpop.f32.mrb[5].mxu1 }
 0x267   : > { %8105 = vst [vmem:[#allocation46_spill] sm:$0xff] %v7438_v24  ;;  %v1057_v35 = vrot.slane %v7416_v0, %v7320_v53  ;;  %v1053_v36 = vrot.slane %v7416_v0, %v7317_v52  ;;  %v1073_v37 = vrot.slane %v7422_v7, %v7320_v53  ;;  %v1069_v43 = vrot.slane %v7422_v7, %v7317_v52 }
 0x268   : > { %8106 = vst [vmem:[#allocation47_spill] sm:$0xff] %v7448_v21  ;;  %8107 = vst [vmem:[#allocation48_spill] sm:$0xff] %v7450_v50  ;;  %v7457_v9 = vcombine.high %v7416_v0, %v7416_v0  ;;  %v7461_v8 = vcombine.high %v7422_v7, %v7422_v7  ;;  %v1121_v46 = vrot.slane %v7419_v1, %v7320_v53 }
 0x269   : > { %v1211_v42 = vadd.f32 %v1057_v35, %v7308_v48  ;;  %v1210_v31 = vadd.f32 %v1053_v36, %v7301_v44  ;;  %v1215_v59 = vadd.f32 %v1073_v37, %v7308_v48  ;;  %v1214_v38 = vadd.f32 %v1069_v43, %v7301_v44  ;;  %v7485_v37 = vld [vmem:[#allocation10 + $0x518] sm:$0xff] }
 0x26a   : > { %8108 = vst [vmem:[#allocation49_spill] sm:$0xff] %v7457_v9  ;;  %8109 = vst [vmem:[#allocation50_spill] sm:$0xff] %v7461_v8  ;;  %v1089_v15 = vrot.slane %v7457_v9, %v7320_v53  ;;  %v1085_v14 = vrot.slane %v7457_v9, %v7317_v52  ;;  %v1105_v35 = vrot.slane %v7461_v8, %v7320_v53  ;;  %v7487_v43 = vld [vmem:[#allocation10 + $0x538] sm:$0xff] }
 0x26b   : > { %v1101_v36 = vrot.slane %v7461_v8, %v7317_v52  ;;  %v1265_v50 = vadd.f32 %v7341_v2, %v1211_v42  ;;  %v1264_v21 = vadd.f32 %v7345_v3, %v1210_v31  ;;  %v1269_v24 = vadd.f32 %v7341_v2, %v1215_v59  ;;  %v7500_v8 = vld [vmem:[#allocation10 + $0x530] sm:$0xff]  ;;  %v7508_v31 = vld [vmem:[#allocation10 + $0x548] sm:$0xff] }
 0x26c   : > { %v1117_v23 = vrot.slane %v7419_v1, %v7317_v52  ;;  %v1219_v41 = vadd.f32 %v1089_v15, %v7308_v48  ;;  %v1218_v22 = vadd.f32 %v1085_v14, %v7301_v44  ;;  %v1223_v9 = vadd.f32 %v1105_v35, %v7308_v48  ;;  %v7516_v15 = vld [vmem:[#allocation10 + $0x558] sm:$0xff] }
 0x26d   : > { %v7506_v42 = vadd.f32 %v1101_v36, %v7301_v44  ;;  %v1297_v59 = vmax.f32 %v1265_v50, 0.0  ;;  %v1296_v34 = vmax.f32 %v1264_v21, 0.0  ;;  %8113 = vst [vmem:[#allocation54_spill] sm:$0xff] %v7516_v15  ;;  %v7518_v14 = vld [vmem:[#allocation10 + $0x578] sm:$0xff]  ;;  %v1268_v35 = vadd.f32 %v7345_v3, %v1214_v38  ;;  %v7613_v50 = vld [vmem:[#allocation10 + $0x5b0] sm:$0xff] }
 0x26e   : > { %v1227_v29 = vadd.f32 %v1121_v46, %v7308_v48  ;;  %v7533_v28 = vadd.f32 %v1117_v23, %v7301_v44  ;;  %v1137_v38 = vrot.slane %v7453_v10, %v7320_v53  ;;  %v1301_v21 = vmax.f32 %v1269_v24, 0.0  ;;  %v7544_v46 = vld [vmem:[#allocation10 + $0x570] sm:$0xff] }
 0x26f   : > { %1811 = vmatprep.mubr.f32.mxu0 %v1297_v59  ;;  %2037 = vmatprep.mubr.f32.mxu1 %v1297_v59  ;;  %v1273_v36 = vadd.f32 %v7341_v2, %v1219_v41  ;;  %v7542_v59 = vld [vmem:[#allocation10 + $0x550] sm:$0xff]  ;;  %v8114_v23 = vpack.c.bf16 %v7322_v54, %v7314_v51  ;;  %v1272_v41 = vadd.f32 %v7345_v3, %v1218_v22  ;;  %v1300_v40 = vmax.f32 %v1268_v35, 0.0 }
 0x270   : > { %1812 = vmatmul.mubr.f32.vlgmr.msra.gmra.mrb[6].mxu0 %v1296_v34  ;;  %2038 = vmatmul.mubr.f32.vlgmr.msra.gmra.mrb[6].mxu1 %v1296_v34  ;;  %v8115_v34 = vpack.c.bf16 %v7326_v56, %v7324_v55  ;;  %v1231_v24 = vadd.f32 %v1137_v38, %v7308_v48  ;;  %v1133_v15 = vrot.slane %v7453_v10, %v7317_v52 }
 0x271   : > { %4983 = vmatpush1.bf16.msra.mxu0 %v8114_v23  ;;  %1817 = vmatprep.mubr.f32.mxu0 %v1301_v21  ;;  %v7560_v51 = vcombine.high %v7419_v1, %v7419_v1  ;;  %v7564_v54 = vcombine.high %v7453_v10, %v7453_v10  ;;  %v8116_v55 = vpack.c.bf16 %v7333_v61, %v7331_v60  ;;  %v1305_v38 = vmax.f32 %v1273_v36, 0.0  ;;  %v7580_v61 = vld [vmem:[#allocation10 + $0x588] sm:$0xff]  ;;  %v7592_v36 = vld [vmem:[#allocation10 + $0x598] sm:$0xff] }
 0x272   : > { %5111 = vmatpush1.bf16.msra.mxu1 %v8115_v34  ;;  %2043 = vmatprep.mubr.f32.mxu1 %v1301_v21  ;;  %v8117_v56 = vpack.c.bf16 %v7337_v63, %v7335_v62  ;;  %v1277_v22 = vadd.f32 %v7341_v2, %v1223_v9  ;;  %v1065_v21 = vrot.slane %v7416_v0, %v7370_v19  ;;  %v7582_v62 = vld [vmem:[#allocation10 + $0x5a8] sm:$0xff]  ;;  %v7596_v34 = vld [vmem:[#allocation10 + $0x580] sm:$0xff] }
 0x273   : > { %4985 = vmatprep.subr.bf16.mxu0 %v8116_v55  ;;  %v1230_v23 = vadd.f32 %v1133_v15, %v7301_v44  ;;  %v1153_v60 = vrot.slane %v7560_v51, %v7320_v53  ;;  %v1149_v63 = vrot.slane %v7560_v51, %v7317_v52  ;;  %v8118_v9 = vpack.c.bf16 %v7349_v5, %v7347_v4  ;;  %v7594_v15 = vld [vmem:[#allocation10 + $0x5b8] sm:$0xff] }
 0x274   : > { %5113 = vmatprep.subr.bf16.mxu1 %v8117_v56  ;;  %1818 = vmatmul.mubr.f32.gmra.mrb[8].mxu0 %v1300_v40  ;;  %v1169_v55 = vrot.slane %v7564_v54, %v7320_v53  ;;  %v1165_v56 = vrot.slane %v7564_v54, %v7317_v52  ;;  %v7603_v35 = vadd.f32 %v1065_v21, %v7310_v49  ;;  %v1304_v4 = vmax.f32 %v1272_v41, 0.0 }
 0x275   : > { %2044 = vmatmul.mubr.f32.gmra.mrb[8].mxu1 %v1300_v40  ;;  %4987 = vmatpush1.bf16.msra.mxu0 %v8118_v9  ;;  %v8119_v40 = vpack.c.bf16 %v7353_v11, %v7351_v6  ;;  %v1276_v5 = vadd.f32 %v7345_v3, %v7506_v42  ;;  %v1235_v6 = vadd.f32 %v1153_v60, %v7308_v48  ;;  %v7609_v9 = vld [vmem:[#allocation10 + $0x5a0] sm:$0xff] }
 0x276   : > { %1823 = vmatprep.mubr.f32.mxu0 %v1305_v38  ;;  %2049 = vmatprep.mubr.f32.mxu1 %v1305_v38  ;;  %v1234_v11 = vadd.f32 %v1149_v63, %v7301_v44  ;;  %v8120_v21 = vpack.c.bf16 %v7357_v13, %v7355_v12  ;;  %v8121_v41 = vpack.c.bf16 %v7365_v17, %v7363_v16  ;;  %v1309_v63 = vmax.f32 %v1277_v22, 0.0  ;;  %v8125_v22 = vld [vmem:[#allocation37_spill] sm:$0xff] }
 0x277   : > { %5115 = vmatpush1.bf16.msra.mxu1 %v8119_v40  ;;  %v7611_v40 = vld [vmem:[#allocation10 + $0x590] sm:$0xff]  ;;  %v5004_v42 = vpack.c.bf16 %v7582_v62, %v7580_v61  ;;  %v7624_v38 = vadd.f32 %v1169_v55, %v7308_v48  ;;  %v7627_v60 = vadd.f32 %v1165_v56, %v7301_v44  ;;  %v1281_v53 = vadd.f32 %v7341_v2, %v1227_v29  ;;  %v8127_v56 = vld [vmem:[#allocation40_spill] sm:$0xff] }
 0x278   : > { %4989 = vmatprep.subr.bf16.mxu0 %v8120_v21  ;;  %5117 = vmatprep.subr.bf16.mxu1 %v8121_v41  ;;  %v5132_v12 = vpack.c.bf16 %v7594_v15, %v7592_v36  ;;  %v1061_v13 = vrot.slane %v7416_v0, %v7373_v20  ;;  %v8122_v16 = vpack.c.bf16 %v7379_v25, %v7367_v18  ;;  %v1308_v0 = vmax.f32 %v1276_v5, 0.0  ;;  %v1690_v61 = vld [vmem:[#allocation10 + $0x638] sm:$0xff] }
 0x279   : > { %1824 = vmatmul.mubr.f32.gmra.mrb[10].mxu0 %v1304_v4  ;;  %2050 = vmatmul.mubr.f32.gmra.mrb[10].mxu1 %v1304_v4  ;;  %v8123_v48 = vpack.c.bf16 %v7383_v27, %v7381_v26  ;;  %v5006_v44 = vpack.c.bf16 %v7609_v9, %v7596_v34  ;;  %v5134_v17 = vpack.c.bf16 %v7613_v50, %v7611_v40  ;;  %v8124_v27 = vld [vmem:[#allocation38_spill] sm:$0xff]  ;;  %v8128_v4 = vld [vmem:[#allocation39_spill] sm:$0xff] }
 0x27a   : > { %4991 = vmatpush1.bf16.msra.mxu0 %v8122_v16  ;;  %v1081_v29 = vrot.slane %v7422_v7, %v7370_v19  ;;  %1829 = vmatprep.mubr.f32.mxu0 %v1309_v63  ;;  %v1280_v18 = vadd.f32 %v7345_v3, %v7533_v28  ;;  %v1212_v25 = vadd.f32 %v1061_v13, %v7303_v45  ;;  %v8130_v28 = vld [vmem:[#allocation49_spill] sm:$0xff]  ;;  %v1313_v13 = vmax.f32 %v1281_v53, 0.0  ;;  %v1694_v50 = vld [vmem:[#allocation10 + $0x658] sm:$0xff] }
 0x27b   : > { %5119 = vmatpush1.bf16.msra.mxu1 %v8123_v48  ;;  %2055 = vmatprep.mubr.f32.mxu1 %v1309_v63  ;;  %v1077_v26 = vrot.slane %v7422_v7, %v7373_v20  ;;  %v8126_v55 = vpack.c.bf16 %v8124_v27, %v8125_v22  ;;  %v8129_v21 = vpack.c.bf16 %v8127_v56, %v8128_v4  ;;  %v8131_v7 = vld [vmem:[#allocation44_spill] sm:$0xff]  ;;  %v8132_v22 = vld [vmem:[#allocation42_spill] sm:$0xff] }
 0x27c   : > { %v1285_v41 = vadd.f32 %v7341_v2, %v1231_v24  ;;  %v7659_v5 = vadd.f32 %v1081_v29, %v7310_v49  ;;  %v1097_v63 = vrot.slane %v8130_v28, %v7370_v19  ;;  %v7664_v16 = vadd.f32 %v8131_v7, %v1212_v25  ;;  %v1698_v40 = vld [vmem:[#allocation10 + $0x678] sm:$0xff] }
 0x27d   : > { %4993 = vmatprep.subr.bf16.mxu0 %v8126_v55  ;;  %5121 = vmatprep.subr.bf16.mxu1 %v8129_v21  ;;  %v1216_v48 = vadd.f32 %v1077_v26, %v7303_v45  ;;  %v1093_v27 = vrot.slane %v8130_v28, %v7373_v20  ;;  %v8133_v55 = vld [vmem:[#allocation41_spill] sm:$0xff]  ;;  %v8135_v29 = vpack.c.bf16 %v7471_v30, %v7463_v57  ;;  %v1312_v26 = vmax.f32 %v1280_v18, 0.0  ;;  %v8137_v57 = vld [vmem:[#allocation52_spill] sm:$0xff]  ;;  %v8138_v28 = vld [vmem:[#allocation51_spill] sm:$0xff] }
 0x27e   : > { %1830 = vmatmul.mubr.f32.gmra.mrb[12].mxu0 %v1308_v0  ;;  %2056 = vmatmul.mubr.f32.gmra.mrb[12].mxu1 %v1308_v0  ;;  %v8134_v24 = vpack.c.bf16 %v8132_v22, %v8133_v55  ;;  %v1284_v56 = vadd.f32 %v7345_v3, %v1230_v23  ;;  %v7677_v53 = vadd.f32 %v1097_v63, %v7310_v49  ;;  %v8136_v0 = vld [vmem:[#allocation50_spill] sm:$0xff] }
 0x27f   : > { %5123 = vmatpush1.bf16.msra.mxu1 %v8135_v29  ;;  %v1113_v25 = vrot.slane %v8136_v0, %v7370_v19  ;;  %1835 = vmatprep.mubr.f32.mxu0 %v1313_v13  ;;  %v7682_v4 = vadd.f32 %v8131_v7, %v1216_v48  ;;  %v1220_v21 = vadd.f32 %v1093_v27, %v7303_v45  ;;  %v1317_v48 = vmax.f32 %v1285_v41, 0.0 }
 0x280   : > { %4995 = vmatpush1.bf16.msra.mxu0 %v8134_v24  ;;  %2061 = vmatprep.mubr.f32.mxu1 %v1313_v13  ;;  %v1109_v30 = vrot.slane %v8136_v0, %v7373_v20  ;;  %v8139_v23 = vpack.c.bf16 %v8137_v57, %v8138_v28  ;;  %v8140_v63 = vpack.c.bf16 %v7487_v43, %v7485_v37  ;;  %v1680_v28 = vld [vmem:[#allocation10 + $0x5e8] sm:$0xff] }
 0x281   : > { %v1289_v22 = vadd.f32 %v7341_v2, %v1235_v6  ;;  %v7695_v18 = vadd.f32 %v1113_v25, %v7310_v49  ;;  %v1129_v13 = vrot.slane %v7419_v1, %v7370_v19  ;;  %v7700_v27 = vadd.f32 %v8131_v7, %v1220_v21  ;;  %v8142_v6 = vld [vmem:[#allocation53_spill] sm:$0xff] }
 0x282   : > { %4997 = vmatprep.subr.bf16.mxu0 %v8139_v23  ;;  %5125 = vmatprep.subr.bf16.mxu1 %v8140_v63  ;;  %v1224_v55 = vadd.f32 %v1109_v30, %v7303_v45  ;;  %v1125_v37 = vrot.slane %v7419_v1, %v7373_v20  ;;  %v8141_v43 = vpack.c.bf16 %v7496_v58, %v7489_v47  ;;  %v1316_v25 = vmax.f32 %v1284_v56, 0.0  ;;  %v1676_v56 = vld [vmem:[#allocation10 + $0x5c8] sm:$0xff] }
 0x283   : > { %1836 = vmatmul.mubr.f32.gmra.mrb[14].mxu0 %v1312_v26  ;;  %2062 = vmatmul.mubr.f32.gmra.mrb[14].mxu1 %v1312_v26  ;;  %v8143_v24 = vpack.c.bf16 %v7500_v8, %v8142_v6  ;;  %v1288_v29 = vadd.f32 %v7345_v3, %v1234_v11  ;;  %v7713_v41 = vadd.f32 %v1129_v13, %v7310_v49  ;;  %v8145_v11 = vld [vmem:[#allocation54_spill] sm:$0xff]  ;;  %v1675_v13 = vld [vmem:[#allocation10 + $0x5c0] sm:$0xff] }
 0x284   : > { %4999 = vmatpush1.bf16.msra.mxu0 %v8141_v43  ;;  %v1145_v0 = vrot.slane %v7453_v10, %v7370_v19  ;;  %1841 = vmatprep.mubr.f32.mxu0 %v1317_v48  ;;  %v7718_v1 = vadd.f32 %v8131_v7, %v1224_v55  ;;  %v1228_v47 = vadd.f32 %v1125_v37, %v7303_v45  ;;  %v1679_v37 = vld [vmem:[#allocation10 + $0x5e0] sm:$0xff]  ;;  %v1684_v6 = vld [vmem:[#allocation10 + $0x608] sm:$0xff] }
 0x285   : > { %5127 = vmatpush1.bf16.msra.mxu1 %v8143_v24  ;;  %2067 = vmatprep.mubr.f32.mxu1 %v1317_v48  ;;  %v1141_v58 = vrot.slane %v7453_v10, %v7373_v20  ;;  %v8144_v8 = vpack.c.bf16 %v7514_v33, %v7508_v31  ;;  %v8146_v26 = vpack.c.bf16 %v7518_v14, %v8145_v11  ;;  %v1321_v10 = vmax.f32 %v1289_v22, 0.0  ;;  %v1678_v33 = vld [vmem:[#allocation10 + $0x5d8] sm:$0xff]  ;;  %v1692_v11 = vld [vmem:[#allocation10 + $0x648] sm:$0xff] }
 0x286   : > { %v1293_v21 = vadd.f32 %v7341_v2, %v7624_v38  ;;  %v7732_v30 = vadd.f32 %v1145_v0, %v7310_v49  ;;  %v1161_v57 = vrot.slane %v7560_v51, %v7370_v19  ;;  %v1682_v31 = vld [vmem:[#allocation10 + $0x5f8] sm:$0xff]  ;;  %v7737_v23 = vadd.f32 %v8131_v7, %v1228_v47 }
 0x287   : > { %5001 = vmatprep.subr.bf16.mxu0 %v8144_v8  ;;  %5129 = vmatprep.subr.bf16.mxu1 %v8146_v26  ;;  %v1232_v14 = vadd.f32 %v1141_v58, %v7303_v45  ;;  %v1157_v2 = vrot.slane %v7560_v51, %v7373_v20  ;;  %v8147_v38 = vpack.c.bf16 %v7529_v32, %v7527_v39  ;;  %v1320_v51 = vmax.f32 %v1288_v29, 0.0  ;;  %v1677_v32 = vld [vmem:[#allocation10 + $0x5d0] sm:$0xff]  ;;  %v1686_v47 = vld [vmem:[#allocation10 + $0x618] sm:$0xff] }
 0x288   : > { %1842 = vmatmul.mubr.f32.gmra.mrb[16].mxu0 %v1316_v25  ;;  %2068 = vmatmul.mubr.f32.gmra.mrb[16].mxu1 %v1316_v25  ;;  %v8148_v63 = vpack.c.bf16 %v7544_v46, %v7542_v59  ;;  %v1292_v22 = vadd.f32 %v7345_v3, %v7627_v60  ;;  %v7751_v48 = vadd.f32 %v1161_v57, %v7310_v49  ;;  %v1681_v39 = vld [vmem:[#allocation10 + $0x5f0] sm:$0xff]  ;;  %v1325_v29 = vmax.f32 %v1293_v21, 0.0  ;;  %v1688_v25 = vld [vmem:[#allocation10 + $0x628] sm:$0xff]  ;;  %v1695_v57 = vld [vmem:[#allocation10 + $0x660] sm:$0xff] }
 0x289   : > { %5003 = vmatpush1.bf16.msra.mxu0 %v8147_v38  ;;  %v1177_v55 = vrot.slane %v7564_v54, %v7370_v19  ;;  %1847 = vmatprep.mubr.f32.mxu0 %v1321_v10  ;;  %v7756_v43 = vadd.f32 %v8131_v7, %v1232_v14  ;;  %v1236_v59 = vadd.f32 %v1157_v2, %v7303_v45  ;;  %v8149_v0 = vld [vmem:[#allocation43_spill] sm:$0xff]  ;;  %v1704_v14 = vld [vmem:[#allocation10 + $0x6a8] sm:$0xff] }
 0x28a   : > { %5131 = vmatpush1.bf16.msra.mxu1 %v8148_v63  ;;  %2073 = vmatprep.mubr.f32.mxu1 %v1321_v10  ;;  %v1173_v3 = vrot.slane %v7564_v54, %v7373_v20  ;;  %v5008_v46 = vpack.c.bf16 %v1680_v28, %v1676_v56  ;;  %v5136_v60 = vpack.c.bf16 %v1682_v31, %v1678_v33  ;;  %v1685_v58 = vld [vmem:[#allocation10 + $0x610] sm:$0xff]  ;;  %v1691_v56 = vld [vmem:[#allocation10 + $0x640] sm:$0xff]  ;;  %v1700_v31 = vld [vmem:[#allocation10 + $0x688] sm:$0xff] }
 0x28b   : > { %5005 = vmatprep.subr.bf16.mxu0 %v5004_v42  ;;  %5133 = vmatprep.subr.bf16.mxu1 %v5132_v12  ;;  %v7768_v24 = vadd.f32 %v1177_v55, %v7310_v49  ;;  %v1267_v54 = vadd.f32 %v8149_v0, %v7603_v35  ;;  %v7773_v62 = vadd.f32 %v8131_v7, %v1236_v59  ;;  %v1683_v42 = vld [vmem:[#allocation10 + $0x600] sm:$0xff]  ;;  %v1324_v12 = vmax.f32 %v1292_v22, 0.0  ;;  %v1689_v8 = vld [vmem:[#allocation10 + $0x630] sm:$0xff]  ;;  %v1702_v2 = vld [vmem:[#allocation10 + $0x698] sm:$0xff] }
 0x28c   : > { %1848 = vmatmul.mubr.f32.gmra.mrb[18].mxu0 %v1320_v51  ;;  %2074 = vmatmul.mubr.f32.gmra.mrb[18].mxu1 %v1320_v51  ;;  %v1240_v36 = vadd.f32 %v1173_v3, %v7303_v45  ;;  %v5010_v49 = vpack.c.bf16 %v1679_v37, %v1675_v13  ;;  %v5138_v15 = vpack.c.bf16 %v1681_v39, %v1677_v32  ;;  %v1687_v35 = vld [vmem:[#allocation10 + $0x620] sm:$0xff]  ;;  %v1693_v28 = vld [vmem:[#allocation10 + $0x650] sm:$0xff]  ;;  %v1706_v38 = vld [vmem:[#allocation10 + $0x6b8] sm:$0xff] }
 0x28d   : > { %5007 = vmatpush1.bf16.msra.mxu0 %v5006_v44  ;;  %1853 = vmatprep.mubr.f32.mxu0 %v1325_v29  ;;  %v5012_v34 = vpack.c.bf16 %v1688_v25, %v1684_v6  ;;  %v5140_v9 = vpack.c.bf16 %v1690_v61, %v1686_v47  ;;  %v1696_v44 = vld [vmem:[#allocation10 + $0x668] sm:$0xff]  ;;  %v5014_v26 = vpack.c.bf16 %v1687_v35, %v1683_v42  ;;  %v1697_v33 = vld [vmem:[#allocation10 + $0x670] sm:$0xff]  ;;  %v1699_v13 = vld [vmem:[#allocation10 + $0x680] sm:$0xff] }
 0x28e   : > { %5135 = vmatpush1.bf16.msra.mxu1 %v5134_v17  ;;  %2079 = vmatprep.mubr.f32.mxu1 %v1325_v29  ;;  %v7783_v45 = vadd.f32 %v8131_v7, %v1240_v36  ;;  %v1299_v17 = vmax.f32 %v1267_v54, 0.0  ;;  %v5142_v21 = vpack.c.bf16 %v1689_v8, %v1685_v58  ;;  %v5016_v7 = vpack.c.bf16 %v1696_v44, %v1692_v11  ;;  %v1703_v55 = vld [vmem:[#allocation10 + $0x6a0] sm:$0xff]  ;;  %v1701_v32 = vld [vmem:[#allocation10 + $0x690] sm:$0xff]  ;;  %v1708_v59 = vld [vmem:[#allocation10 + $0x6c8] sm:$0xff] }
 0x28f   : > { %5009 = vmatprep.subr.bf16.mxu0 %v5008_v46  ;;  %5137 = vmatprep.subr.bf16.mxu1 %v5136_v60  ;;  %v5144_v10 = vpack.c.bf16 %v1698_v40, %v1694_v50  ;;  %v5018_v63 = vpack.c.bf16 %v1695_v57, %v1691_v56  ;;  %v5146_v22 = vpack.c.bf16 %v1697_v33, %v1693_v28  ;;  %v1705_v39 = vld [vmem:[#allocation10 + $0x6b0] sm:$0xff]  ;;  %v1712_v3 = vld [vmem:[#allocation10 + $0x6e8] sm:$0xff]  ;;  %v1710_v46 = vld [vmem:[#allocation10 + $0x6d8] sm:$0xff] }
 0x290   : > { %1854 = vmatmul.mubr.f32.gmra.mrb[20].mxu0 %v1324_v12  ;;  %2080 = vmatmul.mubr.f32.gmra.mrb[20].mxu1 %v1324_v12  ;;  %v5020_v51 = vpack.c.bf16 %v1704_v14, %v1700_v31  ;;  %v5148_v37 = vpack.c.bf16 %v1706_v38, %v1702_v2  ;;  %v1714_v60 = vld [vmem:[#allocation10 + $0x6f8] sm:$0xff]  ;;  %v5022_v6 = vpack.c.bf16 %v1703_v55, %v1699_v13  ;;  %v1707_v54 = vld [vmem:[#allocation10 + $0x6c0] sm:$0xff]  ;;  %v1709_v36 = vld [vmem:[#allocation10 + $0x6d0] sm:$0xff] }
 0x291   : > { %5011 = vmatpush1.bf16.msra.mxu0 %v5010_v49  ;;  %1924 = vmatprep.mubr.f32.mxu0 %v1299_v17  ;;  %v5150_v29 = vpack.c.bf16 %v1705_v39, %v1701_v32  ;;  %v1711_v25 = vld [vmem:[#allocation10 + $0x6e0] sm:$0xff]  ;;  %v5024_v47 = vpack.c.bf16 %v1712_v3, %v1708_v59  ;;  %v5152_v61 = vpack.c.bf16 %v1714_v60, %v1710_v46  ;;  %v1713_v49 = vld [vmem:[#allocation10 + $0x6f0] sm:$0xff]  ;;  %v1720_v42 = vld [vmem:[#allocation10 + $0x728] sm:$0xff] }
 0x292   : > { %5139 = vmatpush1.bf16.msra.mxu1 %v5138_v15  ;;  %2150 = vmatprep.mubr.f32.mxu1 %v1299_v17  ;;  %v1716_v15 = vld [vmem:[#allocation10 + $0x708] sm:$0xff]  ;;  %v1718_v35 = vld [vmem:[#allocation10 + $0x718] sm:$0xff]  ;;  %v5026_v58 = vpack.c.bf16 %v1711_v25, %v1707_v54  ;;  %v5154_v8 = vpack.c.bf16 %v1713_v49, %v1709_v36  ;;  %v1715_v11 = vld [vmem:[#allocation10 + $0x700] sm:$0xff] }
 0x293   : > { %5013 = vmatprep.subr.bf16.mxu0 %v5012_v34  ;;  %5141 = vmatprep.subr.bf16.mxu1 %v5140_v9  ;;  %v1722_v12 = vld [vmem:[#allocation10 + $0x738] sm:$0xff]  ;;  %v1719_v34 = vld [vmem:[#allocation10 + $0x720] sm:$0xff]  ;;  %v5028_v9 = vpack.c.bf16 %v1720_v42, %v1716_v15  ;;  %v1717_v50 = vld [vmem:[#allocation10 + $0x710] sm:$0xff] }
 0x294   : > { %v5156_v44 = vpack.c.bf16 %v1722_v12, %v1718_v35  ;;  %v1721_v40 = vld [vmem:[#allocation10 + $0x730] sm:$0xff]  ;;  %v1724_v17 = vld [vmem:[#allocation10 + $0x748] sm:$0xff]  ;;  %v1730_v56 = vld [vmem:[#allocation10 + $0x778] sm:$0xff]  ;;  %v5030_v57 = vpack.c.bf16 %v1719_v34, %v1715_v11 }
 0x295   : > { %5015 = vmatpush1.bf16.msra.mxu0 %v5014_v26  ;;  %v1728_v26 = vld [vmem:[#allocation10 + $0x768] sm:$0xff]  ;;  %v1727_v28 = vld [vmem:[#allocation10 + $0x760] sm:$0xff]  ;;  %v1725_v14 = vld [vmem:[#allocation10 + $0x750] sm:$0xff] }
 0x296   : > { %5143 = vmatpush1.bf16.msra.mxu1 %v5142_v21  ;;  %5017 = vmatprep.subr.bf16.mxu0 %v5016_v7  ;;  %v1726_v21 = vld [vmem:[#allocation10 + $0x758] sm:$0xff]  ;;  %v5158_v7 = vpack.c.bf16 %v1721_v40, %v1717_v50  ;;  %v5032_v33 = vpack.c.bf16 %v1728_v26, %v1724_v17  ;;  %v1729_v2 = vld [vmem:[#allocation10 + $0x770] sm:$0xff]  ;;  %v1732_v38 = vld [vmem:[#allocation10 + $0x788] sm:$0xff]  ;;  %v1271_v26 = vadd.f32 %v8149_v0, %v7659_v5 }
 0x297   : > { %5145 = vmatprep.subr.bf16.mxu1 %v5144_v10  ;;  %v1723_v10 = vld [vmem:[#allocation10 + $0x740] sm:$0xff]  ;;  %v5160_v31 = vpack.c.bf16 %v1730_v56, %v1726_v21  ;;  %v1738_v13 = vld [vmem:[#allocation10 + $0x7b8] sm:$0xff]  ;;  %v1733_v3 = vld [vmem:[#allocation10 + $0x790] sm:$0xff]  ;;  %v1275_v5 = vadd.f32 %v8149_v0, %v7677_v53 }
 0x298   : > { %v5034_v55 = vpack.c.bf16 %v1727_v28, %v1723_v10  ;;  %v1735_v32 = vld [vmem:[#allocation10 + $0x7a0] sm:$0xff]  ;;  %v1737_v46 = vld [vmem:[#allocation10 + $0x7b0] sm:$0xff]  ;;  %v1740_v60 = vld [vmem:[#allocation10 + $0x7c8] sm:$0xff] }
 0x299   : > { %5019 = vmatpush1.bf16.msra.mxu0 %v5018_v63  ;;  %v1736_v63 = vld [vmem:[#allocation10 + $0x7a8] sm:$0xff]  ;;  %v1746_v54 = vld [vmem:[#allocation10 + $0x7f8] sm:$0xff]  ;;  %v1743_v36 = vld [vmem:[#allocation10 + $0x7e0] sm:$0xff] }
 0x29a   : > { %5147 = vmatpush1.bf16.msra.mxu1 %v5146_v22  ;;  %5021 = vmatprep.subr.bf16.mxu0 %v5020_v51  ;;  %v1734_v22 = vld [vmem:[#allocation10 + $0x798] sm:$0xff]  ;;  %v5162_v51 = vpack.c.bf16 %v1729_v2, %v1725_v14  ;;  %v5036_v39 = vpack.c.bf16 %v1736_v63, %v1732_v38  ;;  %v1741_v42 = vld [vmem:[#allocation10 + $0x7d0] sm:$0xff]  ;;  %v2385_v40 = vld [vmem:[#allocation14] sm:$0xff]  ;;  %v1303_v63 = vmax.f32 %v1271_v26, 0.0 }
 0x29b   : > { %5149 = vmatprep.subr.bf16.mxu1 %v5148_v37  ;;  %v1731_v37 = vld [vmem:[#allocation10 + $0x780] sm:$0xff]  ;;  %v5164_v59 = vpack.c.bf16 %v1738_v13, %v1734_v22  ;;  %v1745_v35 = vld [vmem:[#allocation10 + $0x7f0] sm:$0xff] }
 0x29c   : > { %v5038_v25 = vpack.c.bf16 %v1735_v32, %v1731_v37  ;;  %v2386_v12 = vld [vmem:[#allocation14 + $0x8] sm:$0xff]  ;;  %v2392_v11 = vld [vmem:[#allocation14 + $0x38] sm:$0xff]  ;;  %v2389_v17 = vld [vmem:[#allocation14 + $0x20] sm:$0xff] }
 0x29d   : > { %5023 = vmatpush1.bf16.msra.mxu0 %v5022_v6  ;;  %v1744_v6 = vld [vmem:[#allocation10 + $0x7e8] sm:$0xff]  ;;  %v2387_v21 = vld [vmem:[#allocation14 + $0x10] sm:$0xff]  ;;  %v2396_v10 = vld [vmem:[#allocation14 + $0x58] sm:$0xff] }
 0x29e   : > { %5151 = vmatpush1.bf16.msra.mxu1 %v5150_v29  ;;  %5025 = vmatprep.subr.bf16.mxu0 %v5024_v47  ;;  %v1742_v29 = vld [vmem:[#allocation10 + $0x7d8] sm:$0xff]  ;;  %v5166_v47 = vpack.c.bf16 %v1737_v46, %v1733_v3  ;;  %v5040_v49 = vpack.c.bf16 %v1744_v6, %v1740_v60  ;;  %v2393_v2 = vld [vmem:[#allocation14 + $0x40] sm:$0xff]  ;;  %v2402_v37 = vld [vmem:[#allocation14 + $0x88] sm:$0xff]  ;;  %v1307_v6 = vmax.f32 %v1275_v5, 0.0 }
 0x29f   : > { %5153 = vmatprep.subr.bf16.mxu1 %v5152_v61  ;;  %v1739_v61 = vld [vmem:[#allocation10 + $0x7c0] sm:$0xff]  ;;  %v5168_v15 = vpack.c.bf16 %v1746_v54, %v1742_v29  ;;  %v2391_v56 = vld [vmem:[#allocation14 + $0x30] sm:$0xff]  ;;  %v2406_v32 = vld [vmem:[#allocation14 + $0xa8] sm:$0xff]  ;;  %v1279_v29 = vadd.f32 %v8149_v0, %v7695_v18 }
 0x2a0   : > { %v5042_v34 = vpack.c.bf16 %v1743_v36, %v1739_v61  ;;  %v2400_v28 = vld [vmem:[#allocation14 + $0x78] sm:$0xff]  ;;  %v5302_v14 = vpack.c.bf16 %v2391_v56, %v2387_v21  ;;  %v2397_v38 = vld [vmem:[#allocation14 + $0x60] sm:$0xff]  ;;  %v5180_v54 = vpack.c.bf16 %v2406_v32, %v2402_v37  ;;  %v2407_v61 = vld [vmem:[#allocation14 + $0xb0] sm:$0xff]  ;;  %v1314_v21 = vmax.f32 %v7737_v23, 0.0 }
 0x2a1   : > { %5027 = vmatpush1.bf16.msra.mxu0 %v5026_v58  ;;  %v2390_v58 = vld [vmem:[#allocation14 + $0x28] sm:$0xff]  ;;  %v5304_v13 = vpack.c.bf16 %v2400_v28, %v2396_v10  ;;  %v5178_v3 = vpack.c.bf16 %v2397_v38, %v2393_v2  ;;  %v2401_v60 = vld [vmem:[#allocation14 + $0x80] sm:$0xff]  ;;  %v1322_v23 = vmax.f32 %v7773_v62, 0.0  ;;  %v2423_v62 = vld [vmem:[#allocation14 + $0x130] sm:$0xff] }
 0x2a2   : > { %5155 = vmatpush1.bf16.msra.mxu1 %v5154_v8  ;;  %5029 = vmatprep.subr.bf16.mxu0 %v5028_v9  ;;  %v2388_v8 = vld [vmem:[#allocation14 + $0x18] sm:$0xff]  ;;  %v5170_v9 = vpack.c.bf16 %v1745_v35, %v1741_v42  ;;  %v2405_v53 = vld [vmem:[#allocation14 + $0xa0] sm:$0xff]  ;;  %v2410_v36 = vld [vmem:[#allocation14 + $0xc8] sm:$0xff]  ;;  %v1306_v42 = vmax.f32 %v7700_v27, 0.0  ;;  %v1310_v27 = vmax.f32 %v7718_v1, 0.0  ;;  %v1291_v1 = vadd.f32 %v8149_v0, %v7751_v48 }
 0x2a3   : > { %5157 = vmatprep.subr.bf16.mxu1 %v5156_v44  ;;  %v5172_v44 = vpack.c.bf16 %v2390_v58, %v2386_v12  ;;  %v5300_v50 = vpack.c.bf16 %v2392_v11, %v2388_v8  ;;  %v5182_v35 = vpack.c.bf16 %v2405_v53, %v2401_v60  ;;  %v2409_v12 = vld [vmem:[#allocation14 + $0xc0] sm:$0xff]  ;;  %v1311_v58 = vmax.f32 %v1279_v29, 0.0  ;;  %v2422_v28 = vld [vmem:[#allocation14 + $0x128] sm:$0xff] }
 0x2a4   : > { %v1283_v8 = vadd.f32 %v8149_v0, %v7713_v41  ;;  %v1287_v41 = vadd.f32 %v8149_v0, %v7732_v30  ;;  %v1318_v30 = vmax.f32 %v7756_v43, 0.0  ;;  %v1326_v48 = vmax.f32 %v7783_v45, 0.0  ;;  %v2418_v43 = vld [vmem:[#allocation14 + $0x108] sm:$0xff]  ;;  %v2425_v37 = vld [vmem:[#allocation14 + $0x140] sm:$0xff] }
 0x2a5   : > { %5031 = vmatpush1.bf16.msra.mxu0 %v5030_v57  ;;  %v2394_v57 = vld [vmem:[#allocation14 + $0x48] sm:$0xff]  ;;  %v2429_v32 = vld [vmem:[#allocation14 + $0x160] sm:$0xff] }
 0x2a6   : > { %5159 = vmatpush1.bf16.msra.mxu1 %v5158_v7  ;;  %5033 = vmatprep.subr.bf16.mxu0 %v5032_v33  ;;  %v2398_v7 = vld [vmem:[#allocation14 + $0x68] sm:$0xff]  ;;  %v1298_v33 = vmax.f32 %v7664_v16, 0.0  ;;  %v2408_v16 = vld [vmem:[#allocation14 + $0xb8] sm:$0xff]  ;;  %v1315_v26 = vmax.f32 %v1283_v8, 0.0  ;;  %v1319_v56 = vmax.f32 %v1287_v41, 0.0  ;;  %v2441_v8 = vld [vmem:[#allocation14 + $0x1c0] sm:$0xff] }
 0x2a7   : > { %5161 = vmatprep.subr.bf16.mxu1 %v5160_v31  ;;  %v5174_v31 = vpack.c.bf16 %v2389_v17, %v2385_v40  ;;  %v5176_v22 = vpack.c.bf16 %v2398_v7, %v2394_v57  ;;  %v1323_v57 = vmax.f32 %v1291_v1, 0.0  ;;  %v1295_v7 = vadd.f32 %v8149_v0, %v7768_v24  ;;  %v2424_v24 = vld [vmem:[#allocation14 + $0x138] sm:$0xff]  ;;  %v2417_v0 = vld [vmem:[#allocation14 + $0x100] sm:$0xff]  ;;  %v2430_v45 = vld [vmem:[#allocation14 + $0x168] sm:$0xff] }
 0x2a8   : > { %v2434_v60 = vld [vmem:[#allocation14 + $0x188] sm:$0xff]  ;;  %v2453_v1 = vld [vmem:[#allocation14 + $0x220] sm:$0xff] }
 0x2a9   : > { %5035 = vmatpush1.bf16.msra.mxu0 %v5034_v55  ;;  %v2395_v55 = vld [vmem:[#allocation14 + $0x50] sm:$0xff]  ;;  %v1327_v10 = vmax.f32 %v1295_v7, 0.0  ;;  %v2438_v53 = vld [vmem:[#allocation14 + $0x1a8] sm:$0xff] }
 0x2aa   : > { %5163 = vmatpush1.bf16.msra.mxu1 %v5162_v51  ;;  %5037 = vmatprep.subr.bf16.mxu0 %v5036_v39  ;;  %v2399_v51 = vld [vmem:[#allocation14 + $0x70] sm:$0xff]  ;;  %v2404_v39 = vld [vmem:[#allocation14 + $0x98] sm:$0xff]  ;;  %v5196_v29 = vpack.c.bf16 %v2438_v53, %v2434_v60  ;;  %v2478_v60 = vld [vmem:[#allocation14 + $0x2e8] sm:$0xff] }
 0x2ab   : > { %5165 = vmatprep.subr.bf16.mxu1 %v5164_v59  ;;  %v1302_v59 = vmax.f32 %v7682_v4, 0.0  ;;  %v5306_v46 = vpack.c.bf16 %v2399_v51, %v2395_v55  ;;  %v2414_v4 = vld [vmem:[#allocation14 + $0xe8] sm:$0xff]  ;;  %v2432_v51 = vld [vmem:[#allocation14 + $0x178] sm:$0xff]  ;;  %v2451_v7 = vld [vmem:[#allocation14 + $0x210] sm:$0xff] }
 0x2ac   : > { %v5184_v11 = vpack.c.bf16 %v2414_v4, %v2410_v36  ;;  %v2435_v4 = vld [vmem:[#allocation14 + $0x190] sm:$0xff]  ;;  %v2476_v53 = vld [vmem:[#allocation14 + $0x2d8] sm:$0xff] }
 0x2ad   : > { %5039 = vmatpush1.bf16.msra.mxu0 %v5038_v25  ;;  %v5308_v25 = vpack.c.bf16 %v2408_v16, %v2404_v39  ;;  %v5194_v16 = vpack.c.bf16 %v2429_v32, %v2425_v37  ;;  %v2469_v37 = vld [vmem:[#allocation14 + $0x2a0] sm:$0xff] }
 0x2ae   : > { %5167 = vmatpush1.bf16.msra.mxu1 %v5166_v47  ;;  %5041 = vmatprep.subr.bf16.mxu0 %v5040_v49  ;;  %v2403_v47 = vld [vmem:[#allocation14 + $0x90] sm:$0xff]  ;;  %v2412_v49 = vld [vmem:[#allocation14 + $0xd8] sm:$0xff] }
 0x2af   : > { %5169 = vmatprep.subr.bf16.mxu1 %v5168_v15  ;;  %v2416_v15 = vld [vmem:[#allocation14 + $0xf8] sm:$0xff]  ;;  %v5310_v18 = vpack.c.bf16 %v2407_v61, %v2403_v47  ;;  %v2437_v47 = vld [vmem:[#allocation14 + $0x1a0] sm:$0xff] }
 0x2b1   : > { %5043 = vmatpush1.bf16.msra.mxu0 %v5042_v34  ;;  %v5312_v34 = vpack.c.bf16 %v2416_v15, %v2412_v49  ;;  %v2439_v49 = vld [vmem:[#allocation14 + $0x1b0] sm:$0xff] }
 0x2b2   : > { %5171 = vmatpush1.bf16.msra.mxu1 %v5170_v9  ;;  %5173 = vmatprep.subr.bf16.mxu0 %v5172_v44  ;;  %v2413_v9 = vld [vmem:[#allocation14 + $0xe0] sm:$0xff]  ;;  %v2411_v44 = vld [vmem:[#allocation14 + $0xd0] sm:$0xff]  ;;  %v5326_v15 = vpack.c.bf16 %v2439_v49, %v2435_v4  ;;  %v2482_v49 = vld [vmem:[#allocation14 + $0x308] sm:$0xff] }
 0x2b3   : > { %5301 = vmatprep.subr.bf16.mxu1 %v5300_v50  ;;  %v2415_v50 = vld [vmem:[#allocation14 + $0xf0] sm:$0xff]  ;;  %v5186_v40 = vpack.c.bf16 %v2413_v9, %v2409_v12 }
 0x2b4   : > { %1925 = vmatmul.mubr.f32.vlgmr.msra.gmra.mrb[6].mxu0 %v1298_v33  ;;  %v5314_v17 = vpack.c.bf16 %v2415_v50, %v2411_v44  ;;  %v2443_v44 = vld [vmem:[#allocation14 + $0x1d0] sm:$0xff] }
 0x2b5   : > { %2151 = vmatmul.mubr.f32.vlgmr.msra.gmra.mrb[6].mxu1 %v1298_v33  ;;  %1930 = vmatprep.mubr.f32.mxu0 %v1303_v63  ;;  %v2420_v33 = vld [vmem:[#allocation14 + $0x118] sm:$0xff]  ;;  %v2447_v50 = vld [vmem:[#allocation14 + $0x1f0] sm:$0xff] }
 0x2b6   : > { %2156 = vmatprep.mubr.f32.mxu1 %v1303_v63  ;;  %5175 = vmatpush1.bf16.msra.mxu0 %v5174_v31  ;;  %v5188_v31 = vpack.c.bf16 %v2422_v28, %v2418_v43  ;;  %v5316_v2 = vpack.c.bf16 %v2424_v24, %v2420_v33  ;;  %v2419_v63 = vld [vmem:[#allocation14 + $0x110] sm:$0xff]  ;;  %v2462_v43 = vld [vmem:[#allocation14 + $0x268] sm:$0xff]  ;;  %v2460_v28 = vld [vmem:[#allocation14 + $0x258] sm:$0xff] }
 0x2b7   : > { %5303 = vmatpush1.bf16.msra.mxu1 %v5302_v14  ;;  %5177 = vmatprep.subr.bf16.mxu0 %v5176_v22  ;;  %v2421_v14 = vld [vmem:[#allocation14 + $0x120] sm:$0xff]  ;;  %v5318_v5 = vpack.c.bf16 %v2423_v62, %v2419_v63  ;;  %v2426_v22 = vld [vmem:[#allocation14 + $0x148] sm:$0xff]  ;;  %v2463_v63 = vld [vmem:[#allocation14 + $0x270] sm:$0xff] }
 0x2b8   : > { %5305 = vmatprep.subr.bf16.mxu1 %v5304_v13  ;;  %1931 = vmatmul.mubr.f32.gmra.mrb[8].mxu0 %v1302_v59  ;;  %v5190_v38 = vpack.c.bf16 %v2421_v14, %v2417_v0  ;;  %v2428_v13 = vld [vmem:[#allocation14 + $0x158] sm:$0xff]  ;;  %v5192_v55 = vpack.c.bf16 %v2430_v45, %v2426_v22  ;;  %v2457_v24 = vld [vmem:[#allocation14 + $0x240] sm:$0xff]  ;;  %v2470_v22 = vld [vmem:[#allocation14 + $0x2a8] sm:$0xff] }
 0x2b9   : > { %2157 = vmatmul.mubr.f32.gmra.mrb[8].mxu1 %v1302_v59  ;;  %1936 = vmatprep.mubr.f32.mxu0 %v1307_v6  ;;  %v5320_v39 = vpack.c.bf16 %v2432_v51, %v2428_v13  ;;  %v2427_v59 = vld [vmem:[#allocation14 + $0x150] sm:$0xff]  ;;  %v2461_v0 = vld [vmem:[#allocation14 + $0x260] sm:$0xff]  ;;  %v2468_v45 = vld [vmem:[#allocation14 + $0x298] sm:$0xff] }
 0x2ba   : > { %2162 = vmatprep.mubr.f32.mxu1 %v1307_v6  ;;  %5179 = vmatpush1.bf16.msra.mxu0 %v5178_v3  ;;  %v2431_v3 = vld [vmem:[#allocation14 + $0x170] sm:$0xff]  ;;  %v2436_v6 = vld [vmem:[#allocation14 + $0x198] sm:$0xff]  ;;  %v2465_v51 = vld [vmem:[#allocation14 + $0x280] sm:$0xff] }
 0x2bb   : > { %5307 = vmatpush1.bf16.msra.mxu1 %v5306_v46  ;;  %5181 = vmatprep.subr.bf16.mxu0 %v5180_v54  ;;  %v5322_v46 = vpack.c.bf16 %v2431_v3, %v2427_v59  ;;  %v2440_v54 = vld [vmem:[#allocation14 + $0x1b8] sm:$0xff]  ;;  %v2471_v59 = vld [vmem:[#allocation14 + $0x2b0] sm:$0xff] }
 0x2bc   : > { %5309 = vmatprep.subr.bf16.mxu1 %v5308_v25  ;;  %1937 = vmatmul.mubr.f32.gmra.mrb[10].mxu0 %v1306_v42  ;;  %v2433_v25 = vld [vmem:[#allocation14 + $0x180] sm:$0xff]  ;;  %v5324_v61 = vpack.c.bf16 %v2440_v54, %v2436_v6  ;;  %v2479_v4 = vld [vmem:[#allocation14 + $0x2f0] sm:$0xff] }
 0x2bd   : > { %2163 = vmatmul.mubr.f32.gmra.mrb[10].mxu1 %v1306_v42  ;;  %1942 = vmatprep.mubr.f32.mxu0 %v1311_v58  ;;  %v5198_v36 = vpack.c.bf16 %v2437_v47, %v2433_v25  ;;  %v2442_v42 = vld [vmem:[#allocation14 + $0x1c8] sm:$0xff]  ;;  %v2473_v54 = vld [vmem:[#allocation14 + $0x2c0] sm:$0xff] }
 0x2be   : > { %2168 = vmatprep.mubr.f32.mxu1 %v1311_v58  ;;  %5183 = vmatpush1.bf16.msra.mxu0 %v5182_v35  ;;  %v2446_v35 = vld [vmem:[#allocation14 + $0x1e8] sm:$0xff]  ;;  %v2448_v58 = vld [vmem:[#allocation14 + $0x1f8] sm:$0xff]  ;;  %v2477_v25 = vld [vmem:[#allocation14 + $0x2e0] sm:$0xff] }
 0x2bf   : > { %5311 = vmatpush1.bf16.msra.mxu1 %v5310_v18  ;;  %5185 = vmatprep.subr.bf16.mxu0 %v5184_v11  ;;  %v2444_v18 = vld [vmem:[#allocation14 + $0x1d8] sm:$0xff]  ;;  %v5200_v12 = vpack.c.bf16 %v2446_v35, %v2442_v42  ;;  %v2445_v11 = vld [vmem:[#allocation14 + $0x1e0] sm:$0xff]  ;;  %v2486_v42 = vld [vmem:[#allocation14 + $0x328] sm:$0xff] }
 0x2c0   : > { %5313 = vmatprep.subr.bf16.mxu1 %v5312_v34  ;;  %1943 = vmatmul.mubr.f32.gmra.mrb[12].mxu0 %v1310_v27  ;;  %v5328_v34 = vpack.c.bf16 %v2448_v58, %v2444_v18  ;;  %v5202_v9 = vpack.c.bf16 %v2445_v11, %v2441_v8  ;;  %v2484_v35 = vld [vmem:[#allocation14 + $0x318] sm:$0xff]  ;;  %v2481_v8 = vld [vmem:[#allocation14 + $0x300] sm:$0xff] }
 0x2c1   : > { %2169 = vmatmul.mubr.f32.gmra.mrb[12].mxu1 %v1310_v27  ;;  %1948 = vmatprep.mubr.f32.mxu0 %v1315_v26  ;;  %v5330_v27 = vpack.c.bf16 %v2447_v50, %v2443_v44  ;;  %v2488_v18 = vld [vmem:[#allocation14 + $0x338] sm:$0xff]  ;;  %v2485_v11 = vld [vmem:[#allocation14 + $0x320] sm:$0xff]  ;;  %v2487_v44 = vld [vmem:[#allocation14 + $0x330] sm:$0xff] }
 0x2c2   : > { %2174 = vmatprep.mubr.f32.mxu1 %v1315_v26  ;;  %5187 = vmatpush1.bf16.msra.mxu0 %v5186_v40  ;;  %v2450_v40 = vld [vmem:[#allocation14 + $0x208] sm:$0xff]  ;;  %v2452_v26 = vld [vmem:[#allocation14 + $0x218] sm:$0xff]  ;;  %v5348_v58 = vpack.c.bf16 %v2488_v18, %v2484_v35 }
 0x2c3   : > { %5315 = vmatpush1.bf16.msra.mxu1 %v5314_v17  ;;  %5189 = vmatprep.subr.bf16.mxu0 %v5188_v31  ;;  %v2454_v17 = vld [vmem:[#allocation14 + $0x228] sm:$0xff]  ;;  %v2464_v31 = vld [vmem:[#allocation14 + $0x278] sm:$0xff] }
 0x2c4   : > { %1949 = vmatmul.mubr.f32.gmra.mrb[14].mxu0 %v1314_v21  ;;  %5317 = vmatprep.subr.bf16.mxu1 %v5316_v2  ;;  %v5204_v41 = vpack.c.bf16 %v2454_v17, %v2450_v40  ;;  %v5336_v14 = vpack.c.bf16 %v2464_v31, %v2460_v28  ;;  %v5210_v2 = vpack.c.bf16 %v2461_v0, %v2457_v24  ;;  %v2490_v50 = vld [vmem:[#allocation14 + $0x348] sm:$0xff]  ;;  %v2497_v31 = vld [vmem:[#allocation14 + $0x380] sm:$0xff]  ;;  %v8153_v35 = vld [vmem:[#allocation48_spill] sm:$0xff] }
 0x2c5   : > { %2175 = vmatmul.mubr.f32.gmra.mrb[14].mxu1 %v1314_v21  ;;  %1954 = vmatprep.mubr.f32.mxu0 %v1319_v56  ;;  %v2456_v21 = vld [vmem:[#allocation14 + $0x238] sm:$0xff]  ;;  %v2501_v24 = vld [vmem:[#allocation14 + $0x3a0] sm:$0xff]  ;;  %v7827_v18 = vrot.slane %v8153_v35, %v7317_v52 }
 0x2c6   : > { %2180 = vmatprep.mubr.f32.mxu1 %v1319_v56  ;;  %5191 = vmatpush1.bf16.msra.mxu0 %v5190_v38  ;;  %v2449_v56 = vld [vmem:[#allocation14 + $0x200] sm:$0xff]  ;;  %v2459_v38 = vld [vmem:[#allocation14 + $0x250] sm:$0xff] }
 0x2c7   : > { %5319 = vmatpush1.bf16.msra.mxu1 %v5318_v5  ;;  %5193 = vmatprep.subr.bf16.mxu0 %v5192_v55  ;;  %v5338_v62 = vpack.c.bf16 %v2463_v63, %v2459_v38  ;;  %v2466_v5 = vld [vmem:[#allocation14 + $0x288] sm:$0xff]  ;;  %v2472_v55 = vld [vmem:[#allocation14 + $0x2b8] sm:$0xff] }
 0x2c8   : > { %1955 = vmatmul.mubr.f32.gmra.mrb[16].mxu0 %v1318_v30  ;;  %5321 = vmatprep.subr.bf16.mxu1 %v5320_v39  ;;  %v5212_v13 = vpack.c.bf16 %v2470_v22, %v2466_v5  ;;  %v5340_v32 = vpack.c.bf16 %v2472_v55, %v2468_v45  ;;  %v5214_v39 = vpack.c.bf16 %v2469_v37, %v2465_v51  ;;  %v2506_v38 = vld [vmem:[#allocation14 + $0x3c8] sm:$0xff]  ;;  %v2512_v5 = vld [vmem:[#allocation14 + $0x3f8] sm:$0xff]  ;;  %v2505_v55 = vld [vmem:[#allocation14 + $0x3c0] sm:$0xff] }
 0x2c9   : > { %2181 = vmatmul.mubr.f32.gmra.mrb[16].mxu1 %v1318_v30  ;;  %1960 = vmatprep.mubr.f32.mxu0 %v1323_v57  ;;  %v5332_v30 = vpack.c.bf16 %v2456_v21, %v2452_v26  ;;  %v2492_v26 = vld [vmem:[#allocation14 + $0x358] sm:$0xff]  ;;  %v2489_v21 = vld [vmem:[#allocation14 + $0x340] sm:$0xff]  ;;  %v2510_v63 = vld [vmem:[#allocation14 + $0x3e8] sm:$0xff]  ;;  %v5230_v22 = vpack.c.bf16 %v2501_v24, %v2497_v31 }
 0x2ca   : > { %2186 = vmatprep.mubr.f32.mxu1 %v1323_v57  ;;  %5195 = vmatpush1.bf16.msra.mxu0 %v5194_v16  ;;  %v5206_v57 = vpack.c.bf16 %v2453_v1, %v2449_v56  ;;  %v2467_v16 = vld [vmem:[#allocation14 + $0x290] sm:$0xff]  ;;  %v2493_v1 = vld [vmem:[#allocation14 + $0x360] sm:$0xff] }
 0x2cb   : > { %5323 = vmatpush1.bf16.msra.mxu1 %v5322_v46  ;;  %5197 = vmatprep.subr.bf16.mxu0 %v5196_v29  ;;  %v5342_v3 = vpack.c.bf16 %v2471_v59, %v2467_v16  ;;  %v2474_v46 = vld [vmem:[#allocation14 + $0x2c8] sm:$0xff]  ;;  %v2480_v29 = vld [vmem:[#allocation14 + $0x2f8] sm:$0xff]  ;;  %v2509_v51 = vld [vmem:[#allocation14 + $0x3e0] sm:$0xff] }
 0x2cc   : > { %1961 = vmatmul.mubr.f32.gmra.mrb[18].mxu0 %v1322_v23  ;;  %5325 = vmatprep.subr.bf16.mxu1 %v5324_v61  ;;  %v5216_v6 = vpack.c.bf16 %v2478_v60, %v2474_v46  ;;  %v5344_v47 = vpack.c.bf16 %v2480_v29, %v2476_v53  ;;  %v5218_v61 = vpack.c.bf16 %v2477_v25, %v2473_v54  ;;  %v2507_v37 = vld [vmem:[#allocation14 + $0x3d0] sm:$0xff]  ;;  %v2514_v16 = vld [vmem:[#allocation14 + $0x408] sm:$0xff]  ;;  %v2520_v46 = vld [vmem:[#allocation14 + $0x438] sm:$0xff] }
 0x2cd   : > { %2187 = vmatmul.mubr.f32.gmra.mrb[18].mxu1 %v1322_v23  ;;  %1966 = vmatprep.mubr.f32.mxu0 %v1327_v10  ;;  %v2455_v23 = vld [vmem:[#allocation14 + $0x230] sm:$0xff]  ;;  %v2518_v59 = vld [vmem:[#allocation14 + $0x428] sm:$0xff]  ;;  %v5234_v60 = vpack.c.bf16 %v2509_v51, %v2505_v55  ;;  %v2247_v54 = vld [vmem:[#allocation13] sm:$0xf] }
 0x2ce   : > { %2192 = vmatprep.mubr.f32.mxu1 %v1327_v10  ;;  %5199 = vmatpush1.bf16.msra.mxu0 %v5198_v36  ;;  %v5334_v10 = vpack.c.bf16 %v2455_v23, %v2451_v7  ;;  %v2475_v36 = vld [vmem:[#allocation14 + $0x2d0] sm:$0xff]  ;;  %v5226_v7 = vpack.c.bf16 %v2493_v1, %v2489_v21  ;;  %v2498_v23 = vld [vmem:[#allocation14 + $0x388] sm:$0xff]  ;;  %v8150_v25 = vld [vmem:[#allocation45_spill] sm:$0xff] }
 0x2cf   : > { %5327 = vmatpush1.bf16.msra.mxu1 %v5326_v15  ;;  %5201 = vmatprep.subr.bf16.mxu0 %v5200_v12  ;;  %v5346_v15 = vpack.c.bf16 %v2479_v4, %v2475_v36  ;;  %v5220_v12 = vpack.c.bf16 %v2486_v42, %v2482_v49  ;;  %v7816_v4 = vrot.slane %v2247_v54, %v7317_v52 }
 0x2d0   : > { %1967 = vmatmul.mubr.f32.gmra.mrb[20].mxu0 %v1326_v48  ;;  %5329 = vmatprep.subr.bf16.mxu1 %v5328_v34  ;;  %v2483_v34 = vld [vmem:[#allocation14 + $0x310] sm:$0xff]  ;;  %v7819_v49 = vrot.slane %v2247_v54, %v7373_v20 }
 0x2d1   : > { %2193 = vmatmul.mubr.f32.gmra.mrb[20].mxu1 %v1326_v48  ;;  %v2458_v48 = vld [vmem:[#allocation14 + $0x248] sm:$0xff]  ;;  %v5350_v40 = vpack.c.bf16 %v2487_v44, %v2483_v34  ;;  %v7833_v34 = vrot.slane %v2247_v54, %v7370_v19 }
 0x2d2   : > { %5203 = vmatpush1.bf16.msra.mxu0 %v5202_v9  ;;  %v5208_v33 = vpack.c.bf16 %v2462_v43, %v2458_v48  ;;  %v5222_v9 = vpack.c.bf16 %v2485_v11, %v2481_v8  ;;  %v2500_v48 = vld [vmem:[#allocation14 + $0x398] sm:$0xff] }
 0x2d3   : > { %5331 = vmatpush1.bf16.msra.mxu1 %v5330_v27  ;;  %5205 = vmatprep.subr.bf16.mxu0 %v5204_v41  ;;  %v2494_v27 = vld [vmem:[#allocation14 + $0x368] sm:$0xff]  ;;  %v2496_v41 = vld [vmem:[#allocation14 + $0x378] sm:$0xff] }
 0x2d4   : > { %5333 = vmatprep.subr.bf16.mxu1 %v5332_v30  ;;  %v5224_v17 = vpack.c.bf16 %v2494_v27, %v2490_v50  ;;  %v5352_v56 = vpack.c.bf16 %v2496_v41, %v2492_v26  ;;  %v2491_v30 = vld [vmem:[#allocation14 + $0x350] sm:$0xff]  ;;  %v8154_v8 = vld [vmem:[#allocation36_spill] sm:$0xff] }
 0x2d5   : > { %v7830_v11 = vrot.slane %v2247_v54, %v8154_v8 }
 0x2d6   : > { %5207 = vmatpush1.bf16.msra.mxu0 %v5206_v57  ;;  %v2495_v57 = vld [vmem:[#allocation14 + $0x370] sm:$0xff] }
 0x2d7   : > { %5335 = vmatpush1.bf16.msra.mxu1 %v5334_v10  ;;  %5209 = vmatprep.subr.bf16.mxu0 %v5208_v33  ;;  %v2502_v10 = vld [vmem:[#allocation14 + $0x3a8] sm:$0xff]  ;;  %v5354_v43 = vpack.c.bf16 %v2495_v57, %v2491_v30  ;;  %v2504_v33 = vld [vmem:[#allocation14 + $0x3b8] sm:$0xff] }
 0x2d8   : > { %5337 = vmatprep.subr.bf16.mxu1 %v5336_v14  ;;  %v5228_v28 = vpack.c.bf16 %v2502_v10, %v2498_v23  ;;  %v5356_v0 = vpack.c.bf16 %v2504_v33, %v2500_v48  ;;  %v2499_v14 = vld [vmem:[#allocation14 + $0x390] sm:$0xff] }
 0x2da   : > { %5211 = vmatpush1.bf16.msra.mxu0 %v5210_v2  ;;  %v2503_v2 = vld [vmem:[#allocation14 + $0x3b0] sm:$0xff] }
 0x2db   : > { %5339 = vmatpush1.bf16.msra.mxu1 %v5338_v62  ;;  %5213 = vmatprep.subr.bf16.mxu0 %v5212_v13  ;;  %v2508_v62 = vld [vmem:[#allocation14 + $0x3d8] sm:$0xff]  ;;  %v5358_v45 = vpack.c.bf16 %v2503_v2, %v2499_v14  ;;  %v5232_v13 = vpack.c.bf16 %v2510_v63, %v2506_v38 }
 0x2dc   : > { %5341 = vmatprep.subr.bf16.mxu1 %v5340_v32  ;;  %v5360_v32 = vpack.c.bf16 %v2512_v5, %v2508_v62 }
 0x2de   : > { %5215 = vmatpush1.bf16.msra.mxu0 %v5214_v39  ;;  %v2511_v39 = vld [vmem:[#allocation14 + $0x3f0] sm:$0xff] }
 0x2df   : > { %5343 = vmatpush1.bf16.msra.mxu1 %v5342_v3  ;;  %5217 = vmatprep.subr.bf16.mxu0 %v5216_v6  ;;  %v2516_v3 = vld [vmem:[#allocation14 + $0x418] sm:$0xff]  ;;  %v5362_v53 = vpack.c.bf16 %v2511_v39, %v2507_v37  ;;  %v5236_v6 = vpack.c.bf16 %v2518_v59, %v2514_v16 }
 0x2e0   : > { %5345 = vmatprep.subr.bf16.mxu1 %v5344_v47  ;;  %v5364_v29 = vpack.c.bf16 %v2520_v46, %v2516_v3  ;;  %v7809_v47 = vrot.slane %v8150_v25, %v7317_v52 }
 0x2e2   : > { %5219 = vmatpush1.bf16.msra.mxu0 %v5218_v61  ;;  %v8151_v61 = vld [vmem:[#allocation46_spill] sm:$0xff] }
 0x2e3   : > { %5347 = vmatpush1.bf16.msra.mxu1 %v5346_v15  ;;  %5221 = vmatprep.subr.bf16.mxu0 %v5220_v12  ;;  %v7813_v36 = vrot.slane %v8151_v61, %v7317_v52  ;;  %v8152_v15 = vld [vmem:[#allocation47_spill] sm:$0xff] }
 0x2e4   : > { %5349 = vmatprep.subr.bf16.mxu1 %v5348_v58  ;;  %v7823_v42 = vrot.slane %v8152_v15, %v7317_v52 }
 0x2e6   : > { %5223 = vmatpush1.bf16.msra.mxu0 %v5222_v9 }
 0x2e7   : > { %5351 = vmatpush1.bf16.msra.mxu1 %v5350_v40  ;;  %5225 = vmatprep.subr.bf16.mxu0 %v5224_v17 }
 0x2e8   : > { %5353 = vmatprep.subr.bf16.mxu1 %v5352_v56 }
 0x2ea   : > { %5227 = vmatpush1.bf16.msra.mxu0 %v5226_v7 }
 0x2eb   : > { %5355 = vmatpush1.bf16.msra.mxu1 %v5354_v43  ;;  %5229 = vmatprep.subr.bf16.mxu0 %v5228_v28 }
 0x2ec   : > { %5357 = vmatprep.subr.bf16.mxu1 %v5356_v0 }
 0x2ee   : > { %5231 = vmatpush1.bf16.msra.mxu0 %v5230_v22 }
 0x2ef   : > { %5359 = vmatpush1.bf16.msra.mxu1 %v5358_v45  ;;  %5233 = vmatprep.subr.bf16.mxu0 %v5232_v13 }
 0x2f0   : > { %5361 = vmatprep.subr.bf16.mxu1 %v5360_v32 }
 0x2f2   : > { %5235 = vmatpush1.bf16.msra.mxu0 %v5234_v60 }
 0x2f3   : > { %5363 = vmatpush1.bf16.msra.mxu1 %v5362_v53  ;;  %5237 = vmatprep.subr.bf16.mxu0 %v5236_v6 }
 0x2f4   : > { %5365 = vmatprep.subr.bf16.mxu1 %v5364_v29 }
 0x387   : > { %v1926_v12 = vpop.f32.mrb[6].mxu0 }
 0x388   : > { %v2152_v58 = vpop.f32.mrb[6].mxu1  ;;  %v2215_v9 = vadd.f32 %v7809_v47, %v1926_v12  ;;  %v1928_v50 = vpop.f32.mrb[7].mxu0 }
 0x389   : > { %v2217_v44 = vadd.f32 %v7813_v36, %v2152_v58  ;;  %v2154_v27 = vpop.f32.mrb[7].mxu1  ;;  %v2216_v40 = vadd.f32 %v7823_v42, %v1928_v50 }
 0x38a   : > { %v2218_v17 = vadd.f32 %v7827_v18, %v2154_v27  ;;  %v2269_v26 = vadd.f32 %v7816_v4, %v2215_v9 }
 0x38b   : > { %v2271_v41 = vadd.f32 %v7819_v49, %v2217_v44  ;;  %v2270_v21 = vadd.f32 %v7830_v11, %v2216_v40  ;;  %v1932_v1 = vpop.f32.mrb[8].mxu0 }
 0x38c   : > { %v2272_v56 = vadd.f32 %v7833_v34, %v2218_v17  ;;  %v2158_v30 = vpop.f32.mrb[8].mxu1  ;;  %v2219_v57 = vadd.f32 %v7809_v47, %v1932_v1  ;;  %v1934_v23 = vpop.f32.mrb[9].mxu0  ;;  %v2301_v28 = vmax.f32 %v2269_v26, 0.0 }
 0x38d   : > { %v2221_v7 = vadd.f32 %v7813_v36, %v2158_v30  ;;  %v2160_v10 = vpop.f32.mrb[9].mxu1  ;;  %v2220_v48 = vadd.f32 %v7823_v42, %v1934_v23  ;;  %v2303_v33 = vmax.f32 %v2271_v41, 0.0  ;;  %v2302_v0 = vmax.f32 %v2270_v21, 0.0 }
 0x38e   : > { %v2222_v43 = vadd.f32 %v7827_v18, %v2160_v10  ;;  %v2273_v31 = vadd.f32 %v7816_v4, %v2219_v57  ;;  %v2304_v14 = vmax.f32 %v2272_v56, 0.0 }
 0x38f   : > { %v2275_v24 = vadd.f32 %v7819_v49, %v2221_v7  ;;  %v2274_v2 = vadd.f32 %v7830_v11, %v2220_v48  ;;  %v1938_v63 = vpop.f32.mrb[10].mxu0 }
 0x390   : > { %v2276_v38 = vadd.f32 %v7833_v34, %v2222_v43  ;;  %v2164_v62 = vpop.f32.mrb[10].mxu1  ;;  %v2305_v5 = vmax.f32 %v2273_v31, 0.0  ;;  %v2223_v45 = vadd.f32 %v7809_v47, %v1938_v63  ;;  %v1940_v55 = vpop.f32.mrb[11].mxu0 }
 0x391   : > { %v2307_v22 = vmax.f32 %v2275_v24, 0.0  ;;  %v2225_v13 = vadd.f32 %v7813_v36, %v2164_v62  ;;  %v2166_v51 = vpop.f32.mrb[11].mxu1  ;;  %v2306_v37 = vmax.f32 %v2274_v2, 0.0  ;;  %v2224_v39 = vadd.f32 %v7823_v42, %v1940_v55 }
 0x392   : > { %v2308_v32 = vmax.f32 %v2276_v38, 0.0  ;;  %v2226_v16 = vadd.f32 %v7827_v18, %v2166_v51  ;;  %v2333_v59 = vadd.f32 %v2305_v5, %v2301_v28  ;;  %v2277_v46 = vadd.f32 %v7816_v4, %v2223_v45 }
 0x393   : > { %v2359_v3 = vadd.f32 %v2307_v22, %v2303_v33  ;;  %v2279_v60 = vadd.f32 %v7819_v49, %v2225_v13  ;;  %v2346_v53 = vadd.f32 %v2306_v37, %v2302_v0  ;;  %v2278_v29 = vadd.f32 %v7830_v11, %v2224_v39  ;;  %v1944_v25 = vpop.f32.mrb[12].mxu0 }
 0x394   : > { %v2372_v6 = vadd.f32 %v2308_v32, %v2304_v14  ;;  %v2280_v54 = vadd.f32 %v7833_v34, %v2226_v16  ;;  %v2170_v61 = vpop.f32.mrb[12].mxu1  ;;  %v2309_v15 = vmax.f32 %v2277_v46, 0.0  ;;  %v2227_v12 = vadd.f32 %v7809_v47, %v1944_v25  ;;  %v1946_v9 = vpop.f32.mrb[13].mxu0 }
 0x395   : > { %v2311_v35 = vmax.f32 %v2279_v60, 0.0  ;;  %v2229_v58 = vadd.f32 %v7813_v36, %v2170_v61  ;;  %v2172_v44 = vpop.f32.mrb[13].mxu1  ;;  %v2310_v50 = vmax.f32 %v2278_v29, 0.0  ;;  %v2228_v40 = vadd.f32 %v7823_v42, %v1946_v9 }
 0x396   : > { %v2312_v27 = vmax.f32 %v2280_v54, 0.0  ;;  %v2230_v17 = vadd.f32 %v7827_v18, %v2172_v44  ;;  %v2334_v26 = vadd.f32 %v2333_v59, %v2309_v15  ;;  %v2281_v21 = vadd.f32 %v7816_v4, %v2227_v12 }
 0x397   : > { %v2360_v41 = vadd.f32 %v2359_v3, %v2311_v35  ;;  %v2283_v56 = vadd.f32 %v7819_v49, %v2229_v58  ;;  %v2347_v1 = vadd.f32 %v2346_v53, %v2310_v50  ;;  %v2282_v57 = vadd.f32 %v7830_v11, %v2228_v40  ;;  %v1950_v23 = vpop.f32.mrb[14].mxu0 }
 0x398   : > { %v2373_v30 = vadd.f32 %v2372_v6, %v2312_v27  ;;  %v2284_v7 = vadd.f32 %v7833_v34, %v2230_v17  ;;  %v2176_v10 = vpop.f32.mrb[14].mxu1  ;;  %v2313_v48 = vmax.f32 %v2281_v21, 0.0  ;;  %v2231_v28 = vadd.f32 %v7809_v47, %v1950_v23  ;;  %v1952_v31 = vpop.f32.mrb[15].mxu0 }
 0x399   : > { %v2315_v43 = vmax.f32 %v2283_v56, 0.0  ;;  %v2233_v33 = vadd.f32 %v7813_v36, %v2176_v10  ;;  %v2178_v24 = vpop.f32.mrb[15].mxu1  ;;  %v2314_v0 = vmax.f32 %v2282_v57, 0.0  ;;  %v2232_v2 = vadd.f32 %v7823_v42, %v1952_v31 }
 0x39a   : > { %v2316_v14 = vmax.f32 %v2284_v7, 0.0  ;;  %v2234_v38 = vadd.f32 %v7827_v18, %v2178_v24  ;;  %v2335_v63 = vadd.f32 %v2334_v26, %v2313_v48  ;;  %v2285_v5 = vadd.f32 %v7816_v4, %v2231_v28 }
 0x39b   : > { %v2361_v62 = vadd.f32 %v2360_v41, %v2315_v43  ;;  %v2287_v22 = vadd.f32 %v7819_v49, %v2233_v33  ;;  %v2348_v45 = vadd.f32 %v2347_v1, %v2314_v0  ;;  %v2286_v55 = vadd.f32 %v7830_v11, %v2232_v2  ;;  %v1956_v37 = vpop.f32.mrb[16].mxu0 }
 0x39c   : > { %v2374_v13 = vadd.f32 %v2373_v30, %v2316_v14  ;;  %v2288_v51 = vadd.f32 %v7833_v34, %v2234_v38  ;;  %v2182_v32 = vpop.f32.mrb[16].mxu1  ;;  %v2317_v39 = vmax.f32 %v2285_v5, 0.0  ;;  %v2235_v59 = vadd.f32 %v7809_v47, %v1956_v37  ;;  %v1958_v46 = vpop.f32.mrb[17].mxu0 }
 0x39d   : > { %v2319_v16 = vmax.f32 %v2287_v22, 0.0  ;;  %v2237_v3 = vadd.f32 %v7813_v36, %v2182_v32  ;;  %v2184_v60 = vpop.f32.mrb[17].mxu1  ;;  %v2318_v53 = vmax.f32 %v2286_v55, 0.0  ;;  %v2236_v29 = vadd.f32 %v7823_v42, %v1958_v46 }
 0x39e   : > { %v2320_v6 = vmax.f32 %v2288_v51, 0.0  ;;  %v2238_v54 = vadd.f32 %v7827_v18, %v2184_v60  ;;  %v2336_v25 = vadd.f32 %v2335_v63, %v2317_v39  ;;  %v2289_v15 = vadd.f32 %v7816_v4, %v2235_v59 }
 0x39f   : > { %v2362_v61 = vadd.f32 %v2361_v62, %v2319_v16  ;;  %v2291_v35 = vadd.f32 %v7819_v49, %v2237_v3  ;;  %v2349_v12 = vadd.f32 %v2348_v45, %v2318_v53  ;;  %v2290_v9 = vadd.f32 %v7830_v11, %v2236_v29  ;;  %v1962_v50 = vpop.f32.mrb[18].mxu0 }
 0x3a0   : > { %v2375_v58 = vadd.f32 %v2374_v13, %v2320_v6  ;;  %v2292_v44 = vadd.f32 %v7833_v34, %v2238_v54  ;;  %v2188_v27 = vpop.f32.mrb[18].mxu1  ;;  %v2321_v40 = vmax.f32 %v2289_v15, 0.0  ;;  %v2239_v26 = vadd.f32 %v7809_v47, %v1962_v50  ;;  %v1964_v21 = vpop.f32.mrb[19].mxu0 }
 0x3a1   : > { %v2323_v17 = vmax.f32 %v2291_v35, 0.0  ;;  %v2241_v41 = vadd.f32 %v7813_v36, %v2188_v27  ;;  %v2190_v56 = vpop.f32.mrb[19].mxu1  ;;  %v2322_v1 = vmax.f32 %v2290_v9, 0.0  ;;  %v2240_v57 = vadd.f32 %v7823_v42, %v1964_v21  ;;  %v2522_v21 = vld [vmem:[#allocation14 + $0x448] sm:$0xff] }
 0x3a2   : > { %v2324_v30 = vmax.f32 %v2292_v44, 0.0  ;;  %v2242_v7 = vadd.f32 %v7827_v18, %v2190_v56  ;;  %v2337_v23 = vadd.f32 %v2336_v25, %v2321_v40  ;;  %v2293_v48 = vadd.f32 %v7816_v4, %v2239_v26  ;;  %v2513_v44 = vld [vmem:[#allocation14 + $0x400] sm:$0xff]  ;;  %v2519_v26 = vld [vmem:[#allocation14 + $0x430] sm:$0xff] }
 0x3a3   : > { %v2363_v10 = vadd.f32 %v2362_v61, %v2323_v17  ;;  %v2295_v43 = vadd.f32 %v7819_v49, %v2241_v41  ;;  %v2350_v28 = vadd.f32 %v2349_v12, %v2322_v1  ;;  %v2294_v31 = vadd.f32 %v7830_v11, %v2240_v57  ;;  %v1968_v0 = vpop.f32.mrb[20].mxu0  ;;  %v2517_v40 = vld [vmem:[#allocation14 + $0x420] sm:$0xff]  ;;  %v2515_v17 = vld [vmem:[#allocation14 + $0x410] sm:$0xff]  ;;  %v2526_v1 = vld [vmem:[#allocation14 + $0x468] sm:$0xff] }
 0x3a4   : > { %v2376_v33 = vadd.f32 %v2375_v58, %v2324_v30  ;;  %v2296_v24 = vadd.f32 %v7833_v34, %v2242_v7  ;;  %v2194_v14 = vpop.f32.mrb[20].mxu1  ;;  %v2325_v2 = vmax.f32 %v2293_v48, 0.0  ;;  %v2243_v63 = vadd.f32 %v7809_v47, %v1968_v0  ;;  %v1970_v5 = vpop.f32.mrb[21].mxu0  ;;  %v2524_v30 = vld [vmem:[#allocation14 + $0x458] sm:$0xff]  ;;  %v2521_v48 = vld [vmem:[#allocation14 + $0x440] sm:$0xff] }
 0x3a5   : > { %v2327_v38 = vmax.f32 %v2295_v43, 0.0  ;;  %v2245_v62 = vadd.f32 %v7813_v36, %v2194_v14  ;;  %v2196_v22 = vpop.f32.mrb[21].mxu1  ;;  %v2326_v45 = vmax.f32 %v2294_v31, 0.0  ;;  %v2244_v55 = vadd.f32 %v7823_v42, %v1970_v5  ;;  %v2528_v57 = vld [vmem:[#allocation14 + $0x478] sm:$0xff]  ;;  %v2525_v43 = vld [vmem:[#allocation14 + $0x460] sm:$0xff]  ;;  %v2527_v31 = vld [vmem:[#allocation14 + $0x470] sm:$0xff] }
 0x3a6   : > { %v2328_v13 = vmax.f32 %v2296_v24, 0.0  ;;  %v2246_v51 = vadd.f32 %v7827_v18, %v2196_v22  ;;  %v2338_v37 = vadd.f32 %v2337_v23, %v2325_v2  ;;  %v2297_v39 = vadd.f32 %v7816_v4, %v2243_v63  ;;  %v2530_v24 = vld [vmem:[#allocation14 + $0x488] sm:$0xff]  ;;  %v2536_v63 = vld [vmem:[#allocation14 + $0x4b8] sm:$0xff] }
 0x3a7   : > { %v2364_v32 = vadd.f32 %v2363_v10, %v2327_v38  ;;  %v2299_v16 = vadd.f32 %v7819_v49, %v2245_v62  ;;  %v2351_v59 = vadd.f32 %v2350_v28, %v2326_v45  ;;  %v2298_v47 = vadd.f32 %v7830_v11, %v2244_v55  ;;  %v2534_v2 = vld [vmem:[#allocation14 + $0x4a8] sm:$0xff]  ;;  %v2532_v38 = vld [vmem:[#allocation14 + $0x498] sm:$0xff]  ;;  %v2529_v45 = vld [vmem:[#allocation14 + $0x480] sm:$0xff] }
 0x3a8   : > { %v2377_v3 = vadd.f32 %v2376_v33, %v2328_v13  ;;  %v2300_v36 = vadd.f32 %v7833_v34, %v2246_v51  ;;  %v2329_v46 = vmax.f32 %v2297_v39, 0.0  ;;  %v5238_v23 = vpack.c.bf16 %v2517_v40, %v2513_v44  ;;  %v2523_v33 = vld [vmem:[#allocation14 + $0x450] sm:$0xff]  ;;  %v2533_v13 = vld [vmem:[#allocation14 + $0x4a0] sm:$0xff]  ;;  %v2538_v39 = vld [vmem:[#allocation14 + $0x4c8] sm:$0xff] }
 0x3a9   : > { %v2331_v60 = vmax.f32 %v2299_v16, 0.0  ;;  %v2330_v53 = vmax.f32 %v2298_v47, 0.0  ;;  %v5366_v10 = vpack.c.bf16 %v2519_v26, %v2515_v17  ;;  %v5240_v0 = vpack.c.bf16 %v2526_v1, %v2522_v21  ;;  %v2542_v16 = vld [vmem:[#allocation14 + $0x4e8] sm:$0xff]  ;;  %v2560_v40 = vld [vmem:[#allocation14 + $0x578] sm:$0xff]  ;;  %v2557_v21 = vld [vmem:[#allocation14 + $0x560] sm:$0xff] }
 0x3aa   : > { %v2332_v6 = vmax.f32 %v2300_v36, 0.0  ;;  %v2339_v29 = vadd.f32 %v2338_v37, %v2329_v46  ;;  %v5368_v14 = vpack.c.bf16 %v2528_v57, %v2524_v30  ;;  %v5242_v5 = vpack.c.bf16 %v2525_v43, %v2521_v48  ;;  %v2531_v37 = vld [vmem:[#allocation14 + $0x490] sm:$0xff]  ;;  %v2537_v46 = vld [vmem:[#allocation14 + $0x4c0] sm:$0xff]  ;;  %v2554_v44 = vld [vmem:[#allocation14 + $0x548] sm:$0xff] }
 0x3ab   : > { %v7899_v42 = vadd.f32 %v2364_v32, %v2331_v60  ;;  %v2352_v18 = vadd.f32 %v2351_v59, %v2330_v53  ;;  %v5370_v22 = vpack.c.bf16 %v2527_v31, %v2523_v33  ;;  %v5244_v55 = vpack.c.bf16 %v2534_v2, %v2530_v24  ;;  %v2535_v32 = vld [vmem:[#allocation14 + $0x4b0] sm:$0xff]  ;;  %v2540_v59 = vld [vmem:[#allocation14 + $0x4d8] sm:$0xff]  ;;  %v2541_v60 = vld [vmem:[#allocation14 + $0x4e0] sm:$0xff] }
 0x3ac   : > { %v2378_v54 = vadd.f32 %v2377_v3, %v2332_v6  ;;  %v2340_v25 = vrot.slane %v2339_v29, 4  ;;  %v5372_v51 = vpack.c.bf16 %v2536_v63, %v2532_v38  ;;  %v2544_v3 = vld [vmem:[#allocation14 + $0x4f8] sm:$0xff]  ;;  %v5246_v47 = vpack.c.bf16 %v2533_v13, %v2529_v45  ;;  %v2555_v30 = vld [vmem:[#allocation14 + $0x550] sm:$0xff]  ;;  %v2561_v33 = vld [vmem:[#allocation14 + $0x580] sm:$0xff] }
 0x3ad   : > { %v2353_v61 = vrot.slane %v2352_v18, 4  ;;  %v5374_v36 = vpack.c.bf16 %v2535_v32, %v2531_v37  ;;  %v5248_v53 = vpack.c.bf16 %v2542_v16, %v2538_v39  ;;  %v5376_v6 = vpack.c.bf16 %v2544_v3, %v2540_v59  ;;  %v2559_v57 = vld [vmem:[#allocation14 + $0x570] sm:$0xff]  ;;  %v2568_v48 = vld [vmem:[#allocation14 + $0x5b8] sm:$0xff]  ;;  %v2565_v31 = vld [vmem:[#allocation14 + $0x5a0] sm:$0xff] }
 0x3ae   : > { %v2379_v4 = vrot.slane %v2378_v54, 4  ;;  %v2341_v15 = vadd.f32 %v2340_v25, %v2339_v29  ;;  %v2539_v29 = vld [vmem:[#allocation14 + $0x4d0] sm:$0xff]  ;;  %v2550_v25 = vld [vmem:[#allocation14 + $0x528] sm:$0xff]  ;;  %v2569_v13 = vld [vmem:[#allocation14 + $0x5c0] sm:$0xff] }
 0x3af   : > { %v2354_v49 = vadd.f32 %v2353_v61, %v2352_v18  ;;  %v2543_v18 = vld [vmem:[#allocation14 + $0x4f0] sm:$0xff]  ;;  %v2548_v61 = vld [vmem:[#allocation14 + $0x518] sm:$0xff]  ;;  %v2570_v38 = vld [vmem:[#allocation14 + $0x5c8] sm:$0xff] }
 0x3b0   : > { %v2380_v35 = vadd.f32 %v2379_v4, %v2378_v54  ;;  %v2342_v12 = vrot.slane %v2341_v15, 2  ;;  %v2546_v54 = vld [vmem:[#allocation14 + $0x508] sm:$0xff]  ;;  %v2552_v4 = vld [vmem:[#allocation14 + $0x538] sm:$0xff]  ;;  %v2567_v2 = vld [vmem:[#allocation14 + $0x5b0] sm:$0xff] }
 0x3b1   : > { %v2355_v58 = vrot.slane %v2354_v49, 2  ;;  %v2574_v63 = vld [vmem:[#allocation14 + $0x5e8] sm:$0xff]  ;;  %v2571_v32 = vld [vmem:[#allocation14 + $0x5d0] sm:$0xff]  ;;  %v2580_v3 = vld [vmem:[#allocation14 + $0x618] sm:$0xff] }
 0x3b2   : > { %v2381_v11 = vrot.slane %v2380_v35, 2  ;;  %v2343_v9 = vadd.f32 %v2342_v12, %v2341_v15  ;;  %v5250_v15 = vpack.c.bf16 %v2541_v60, %v2537_v46  ;;  %v2549_v12 = vld [vmem:[#allocation14 + $0x520] sm:$0xff]  ;;  %v2575_v39 = vld [vmem:[#allocation14 + $0x5f0] sm:$0xff]  ;;  %v2578_v16 = vld [vmem:[#allocation14 + $0x608] sm:$0xff] }
 0x3b3   : > { %v2356_v34 = vadd.f32 %v2355_v58, %v2354_v49  ;;  %v5378_v49 = vpack.c.bf16 %v2543_v18, %v2539_v29  ;;  %v5252_v58 = vpack.c.bf16 %v2550_v25, %v2546_v54  ;;  %v2582_v59 = vld [vmem:[#allocation14 + $0x628] sm:$0xff]  ;;  %v5394_v46 = vpack.c.bf16 %v2575_v39, %v2571_v32  ;;  %v2577_v60 = vld [vmem:[#allocation14 + $0x600] sm:$0xff]  ;;  %v2579_v18 = vld [vmem:[#allocation14 + $0x610] sm:$0xff] }
 0x3b4   : > { %v2382_v50 = vadd.f32 %v2381_v11, %v2380_v35  ;;  %v2344_v27 = vrot.slane %v2343_v9, 1  ;;  %v2545_v35 = vld [vmem:[#allocation14 + $0x500] sm:$0xff]  ;;  %v5380_v11 = vpack.c.bf16 %v2552_v4, %v2548_v61  ;;  %v2583_v54 = vld [vmem:[#allocation14 + $0x630] sm:$0xff]  ;;  %v2586_v25 = vld [vmem:[#allocation14 + $0x648] sm:$0xff] }
 0x3b5   : > { %v2357_v41 = vrot.slane %v2356_v34, 1  ;;  %v5254_v17 = vpack.c.bf16 %v2549_v12, %v2545_v35  ;;  %v2590_v61 = vld [vmem:[#allocation14 + $0x668] sm:$0xff]  ;;  %v2588_v4 = vld [vmem:[#allocation14 + $0x658] sm:$0xff]  ;;  %v5398_v35 = vpack.c.bf16 %v2583_v54, %v2579_v18  ;;  %v2585_v12 = vld [vmem:[#allocation14 + $0x640] sm:$0xff] }
 0x3b6   : > { %v2383_v56 = vrot.slane %v2382_v50, 1  ;;  %v2345_v28 = vadd.f32 %v2344_v27, %v2343_v9  ;;  %v2547_v9 = vld [vmem:[#allocation14 + $0x510] sm:$0xff]  ;;  %v2556_v27 = vld [vmem:[#allocation14 + $0x558] sm:$0xff] }
 0x3b7   : > { %v2358_v7 = vadd.f32 %v2357_v41, %v2356_v34  ;;  %v2551_v34 = vld [vmem:[#allocation14 + $0x530] sm:$0xff]  ;;  %v2553_v41 = vld [vmem:[#allocation14 + $0x540] sm:$0xff]  ;;  %v5384_v1 = vpack.c.bf16 %v2560_v40, %v2556_v27  ;;  %v2598_v27 = vld [vmem:[#allocation14 + $0x6a8] sm:$0xff] }
 0x3b8   : > { %v2384_v62 = vadd.f32 %v2383_v56, %v2382_v50  ;;  %v2558_v50 = vld [vmem:[#allocation14 + $0x568] sm:$0xff]  ;;  %v5382_v26 = vpack.c.bf16 %v2551_v34, %v2547_v9  ;;  %v5258_v43 = vpack.c.bf16 %v2557_v21, %v2553_v41  ;;  %v2587_v34 = vld [vmem:[#allocation14 + $0x650] sm:$0xff]  ;;  %v2596_v40 = vld [vmem:[#allocation14 + $0x698] sm:$0xff] }
 0x3b9   : > { %2727 = vmatprep.mubr.f32.mxu0 %v2358_v7  ;;  %2869 = vmatprep.mubr.f32.mxu1 %v2358_v7  ;;  %v5256_v56 = vpack.c.bf16 %v2558_v50, %v2554_v44  ;;  %v2562_v7 = vld [vmem:[#allocation14 + $0x588] sm:$0xff]  ;;  %v2591_v44 = vld [vmem:[#allocation14 + $0x670] sm:$0xff]  ;;  %v2593_v21 = vld [vmem:[#allocation14 + $0x680] sm:$0xff] }
 0x3ba   : > { %2728 = vmatmul.mubr.f32.vlgmr.msra.gmra.mrb[22].mxu0 %v2345_v28  ;;  %2870 = vmatmul.mubr.f32.vlgmr.msra.gmra.mrb[22].mxu1 %v2345_v28  ;;  %v5386_v28 = vpack.c.bf16 %v2559_v57, %v2555_v30  ;;  %v2594_v50 = vld [vmem:[#allocation14 + $0x688] sm:$0xff]  ;;  %v5402_v41 = vpack.c.bf16 %v2591_v44, %v2587_v34  ;;  %v2595_v57 = vld [vmem:[#allocation14 + $0x690] sm:$0xff]  ;;  %v2629_v34 = vld [vmem:[#allocation14 + $0x7a0] sm:$0xff] }
 0x3bb   : > { %5239 = vmatpush1.bf16.msra.mxu0 %v5238_v23  ;;  %5367 = vmatpush1.bf16.msra.mxu1 %v5366_v10  ;;  %v2566_v23 = vld [vmem:[#allocation14 + $0x5a8] sm:$0xff]  ;;  %v2564_v10 = vld [vmem:[#allocation14 + $0x598] sm:$0xff] }
 0x3bc   : > { %2798 = vmatprep.mubr.f32.mxu0 %v2384_v62  ;;  %2940 = vmatprep.mubr.f32.mxu1 %v2384_v62  ;;  %v5260_v24 = vpack.c.bf16 %v2566_v23, %v2562_v7  ;;  %v2572_v62 = vld [vmem:[#allocation14 + $0x5d8] sm:$0xff]  ;;  %v2599_v7 = vld [vmem:[#allocation14 + $0x6b0] sm:$0xff]  ;;  %v2602_v23 = vld [vmem:[#allocation14 + $0x6c8] sm:$0xff] }
 0x3bd   : > { %5241 = vmatprep.subr.bf16.mxu0 %v5240_v0  ;;  %5369 = vmatprep.subr.bf16.mxu1 %v5368_v14  ;;  %v5388_v0 = vpack.c.bf16 %v2568_v48, %v2564_v10  ;;  %v2563_v14 = vld [vmem:[#allocation14 + $0x590] sm:$0xff]  ;;  %v2606_v10 = vld [vmem:[#allocation14 + $0x6e8] sm:$0xff]  ;;  %v2604_v48 = vld [vmem:[#allocation14 + $0x6d8] sm:$0xff] }
 0x3be   : > { %v5390_v45 = vpack.c.bf16 %v2567_v2, %v2563_v14  ;;  %v2603_v2 = vld [vmem:[#allocation14 + $0x6d0] sm:$0xff] }
 0x3bf   : > { %5243 = vmatpush1.bf16.msra.mxu0 %v5242_v5  ;;  %5371 = vmatpush1.bf16.msra.mxu1 %v5370_v22  ;;  %v2576_v5 = vld [vmem:[#allocation14 + $0x5f8] sm:$0xff]  ;;  %v5262_v22 = vpack.c.bf16 %v2565_v31, %v2561_v33  ;;  %v5406_v33 = vpack.c.bf16 %v2599_v7, %v2595_v57  ;;  %v2601_v31 = vld [vmem:[#allocation14 + $0x6c0] sm:$0xff] }
 0x3c0   : > { %5245 = vmatprep.subr.bf16.mxu0 %v5244_v55  ;;  %5373 = vmatprep.subr.bf16.mxu1 %v5372_v51  ;;  %v2573_v55 = vld [vmem:[#allocation14 + $0x5e0] sm:$0xff]  ;;  %v5264_v51 = vpack.c.bf16 %v2574_v63, %v2570_v38  ;;  %v5392_v37 = vpack.c.bf16 %v2576_v5, %v2572_v62  ;;  %v2607_v38 = vld [vmem:[#allocation14 + $0x6f0] sm:$0xff]  ;;  %v2610_v63 = vld [vmem:[#allocation14 + $0x708] sm:$0xff] }
 0x3c1   : > { %v2614_v62 = vld [vmem:[#allocation14 + $0x728] sm:$0xff]  ;;  %v2612_v5 = vld [vmem:[#allocation14 + $0x718] sm:$0xff]  ;;  %v2637_v57 = vld [vmem:[#allocation14 + $0x7e0] sm:$0xff] }
 0x3c2   : > { %v5284_v32 = vpack.c.bf16 %v2614_v62, %v2610_v63 }
 0x3c3   : > { %5247 = vmatpush1.bf16.msra.mxu0 %v5246_v47  ;;  %5375 = vmatpush1.bf16.msra.mxu1 %v5374_v36  ;;  %v2584_v47 = vld [vmem:[#allocation14 + $0x638] sm:$0xff]  ;;  %v5266_v36 = vpack.c.bf16 %v2573_v55, %v2569_v13  ;;  %v5410_v13 = vpack.c.bf16 %v2607_v38, %v2603_v2  ;;  %v2609_v55 = vld [vmem:[#allocation14 + $0x700] sm:$0xff] }
 0x3c4   : > { %5249 = vmatprep.subr.bf16.mxu0 %v5248_v53  ;;  %5377 = vmatprep.subr.bf16.mxu1 %v5376_v6  ;;  %v2581_v53 = vld [vmem:[#allocation14 + $0x620] sm:$0xff]  ;;  %v5268_v6 = vpack.c.bf16 %v2582_v59, %v2578_v16  ;;  %v5396_v29 = vpack.c.bf16 %v2584_v47, %v2580_v3  ;;  %v2611_v16 = vld [vmem:[#allocation14 + $0x710] sm:$0xff]  ;;  %v2618_v3 = vld [vmem:[#allocation14 + $0x748] sm:$0xff] }
 0x3c5   : > { %v2615_v59 = vld [vmem:[#allocation14 + $0x730] sm:$0xff]  ;;  %v2622_v47 = vld [vmem:[#allocation14 + $0x768] sm:$0xff] }
 0x3c6   : > { %v5288_v54 = vpack.c.bf16 %v2622_v47, %v2618_v3  ;;  %v2951_v2 = vld [vmem:[#allocation17] sm:$0xff] }
 0x3c7   : > { %5251 = vmatpush1.bf16.msra.mxu0 %v5250_v15  ;;  %5379 = vmatpush1.bf16.msra.mxu1 %v5378_v49  ;;  %v2592_v15 = vld [vmem:[#allocation14 + $0x678] sm:$0xff]  ;;  %v5270_v49 = vpack.c.bf16 %v2581_v53, %v2577_v60  ;;  %v5414_v53 = vpack.c.bf16 %v2615_v59, %v2611_v16  ;;  %v2959_v38 = vld [vmem:[#allocation17 + $0x40] sm:$0xff] }
 0x3c8   : > { %5253 = vmatprep.subr.bf16.mxu0 %v5252_v58  ;;  %5381 = vmatprep.subr.bf16.mxu1 %v5380_v11  ;;  %v2589_v58 = vld [vmem:[#allocation14 + $0x660] sm:$0xff]  ;;  %v5272_v11 = vpack.c.bf16 %v2590_v61, %v2586_v25  ;;  %v5400_v9 = vpack.c.bf16 %v2592_v15, %v2588_v4  ;;  %v2619_v61 = vld [vmem:[#allocation14 + $0x750] sm:$0xff]  ;;  %v2626_v15 = vld [vmem:[#allocation14 + $0x788] sm:$0xff] }
 0x3c9   : > { %v2623_v4 = vld [vmem:[#allocation14 + $0x770] sm:$0xff]  ;;  %v2967_v16 = vld [vmem:[#allocation17 + $0x80] sm:$0xff] }
 0x3ca   : > { %v2975_v59 = vld [vmem:[#allocation17 + $0xc0] sm:$0xff] }
 0x3cb   : > { %5255 = vmatpush1.bf16.msra.mxu0 %v5254_v17  ;;  %5383 = vmatpush1.bf16.msra.mxu1 %v5382_v26  ;;  %v2600_v17 = vld [vmem:[#allocation14 + $0x6b8] sm:$0xff]  ;;  %v5274_v26 = vpack.c.bf16 %v2589_v58, %v2585_v12 }
 0x3cc   : > { %5257 = vmatprep.subr.bf16.mxu0 %v5256_v56  ;;  %5385 = vmatprep.subr.bf16.mxu1 %v5384_v1  ;;  %v2597_v56 = vld [vmem:[#allocation14 + $0x6a0] sm:$0xff]  ;;  %v5276_v1 = vpack.c.bf16 %v2598_v27, %v2594_v50  ;;  %v5404_v30 = vpack.c.bf16 %v2600_v17, %v2596_v40  ;;  %v2632_v12 = vld [vmem:[#allocation14 + $0x7b8] sm:$0xff]  ;;  %v2627_v27 = vld [vmem:[#allocation14 + $0x790] sm:$0xff] }
 0x3cd   : > { %v2631_v40 = vld [vmem:[#allocation14 + $0x7b0] sm:$0xff]  ;;  %v2634_v17 = vld [vmem:[#allocation14 + $0x7c8] sm:$0xff] }
 0x3cf   : > { %5259 = vmatpush1.bf16.msra.mxu0 %v5258_v43  ;;  %5387 = vmatpush1.bf16.msra.mxu1 %v5386_v28  ;;  %v2608_v43 = vld [vmem:[#allocation14 + $0x6f8] sm:$0xff]  ;;  %v5278_v28 = vpack.c.bf16 %v2597_v56, %v2593_v21 }
 0x3d0   : > { %5261 = vmatprep.subr.bf16.mxu0 %v5260_v24  ;;  %5389 = vmatprep.subr.bf16.mxu1 %v5388_v0  ;;  %v2605_v24 = vld [vmem:[#allocation14 + $0x6e0] sm:$0xff]  ;;  %v5280_v0 = vpack.c.bf16 %v2606_v10, %v2602_v23  ;;  %v5408_v14 = vpack.c.bf16 %v2608_v43, %v2604_v48  ;;  %v2640_v21 = vld [vmem:[#allocation14 + $0x7f8] sm:$0xff]  ;;  %v2635_v48 = vld [vmem:[#allocation14 + $0x7d0] sm:$0xff] }
 0x3d1   : > { %v2639_v43 = vld [vmem:[#allocation14 + $0x7f0] sm:$0xff] }
 0x3d3   : > { %5263 = vmatpush1.bf16.msra.mxu0 %v5262_v22  ;;  %5391 = vmatpush1.bf16.msra.mxu1 %v5390_v45  ;;  %v2616_v22 = vld [vmem:[#allocation14 + $0x738] sm:$0xff]  ;;  %v5282_v45 = vpack.c.bf16 %v2605_v24, %v2601_v31 }
 0x3d4   : > { %5265 = vmatprep.subr.bf16.mxu0 %v5264_v51  ;;  %5393 = vmatprep.subr.bf16.mxu1 %v5392_v37  ;;  %v2613_v51 = vld [vmem:[#allocation14 + $0x720] sm:$0xff]  ;;  %v2366_v37 = vrot.slane %v7899_v42, 4  ;;  %v5412_v39 = vpack.c.bf16 %v2616_v22, %v2612_v5  ;;  %v2953_v22 = vld [vmem:[#allocation17 + $0x10] sm:$0xff] }
 0x3d5   : > { %v5286_v60 = vpack.c.bf16 %v2613_v51, %v2609_v55  ;;  %v2954_v31 = vld [vmem:[#allocation17 + $0x18] sm:$0xff]  ;;  %v2976_v55 = vld [vmem:[#allocation17 + $0xc8] sm:$0xff] }
 0x3d6   : > { %v2367_v18 = vadd.f32 %v2366_v37, %v7899_v42  ;;  %v2962_v24 = vld [vmem:[#allocation17 + $0x58] sm:$0xff] }
 0x3d7   : > { %5267 = vmatpush1.bf16.msra.mxu0 %v5266_v36  ;;  %5395 = vmatpush1.bf16.msra.mxu1 %v5394_v46  ;;  %v2620_v36 = vld [vmem:[#allocation14 + $0x758] sm:$0xff]  ;;  %v5556_v5 = vpack.c.bf16 %v2962_v24, %v2954_v31  ;;  %v3032_v31 = vld [vmem:[#allocation17 + $0x288] sm:$0xff] }
 0x3d8   : > { %5269 = vmatprep.subr.bf16.mxu0 %v5268_v6  ;;  %5397 = vmatprep.subr.bf16.mxu1 %v5396_v29  ;;  %v2624_v46 = vld [vmem:[#allocation14 + $0x778] sm:$0xff]  ;;  %v2617_v6 = vld [vmem:[#allocation14 + $0x740] sm:$0xff]  ;;  %v2368_v44 = vrot.slane %v2367_v18, 2  ;;  %v3040_v24 = vld [vmem:[#allocation17 + $0x2c8] sm:$0xff] }
 0x3d9   : > { %v2621_v29 = vld [vmem:[#allocation14 + $0x760] sm:$0xff]  ;;  %v5416_v25 = vpack.c.bf16 %v2624_v46, %v2620_v36  ;;  %v2969_v46 = vld [vmem:[#allocation17 + $0x90] sm:$0xff] }
 0x3da   : > { %v5290_v58 = vpack.c.bf16 %v2621_v29, %v2617_v6  ;;  %v2369_v7 = vadd.f32 %v2368_v44, %v2367_v18  ;;  %v2970_v51 = vld [vmem:[#allocation17 + $0x98] sm:$0xff]  ;;  %v2992_v6 = vld [vmem:[#allocation17 + $0x148] sm:$0xff] }
 0x3db   : > { %5271 = vmatpush1.bf16.msra.mxu0 %v5270_v49  ;;  %5399 = vmatpush1.bf16.msra.mxu1 %v5398_v35  ;;  %v2630_v49 = vld [vmem:[#allocation14 + $0x7a8] sm:$0xff]  ;;  %v2628_v35 = vld [vmem:[#allocation14 + $0x798] sm:$0xff] }
 0x3dc   : > { %5273 = vmatprep.subr.bf16.mxu0 %v5272_v11  ;;  %5401 = vmatprep.subr.bf16.mxu1 %v5400_v9  ;;  %v5418_v11 = vpack.c.bf16 %v2623_v4, %v2619_v61  ;;  %v2625_v9 = vld [vmem:[#allocation14 + $0x780] sm:$0xff]  ;;  %v5292_v42 = vpack.c.bf16 %v2630_v49, %v2626_v15  ;;  %v5420_v50 = vpack.c.bf16 %v2632_v12, %v2628_v35  ;;  %v2370_v63 = vrot.slane %v2369_v7, 1  ;;  %v2985_v35 = vld [vmem:[#allocation17 + $0x110] sm:$0xff] }
 0x3dd   : > { %v5294_v56 = vpack.c.bf16 %v2629_v34, %v2625_v9  ;;  %v2978_v37 = vld [vmem:[#allocation17 + $0xd8] sm:$0xff]  ;;  %v2983_v61 = vld [vmem:[#allocation17 + $0x100] sm:$0xff]  ;;  %v2993_v12 = vld [vmem:[#allocation17 + $0x150] sm:$0xff] }
 0x3de   : > { %v2371_v3 = vadd.f32 %v2370_v63, %v2369_v7  ;;  %v5560_v36 = vpack.c.bf16 %v2978_v37, %v2970_v51  ;;  %v2986_v29 = vld [vmem:[#allocation17 + $0x118] sm:$0xff]  ;;  %v2991_v4 = vld [vmem:[#allocation17 + $0x140] sm:$0xff]  ;;  %v3056_v51 = vld [vmem:[#allocation17 + $0x348] sm:$0xff] }
 0x3df   : > { %5275 = vmatpush1.bf16.msra.mxu0 %v5274_v26  ;;  %5403 = vmatpush1.bf16.msra.mxu1 %v5402_v41  ;;  %v2638_v26 = vld [vmem:[#allocation14 + $0x7e8] sm:$0xff]  ;;  %v2636_v41 = vld [vmem:[#allocation14 + $0x7d8] sm:$0xff]  ;;  %v5438_v44 = vpack.c.bf16 %v2991_v4, %v2983_v61 }
 0x3e0   : > { %5277 = vmatprep.subr.bf16.mxu0 %v5276_v1  ;;  %5405 = vmatprep.subr.bf16.mxu1 %v5404_v30  ;;  %v5422_v1 = vpack.c.bf16 %v2631_v40, %v2627_v27  ;;  %v2633_v30 = vld [vmem:[#allocation14 + $0x7c0] sm:$0xff]  ;;  %v5296_v23 = vpack.c.bf16 %v2638_v26, %v2634_v17  ;;  %v5424_v10 = vpack.c.bf16 %v2640_v21, %v2636_v41  ;;  %v3001_v26 = vld [vmem:[#allocation17 + $0x190] sm:$0xff]  ;;  %v3016_v21 = vld [vmem:[#allocation17 + $0x208] sm:$0xff] }
 0x3e1   : > { %v2994_v18 = vld [vmem:[#allocation17 + $0x158] sm:$0xff]  ;;  %v3007_v27 = vld [vmem:[#allocation17 + $0x1c0] sm:$0xff]  ;;  %v3009_v41 = vld [vmem:[#allocation17 + $0x1d0] sm:$0xff] }
 0x3e2   : > { %v5564_v49 = vpack.c.bf16 %v2994_v18, %v2986_v29  ;;  %v3002_v9 = vld [vmem:[#allocation17 + $0x198] sm:$0xff]  ;;  %v5570_v7 = vpack.c.bf16 %v3009_v41, %v3001_v26  ;;  %v3031_v63 = vld [vmem:[#allocation17 + $0x280] sm:$0xff]  ;;  %v3081_v26 = vld [vmem:[#allocation17 + $0x410] sm:$0xff] }
 0x3e3   : > { %5279 = vmatpush1.bf16.msra.mxu0 %v5278_v28  ;;  %5407 = vmatpush1.bf16.msra.mxu1 %v5406_v33  ;;  %v2952_v28 = vld [vmem:[#allocation17 + $0x8] sm:$0xff]  ;;  %v3010_v34 = vld [vmem:[#allocation17 + $0x1d8] sm:$0xff]  ;;  %v3063_v61 = vld [vmem:[#allocation17 + $0x380] sm:$0xff] }
 0x3e4   : > { %5281 = vmatprep.subr.bf16.mxu0 %v5280_v0  ;;  %5409 = vmatprep.subr.bf16.mxu1 %v5408_v14  ;;  %v2960_v33 = vld [vmem:[#allocation17 + $0x48] sm:$0xff]  ;;  %v5298_v0 = vpack.c.bf16 %v2637_v57, %v2633_v30  ;;  %v5426_v14 = vpack.c.bf16 %v2639_v43, %v2635_v48  ;;  %v5568_v17 = vpack.c.bf16 %v3010_v34, %v3002_v9  ;;  %v3026_v30 = vld [vmem:[#allocation17 + $0x258] sm:$0xff]  ;;  %v3071_v4 = vld [vmem:[#allocation17 + $0x3c0] sm:$0xff] }
 0x3e5   : > { %v5428_v62 = vpack.c.bf16 %v2960_v33, %v2952_v28  ;;  %v3017_v28 = vld [vmem:[#allocation17 + $0x210] sm:$0xff]  ;;  %v3050_v37 = vld [vmem:[#allocation17 + $0x318] sm:$0xff] }
 0x3e6   : > { %v3025_v33 = vld [vmem:[#allocation17 + $0x250] sm:$0xff]  ;;  %v3066_v29 = vld [vmem:[#allocation17 + $0x398] sm:$0xff] }
 0x3e7   : > { %5283 = vmatpush1.bf16.msra.mxu0 %v5282_v45  ;;  %5411 = vmatpush1.bf16.msra.mxu1 %v5410_v13  ;;  %v2961_v45 = vld [vmem:[#allocation17 + $0x50] sm:$0xff]  ;;  %v2968_v13 = vld [vmem:[#allocation17 + $0x88] sm:$0xff]  ;;  %v3074_v18 = vld [vmem:[#allocation17 + $0x3d8] sm:$0xff] }
 0x3e8   : > { %5285 = vmatprep.subr.bf16.mxu0 %v5284_v32  ;;  %5413 = vmatprep.subr.bf16.mxu1 %v5412_v39  ;;  %v5430_v32 = vpack.c.bf16 %v2959_v38, %v2951_v2  ;;  %v5558_v39 = vpack.c.bf16 %v2961_v45, %v2953_v22  ;;  %v5432_v47 = vpack.c.bf16 %v2976_v55, %v2968_v13  ;;  %v3033_v45 = vld [vmem:[#allocation17 + $0x290] sm:$0xff]  ;;  %v3048_v55 = vld [vmem:[#allocation17 + $0x308] sm:$0xff]  ;;  %v3082_v9 = vld [vmem:[#allocation17 + $0x418] sm:$0xff] }
 0x3e9   : > { %v5574_v38 = vpack.c.bf16 %v3025_v33, %v3017_v28  ;;  %v3041_v13 = vld [vmem:[#allocation17 + $0x2d0] sm:$0xff]  ;;  %v3090_v34 = vld [vmem:[#allocation17 + $0x458] sm:$0xff] }
 0x3ea   : > { %v3089_v41 = vld [vmem:[#allocation17 + $0x450] sm:$0xff] }
 0x3eb   : > { %5287 = vmatpush1.bf16.msra.mxu0 %v5286_v60  ;;  %5415 = vmatpush1.bf16.msra.mxu1 %v5414_v53  ;;  %v2977_v60 = vld [vmem:[#allocation17 + $0xd0] sm:$0xff]  ;;  %v2984_v53 = vld [vmem:[#allocation17 + $0x108] sm:$0xff] }
 0x3ec   : > { %5289 = vmatprep.subr.bf16.mxu0 %v5288_v54  ;;  %5417 = vmatprep.subr.bf16.mxu1 %v5416_v25  ;;  %v5434_v54 = vpack.c.bf16 %v2975_v59, %v2967_v16  ;;  %v5562_v25 = vpack.c.bf16 %v2977_v60, %v2969_v46  ;;  %v5436_v15 = vpack.c.bf16 %v2992_v6, %v2984_v53  ;;  %v3047_v59 = vld [vmem:[#allocation17 + $0x300] sm:$0xff]  ;;  %v3049_v46 = vld [vmem:[#allocation17 + $0x310] sm:$0xff]  ;;  %v3064_v53 = vld [vmem:[#allocation17 + $0x388] sm:$0xff] }
 0x3ed   : > { %v5578_v16 = vpack.c.bf16 %v3041_v13, %v3033_v45  ;;  %v3057_v60 = vld [vmem:[#allocation17 + $0x350] sm:$0xff]  ;;  %v3072_v6 = vld [vmem:[#allocation17 + $0x3c8] sm:$0xff] }
 0x3ee   : > { %v3097_v28 = vld [vmem:[#allocation17 + $0x490] sm:$0xff] }
 0x3ef   : > { %5291 = vmatpush1.bf16.msra.mxu0 %v5290_v58  ;;  %5419 = vmatpush1.bf16.msra.mxu1 %v5418_v11  ;;  %v3000_v58 = vld [vmem:[#allocation17 + $0x188] sm:$0xff]  ;;  %v3105_v33 = vld [vmem:[#allocation17 + $0x4d0] sm:$0xff] }
 0x3f0   : > { %5293 = vmatprep.subr.bf16.mxu0 %v5292_v42  ;;  %5421 = vmatprep.subr.bf16.mxu1 %v5420_v50  ;;  %v3008_v11 = vld [vmem:[#allocation17 + $0x1c8] sm:$0xff]  ;;  %v5566_v42 = vpack.c.bf16 %v2993_v12, %v2985_v35  ;;  %v2999_v50 = vld [vmem:[#allocation17 + $0x180] sm:$0xff]  ;;  %v3065_v35 = vld [vmem:[#allocation17 + $0x390] sm:$0xff] }
 0x3f1   : > { %v5440_v40 = vpack.c.bf16 %v3008_v11, %v3000_v58  ;;  %v5442_v57 = vpack.c.bf16 %v3007_v27, %v2999_v50  ;;  %v3073_v12 = vld [vmem:[#allocation17 + $0x3d0] sm:$0xff]  ;;  %v3080_v58 = vld [vmem:[#allocation17 + $0x408] sm:$0xff]  ;;  %v3079_v50 = vld [vmem:[#allocation17 + $0x400] sm:$0xff] }
 0x3f2   : > { %v3088_v11 = vld [vmem:[#allocation17 + $0x448] sm:$0xff]  ;;  %v3087_v27 = vld [vmem:[#allocation17 + $0x440] sm:$0xff]  ;;  %v3113_v45 = vld [vmem:[#allocation17 + $0x510] sm:$0xff] }
 0x3f3   : > { %5295 = vmatpush1.bf16.msra.mxu0 %v5294_v56  ;;  %5423 = vmatpush1.bf16.msra.mxu1 %v5422_v1  ;;  %v3024_v56 = vld [vmem:[#allocation17 + $0x248] sm:$0xff]  ;;  %v3018_v1 = vld [vmem:[#allocation17 + $0x218] sm:$0xff]  ;;  %v3121_v13 = vld [vmem:[#allocation17 + $0x550] sm:$0xff] }
 0x3f4   : > { %5297 = vmatprep.subr.bf16.mxu0 %v5296_v23  ;;  %5425 = vmatprep.subr.bf16.mxu1 %v5424_v10  ;;  %v3015_v23 = vld [vmem:[#allocation17 + $0x200] sm:$0xff]  ;;  %v5444_v48 = vpack.c.bf16 %v3024_v56, %v3016_v21  ;;  %v5572_v43 = vpack.c.bf16 %v3026_v30, %v3018_v1  ;;  %v3096_v21 = vld [vmem:[#allocation17 + $0x488] sm:$0xff]  ;;  %v3098_v1 = vld [vmem:[#allocation17 + $0x498] sm:$0xff] }
 0x3f5   : > { %v3023_v10 = vld [vmem:[#allocation17 + $0x240] sm:$0xff]  ;;  %v3104_v56 = vld [vmem:[#allocation17 + $0x4c8] sm:$0xff]  ;;  %v3106_v30 = vld [vmem:[#allocation17 + $0x4d8] sm:$0xff] }
 0x3f6   : > { %v5446_v2 = vpack.c.bf16 %v3023_v10, %v3015_v23  ;;  %v3095_v23 = vld [vmem:[#allocation17 + $0x480] sm:$0xff] }
 0x3f7   : > { %5299 = vmatpush1.bf16.msra.mxu0 %v5298_v0  ;;  %5427 = vmatpush1.bf16.msra.mxu1 %v5426_v14  ;;  %v3034_v0 = vld [vmem:[#allocation17 + $0x298] sm:$0xff]  ;;  %v3103_v10 = vld [vmem:[#allocation17 + $0x4c0] sm:$0xff] }
 0x3f8   : > { %5429 = vmatprep.subr.bf16.mxu0 %v5428_v62  ;;  %5557 = vmatprep.subr.bf16.mxu1 %v5556_v5  ;;  %v3042_v14 = vld [vmem:[#allocation17 + $0x2d8] sm:$0xff]  ;;  %v3039_v62 = vld [vmem:[#allocation17 + $0x2c0] sm:$0xff]  ;;  %v5448_v5 = vpack.c.bf16 %v3040_v24, %v3032_v31  ;;  %v3112_v31 = vld [vmem:[#allocation17 + $0x508] sm:$0xff] }
 0x3f9   : > { %v5576_v22 = vpack.c.bf16 %v3042_v14, %v3034_v0  ;;  %v3120_v24 = vld [vmem:[#allocation17 + $0x548] sm:$0xff]  ;;  %v3114_v0 = vld [vmem:[#allocation17 + $0x518] sm:$0xff] }
 0x3fa   : > { %2799 = vmatmul.mubr.f32.vlgmr.msra.gmra.mrb[22].mxu0 %v2371_v3  ;;  %2941 = vmatmul.mubr.f32.vlgmr.msra.gmra.mrb[22].mxu1 %v2371_v3  ;;  %v3055_v3 = vld [vmem:[#allocation17 + $0x340] sm:$0xff]  ;;  %v3122_v14 = vld [vmem:[#allocation17 + $0x558] sm:$0xff] }
 0x3fb   : > { %5431 = vmatpush1.bf16.msra.mxu0 %v5430_v32  ;;  %5559 = vmatpush1.bf16.msra.mxu1 %v5558_v39  ;;  %v3058_v32 = vld [vmem:[#allocation17 + $0x358] sm:$0xff]  ;;  %v5450_v39 = vpack.c.bf16 %v3039_v62, %v3031_v63  ;;  %v3111_v63 = vld [vmem:[#allocation17 + $0x500] sm:$0xff] }
 0x3fc   : > { %5433 = vmatprep.subr.bf16.mxu0 %v5432_v47  ;;  %5561 = vmatprep.subr.bf16.mxu1 %v5560_v36  ;;  %v5452_v47 = vpack.c.bf16 %v3056_v51, %v3048_v55  ;;  %v5580_v36 = vpack.c.bf16 %v3058_v32, %v3050_v37  ;;  %v3119_v62 = vld [vmem:[#allocation17 + $0x540] sm:$0xff]  ;;  %v3128_v55 = vld [vmem:[#allocation17 + $0x588] sm:$0xff]  ;;  %v3130_v37 = vld [vmem:[#allocation17 + $0x598] sm:$0xff] }
 0x3fd   : > { %v3136_v51 = vld [vmem:[#allocation17 + $0x5c8] sm:$0xff]  ;;  %v3138_v32 = vld [vmem:[#allocation17 + $0x5d8] sm:$0xff] }
 0x3ff   : > { %5435 = vmatpush1.bf16.msra.mxu0 %v5434_v54  ;;  %5563 = vmatpush1.bf16.msra.mxu1 %v5562_v25  ;;  %v5454_v54 = vpack.c.bf16 %v3055_v3, %v3047_v59  ;;  %v5582_v25 = vpack.c.bf16 %v3057_v60, %v3049_v46  ;;  %v3127_v59 = vld [vmem:[#allocation17 + $0x580] sm:$0xff]  ;;  %v3129_v46 = vld [vmem:[#allocation17 + $0x590] sm:$0xff] }
 0x400   : > { %5437 = vmatprep.subr.bf16.mxu0 %v5436_v15  ;;  %5565 = vmatprep.subr.bf16.mxu1 %v5564_v49  ;;  %v5456_v15 = vpack.c.bf16 %v3072_v6, %v3064_v53  ;;  %v5584_v49 = vpack.c.bf16 %v3074_v18, %v3066_v29  ;;  %v3135_v3 = vld [vmem:[#allocation17 + $0x5c0] sm:$0xff]  ;;  %v3137_v60 = vld [vmem:[#allocation17 + $0x5d0] sm:$0xff]  ;;  %v3144_v53 = vld [vmem:[#allocation17 + $0x608] sm:$0xff] }
 0x401   : > { %v3152_v6 = vld [vmem:[#allocation17 + $0x648] sm:$0xff]  ;;  %v3146_v29 = vld [vmem:[#allocation17 + $0x618] sm:$0xff] }
 0x402   : > { %v3154_v18 = vld [vmem:[#allocation17 + $0x658] sm:$0xff] }
 0x403   : > { %5439 = vmatpush1.bf16.msra.mxu0 %v5438_v44  ;;  %5567 = vmatpush1.bf16.msra.mxu1 %v5566_v42  ;;  %v5458_v44 = vpack.c.bf16 %v3071_v4, %v3063_v61  ;;  %v5586_v42 = vpack.c.bf16 %v3073_v12, %v3065_v35  ;;  %v3143_v61 = vld [vmem:[#allocation17 + $0x600] sm:$0xff]  ;;  %v3145_v35 = vld [vmem:[#allocation17 + $0x610] sm:$0xff] }
 0x404   : > { %5441 = vmatprep.subr.bf16.mxu0 %v5440_v40  ;;  %5569 = vmatprep.subr.bf16.mxu1 %v5568_v17  ;;  %v5460_v40 = vpack.c.bf16 %v3088_v11, %v3080_v58  ;;  %v5588_v17 = vpack.c.bf16 %v3090_v34, %v3082_v9  ;;  %v3151_v4 = vld [vmem:[#allocation17 + $0x640] sm:$0xff]  ;;  %v3153_v12 = vld [vmem:[#allocation17 + $0x650] sm:$0xff]  ;;  %v3160_v58 = vld [vmem:[#allocation17 + $0x688] sm:$0xff] }
 0x405   : > { %v3168_v11 = vld [vmem:[#allocation17 + $0x6c8] sm:$0xff]  ;;  %v3162_v9 = vld [vmem:[#allocation17 + $0x698] sm:$0xff] }
 0x406   : > { %v3170_v34 = vld [vmem:[#allocation17 + $0x6d8] sm:$0xff] }
 0x407   : > { %5443 = vmatpush1.bf16.msra.mxu0 %v5442_v57  ;;  %5571 = vmatpush1.bf16.msra.mxu1 %v5570_v7  ;;  %v5462_v57 = vpack.c.bf16 %v3087_v27, %v3079_v50  ;;  %v5590_v7 = vpack.c.bf16 %v3089_v41, %v3081_v26  ;;  %v3159_v50 = vld [vmem:[#allocation17 + $0x680] sm:$0xff]  ;;  %v3161_v26 = vld [vmem:[#allocation17 + $0x690] sm:$0xff] }
 0x408   : > { %5445 = vmatprep.subr.bf16.mxu0 %v5444_v48  ;;  %5573 = vmatprep.subr.bf16.mxu1 %v5572_v43  ;;  %v5464_v48 = vpack.c.bf16 %v3104_v56, %v3096_v21  ;;  %v5592_v43 = vpack.c.bf16 %v3106_v30, %v3098_v1  ;;  %v3167_v27 = vld [vmem:[#allocation17 + $0x6c0] sm:$0xff]  ;;  %v3169_v41 = vld [vmem:[#allocation17 + $0x6d0] sm:$0xff]  ;;  %v3176_v21 = vld [vmem:[#allocation17 + $0x708] sm:$0xff] }
 0x409   : > { %v3184_v56 = vld [vmem:[#allocation17 + $0x748] sm:$0xff]  ;;  %v3178_v1 = vld [vmem:[#allocation17 + $0x718] sm:$0xff] }
 0x40a   : > { %v3186_v30 = vld [vmem:[#allocation17 + $0x758] sm:$0xff] }
 0x40b   : > { %5447 = vmatpush1.bf16.msra.mxu0 %v5446_v2  ;;  %5575 = vmatpush1.bf16.msra.mxu1 %v5574_v38  ;;  %v5466_v2 = vpack.c.bf16 %v3103_v10, %v3095_v23  ;;  %v5594_v38 = vpack.c.bf16 %v3105_v33, %v3097_v28  ;;  %v3175_v23 = vld [vmem:[#allocation17 + $0x700] sm:$0xff]  ;;  %v5484_v10 = vpack.c.bf16 %v3184_v56, %v3176_v21  ;;  %v3177_v28 = vld [vmem:[#allocation17 + $0x710] sm:$0xff] }
 0x40c   : > { %5449 = vmatprep.subr.bf16.mxu0 %v5448_v5  ;;  %5577 = vmatprep.subr.bf16.mxu1 %v5576_v22  ;;  %v5468_v5 = vpack.c.bf16 %v3120_v24, %v3112_v31  ;;  %v5596_v22 = vpack.c.bf16 %v3122_v14, %v3114_v0  ;;  %v3185_v33 = vld [vmem:[#allocation17 + $0x750] sm:$0xff]  ;;  %v3192_v0 = vld [vmem:[#allocation17 + $0x788] sm:$0xff] }
 0x40d   : > { %v5614_v24 = vpack.c.bf16 %v3185_v33, %v3177_v28  ;;  %v3200_v14 = vld [vmem:[#allocation17 + $0x7c8] sm:$0xff] }
 0x40f   : > { %5451 = vmatpush1.bf16.msra.mxu0 %v5450_v39  ;;  %5579 = vmatpush1.bf16.msra.mxu1 %v5578_v16  ;;  %v5470_v39 = vpack.c.bf16 %v3119_v62, %v3111_v63  ;;  %v5598_v16 = vpack.c.bf16 %v3121_v13, %v3113_v45  ;;  %v3202_v63 = vld [vmem:[#allocation17 + $0x7d8] sm:$0xff]  ;;  %v3191_v62 = vld [vmem:[#allocation17 + $0x780] sm:$0xff]  ;;  %v3193_v13 = vld [vmem:[#allocation17 + $0x790] sm:$0xff] }
 0x410   : > { %5453 = vmatprep.subr.bf16.mxu0 %v5452_v47  ;;  %5581 = vmatprep.subr.bf16.mxu1 %v5580_v36  ;;  %v5472_v47 = vpack.c.bf16 %v3136_v51, %v3128_v55  ;;  %v5600_v36 = vpack.c.bf16 %v3138_v32, %v3130_v37  ;;  %v3201_v55 = vld [vmem:[#allocation17 + $0x7d0] sm:$0xff]  ;;  %v3208_v51 = vld [vmem:[#allocation17 + $0x808] sm:$0xff] }
 0x411   : > { %v5618_v37 = vpack.c.bf16 %v3201_v55, %v3193_v13  ;;  %v3216_v32 = vld [vmem:[#allocation17 + $0x848] sm:$0xff]  ;;  %v3257_v55 = vld [vmem:[#allocation17 + $0x990] sm:$0xff] }
 0x413   : > { %5455 = vmatpush1.bf16.msra.mxu0 %v5454_v54  ;;  %5583 = vmatpush1.bf16.msra.mxu1 %v5582_v25  ;;  %v5474_v54 = vpack.c.bf16 %v3135_v3, %v3127_v59  ;;  %v5602_v25 = vpack.c.bf16 %v3137_v60, %v3129_v46  ;;  %v5492_v59 = vpack.c.bf16 %v3216_v32, %v3208_v51  ;;  %v3265_v51 = vld [vmem:[#allocation17 + $0x9d0] sm:$0xff]  ;;  %v3280_v32 = vld [vmem:[#allocation17 + $0xa48] sm:$0xff] }
 0x414   : > { %5457 = vmatprep.subr.bf16.mxu0 %v5456_v15  ;;  %5585 = vmatprep.subr.bf16.mxu1 %v5584_v49  ;;  %v5476_v15 = vpack.c.bf16 %v3152_v6, %v3144_v53  ;;  %v5604_v49 = vpack.c.bf16 %v3154_v18, %v3146_v29  ;;  %v3207_v29 = vld [vmem:[#allocation17 + $0x800] sm:$0xff] }
 0x417   : > { %5459 = vmatpush1.bf16.msra.mxu0 %v5458_v44  ;;  %5587 = vmatpush1.bf16.msra.mxu1 %v5586_v42  ;;  %v5478_v44 = vpack.c.bf16 %v3151_v4, %v3143_v61  ;;  %v5606_v42 = vpack.c.bf16 %v3153_v12, %v3145_v35  ;;  %v3215_v61 = vld [vmem:[#allocation17 + $0x840] sm:$0xff]  ;;  %v3209_v4 = vld [vmem:[#allocation17 + $0x810] sm:$0xff]  ;;  %v3224_v35 = vld [vmem:[#allocation17 + $0x888] sm:$0xff] }
 0x418   : > { %5461 = vmatprep.subr.bf16.mxu0 %v5460_v40  ;;  %5589 = vmatprep.subr.bf16.mxu1 %v5588_v17  ;;  %v5480_v40 = vpack.c.bf16 %v3168_v11, %v3160_v58  ;;  %v5608_v17 = vpack.c.bf16 %v3170_v34, %v3162_v9  ;;  %v3232_v58 = vld [vmem:[#allocation17 + $0x8c8] sm:$0xff]  ;;  %v3226_v11 = vld [vmem:[#allocation17 + $0x898] sm:$0xff] }
 0x419   : > { %v3234_v9 = vld [vmem:[#allocation17 + $0x8d8] sm:$0xff]  ;;  %v5496_v21 = vpack.c.bf16 %v3232_v58, %v3224_v35  ;;  %v3287_v35 = vld [vmem:[#allocation17 + $0xa80] sm:$0xff] }
 0x41a   : > { %v5624_v56 = vpack.c.bf16 %v3234_v9, %v3226_v11  ;;  %v3289_v9 = vld [vmem:[#allocation17 + $0xa90] sm:$0xff] }
 0x41b   : > { %5463 = vmatpush1.bf16.msra.mxu0 %v5462_v57  ;;  %5591 = vmatpush1.bf16.msra.mxu1 %v5590_v7  ;;  %v5482_v57 = vpack.c.bf16 %v3167_v27, %v3159_v50  ;;  %v5610_v7 = vpack.c.bf16 %v3169_v41, %v3161_v26  ;;  %v3223_v50 = vld [vmem:[#allocation17 + $0x880] sm:$0xff]  ;;  %v3233_v26 = vld [vmem:[#allocation17 + $0x8d0] sm:$0xff]  ;;  %v3240_v41 = vld [vmem:[#allocation17 + $0x908] sm:$0xff] }
 0x41c   : > { %5465 = vmatprep.subr.bf16.mxu0 %v5464_v48  ;;  %5593 = vmatprep.subr.bf16.mxu1 %v5592_v43  ;;  %v5612_v48 = vpack.c.bf16 %v3186_v30, %v3178_v1  ;;  %v3183_v43 = vld [vmem:[#allocation17 + $0x740] sm:$0xff]  ;;  %v3248_v1 = vld [vmem:[#allocation17 + $0x948] sm:$0xff]  ;;  %v3242_v30 = vld [vmem:[#allocation17 + $0x918] sm:$0xff] }
 0x41d   : > { %v5486_v31 = vpack.c.bf16 %v3183_v43, %v3175_v23  ;;  %v3231_v27 = vld [vmem:[#allocation17 + $0x8c0] sm:$0xff]  ;;  %v5500_v28 = vpack.c.bf16 %v3248_v1, %v3240_v41 }
 0x41e   : > { %v5498_v23 = vpack.c.bf16 %v3231_v27, %v3223_v50  ;;  %v3247_v43 = vld [vmem:[#allocation17 + $0x940] sm:$0xff]  ;;  %v3312_v50 = vld [vmem:[#allocation17 + $0xb48] sm:$0xff]  ;;  %v3306_v27 = vld [vmem:[#allocation17 + $0xb18] sm:$0xff] }
 0x41f   : > { %5467 = vmatpush1.bf16.msra.mxu0 %v5466_v2  ;;  %5595 = vmatpush1.bf16.msra.mxu1 %v5594_v38  ;;  %v3194_v2 = vld [vmem:[#allocation17 + $0x798] sm:$0xff]  ;;  %v5488_v38 = vpack.c.bf16 %v3200_v14, %v3192_v0  ;;  %v3256_v0 = vld [vmem:[#allocation17 + $0x988] sm:$0xff] }
 0x420   : > { %5469 = vmatprep.subr.bf16.mxu0 %v5468_v5  ;;  %5597 = vmatprep.subr.bf16.mxu1 %v5596_v22  ;;  %v3199_v5 = vld [vmem:[#allocation17 + $0x7c0] sm:$0xff]  ;;  %v5616_v22 = vpack.c.bf16 %v3202_v63, %v3194_v2  ;;  %v3264_v14 = vld [vmem:[#allocation17 + $0x9c8] sm:$0xff]  ;;  %v3258_v2 = vld [vmem:[#allocation17 + $0x998] sm:$0xff] }
 0x421   : > { %v5490_v45 = vpack.c.bf16 %v3199_v5, %v3191_v62  ;;  %v3255_v5 = vld [vmem:[#allocation17 + $0x980] sm:$0xff] }
 0x423   : > { %5471 = vmatpush1.bf16.msra.mxu0 %v5470_v39  ;;  %5599 = vmatpush1.bf16.msra.mxu1 %v5598_v16  ;;  %v3210_v39 = vld [vmem:[#allocation17 + $0x818] sm:$0xff] }
 0x424   : > { %5473 = vmatprep.subr.bf16.mxu0 %v5472_v47  ;;  %5601 = vmatprep.subr.bf16.mxu1 %v5600_v36  ;;  %v3218_v16 = vld [vmem:[#allocation17 + $0x858] sm:$0xff] }
 0x425   : > { %v5620_v3 = vpack.c.bf16 %v3218_v16, %v3210_v39  ;;  %v7903_v47 = vld [vmem:[#allocation16] sm:$0xf] }
 0x426   : > { %v2646_v36 = vrot.slane %v7903_v47, %v7317_v52  ;;  %v2650_v46 = vrot.slane %v7903_v47, %v8154_v8  ;;  %v2658_v60 = vrot.slane %v7903_v47, %v7370_v19  ;;  %v3274_v39 = vld [vmem:[#allocation17 + $0xa18] sm:$0xff] }
 0x427   : > { %5475 = vmatpush1.bf16.msra.mxu0 %v5474_v54  ;;  %5603 = vmatpush1.bf16.msra.mxu1 %v5602_v25  ;;  %v3282_v16 = vld [vmem:[#allocation17 + $0xa58] sm:$0xff] }
 0x428   : > { %5477 = vmatprep.subr.bf16.mxu0 %v5476_v15  ;;  %5605 = vmatprep.subr.bf16.mxu1 %v5604_v49  ;;  %v3217_v15 = vld [vmem:[#allocation17 + $0x850] sm:$0xff] }
 0x42b   : > { %5479 = vmatpush1.bf16.msra.mxu0 %v5478_v44  ;;  %5607 = vmatpush1.bf16.msra.mxu1 %v5606_v42  ;;  %v5494_v44 = vpack.c.bf16 %v3215_v61, %v3207_v29  ;;  %v5622_v42 = vpack.c.bf16 %v3217_v15, %v3209_v4  ;;  %v3273_v29 = vld [vmem:[#allocation17 + $0xa10] sm:$0xff]  ;;  %v3290_v61 = vld [vmem:[#allocation17 + $0xa98] sm:$0xff] }
 0x42c   : > { %5481 = vmatprep.subr.bf16.mxu0 %v5480_v40  ;;  %5609 = vmatprep.subr.bf16.mxu1 %v5608_v17  ;;  %v3225_v17 = vld [vmem:[#allocation17 + $0x890] sm:$0xff]  ;;  %v3298_v4 = vld [vmem:[#allocation17 + $0xad8] sm:$0xff] }
 0x42d   : > { %v5640_v11 = vpack.c.bf16 %v3298_v4, %v3290_v61  ;;  %v3353_v4 = vld [vmem:[#allocation17 + $0xc90] sm:$0xff] }
 0x42f   : > { %5483 = vmatpush1.bf16.msra.mxu0 %v5482_v57  ;;  %5611 = vmatpush1.bf16.msra.mxu1 %v5610_v7  ;;  %v3250_v57 = vld [vmem:[#allocation17 + $0x958] sm:$0xff] }
 0x430   : > { %5485 = vmatprep.subr.bf16.mxu0 %v5484_v10  ;;  %5613 = vmatprep.subr.bf16.mxu1 %v5612_v48  ;;  %v5626_v10 = vpack.c.bf16 %v3233_v26, %v3225_v17  ;;  %v3239_v48 = vld [vmem:[#allocation17 + $0x900] sm:$0xff]  ;;  %v5628_v33 = vpack.c.bf16 %v3250_v57, %v3242_v30  ;;  %v3314_v17 = vld [vmem:[#allocation17 + $0xb58] sm:$0xff]  ;;  %v3305_v57 = vld [vmem:[#allocation17 + $0xb10] sm:$0xff] }
 0x431   : > { %v5502_v63 = vpack.c.bf16 %v3247_v43, %v3239_v48  ;;  %v5644_v30 = vpack.c.bf16 %v3314_v17, %v3306_v27  ;;  %v3328_v48 = vld [vmem:[#allocation17 + $0xbc8] sm:$0xff]  ;;  %v3322_v43 = vld [vmem:[#allocation17 + $0xb98] sm:$0xff]  ;;  %v3369_v17 = vld [vmem:[#allocation17 + $0xd10] sm:$0xff] }
 0x433   : > { %5487 = vmatpush1.bf16.msra.mxu0 %v5486_v31  ;;  %5615 = vmatpush1.bf16.msra.mxu1 %v5614_v24  ;;  %v3241_v31 = vld [vmem:[#allocation17 + $0x910] sm:$0xff] }
 0x434   : > { %5489 = vmatprep.subr.bf16.mxu0 %v5488_v38  ;;  %5617 = vmatprep.subr.bf16.mxu1 %v5616_v22  ;;  %v3249_v24 = vld [vmem:[#allocation17 + $0x950] sm:$0xff]  ;;  %v3266_v38 = vld [vmem:[#allocation17 + $0x9d8] sm:$0xff]  ;;  %v3263_v22 = vld [vmem:[#allocation17 + $0x9c0] sm:$0xff] }
 0x435   : > { %v5630_v62 = vpack.c.bf16 %v3249_v24, %v3241_v31  ;;  %v5632_v13 = vpack.c.bf16 %v3266_v38, %v3258_v2  ;;  %v3319_v24 = vld [vmem:[#allocation17 + $0xb80] sm:$0xff]  ;;  %v3321_v38 = vld [vmem:[#allocation17 + $0xb90] sm:$0xff] }
 0x437   : > { %5491 = vmatpush1.bf16.msra.mxu0 %v5490_v45  ;;  %5619 = vmatpush1.bf16.msra.mxu1 %v5618_v37  ;;  %v5504_v45 = vpack.c.bf16 %v3264_v14, %v3256_v0  ;;  %v3272_v37 = vld [vmem:[#allocation17 + $0xa08] sm:$0xff]  ;;  %v3327_v0 = vld [vmem:[#allocation17 + $0xbc0] sm:$0xff] }
 0x438   : > { %5493 = vmatprep.subr.bf16.mxu0 %v5492_v59  ;;  %5621 = vmatprep.subr.bf16.mxu1 %v5620_v3  ;;  %v5506_v59 = vpack.c.bf16 %v3263_v22, %v3255_v5  ;;  %v5634_v3 = vpack.c.bf16 %v3265_v51, %v3257_v55  ;;  %v3344_v5 = vld [vmem:[#allocation17 + $0xc48] sm:$0xff]  ;;  %v3338_v22 = vld [vmem:[#allocation17 + $0xc18] sm:$0xff]  ;;  %v3335_v51 = vld [vmem:[#allocation17 + $0xc00] sm:$0xff] }
 0x4cd   : > { %v2800_v53 = vpop.f32.mrb[22].mxu0  ;;  %v7911_v6 = vpop.f32.mrb[22].mxu1 }
 0x4ce   : > { %v6068_v18 = vadd.f32 %v2800_v53, %v2646_v36  ;;  %v2802_v54 = vpop.f32.mrb[23].mxu0  ;;  %v2944_v25 = vpop.f32.mrb[23].mxu1  ;;  %v3271_v36 = vld [vmem:[#allocation17 + $0xa00] sm:$0xff]  ;;  %v5636_v53 = vpack.c.bf16 %v3282_v16, %v3274_v39  ;;  %v3337_v16 = vld [vmem:[#allocation17 + $0xc10] sm:$0xff] }
 0x4cf   : > { %v6069_v49 = vadd.f32 %v2802_v54, %v2650_v46  ;;  %v6071_v12 = vadd.f32 %v2944_v25, %v2658_v60  ;;  %v3279_v46 = vld [vmem:[#allocation17 + $0xa40] sm:$0xff]  ;;  %v5508_v60 = vpack.c.bf16 %v3280_v32, %v3272_v37  ;;  %v3288_v54 = vld [vmem:[#allocation17 + $0xa88] sm:$0xff] }
 0x4d0   : > { %v7915_v40 = vmax.f32 %v6068_v18, 0.0  ;;  %v3281_v18 = vld [vmem:[#allocation17 + $0xa50] sm:$0xff]  ;;  %v3296_v25 = vld [vmem:[#allocation17 + $0xac8] sm:$0xff]  ;;  %v5510_v15 = vpack.c.bf16 %v3279_v46, %v3271_v36  ;;  %v3343_v37 = vld [vmem:[#allocation17 + $0xc40] sm:$0xff] }
 0x4d1   : > { %v7913_v34 = vmax.f32 %v6069_v49, 0.0  ;;  %v7919_v7 = vmax.f32 %v6071_v12, 0.0  ;;  %v5638_v49 = vpack.c.bf16 %v3281_v18, %v3273_v29  ;;  %v3295_v12 = vld [vmem:[#allocation17 + $0xac0] sm:$0xff]  ;;  %v5512_v58 = vpack.c.bf16 %v3296_v25, %v3288_v54  ;;  %v3360_v36 = vld [vmem:[#allocation17 + $0xcc8] sm:$0xff]  ;;  %v3354_v46 = vld [vmem:[#allocation17 + $0xc98] sm:$0xff] }
 0x4d2   : > { %v5514_v26 = vpack.c.bf16 %v3295_v12, %v3287_v35  ;;  %v3351_v18 = vld [vmem:[#allocation17 + $0xc80] sm:$0xff]  ;;  %v3376_v35 = vld [vmem:[#allocation17 + $0xd48] sm:$0xff]  ;;  %v3370_v12 = vld [vmem:[#allocation17 + $0xd18] sm:$0xff] }
 0x4d3   : > { %3569 = vmatprep.mubr.f32.mxu0 %v7913_v34  ;;  %3711 = vmatprep.mubr.f32.mxu1 %v7913_v34  ;;  %v3359_v54 = vld [vmem:[#allocation17 + $0xcc0] sm:$0xff] }
 0x4d4   : > { %3570 = vmatmul.mubr.f32.vlgmr.msra.gmra.mrb[24].mxu0 %v7915_v40  ;;  %3712 = vmatmul.mubr.f32.vlgmr.msra.gmra.mrb[24].mxu1 %v7915_v40 }
 0x4d5   : > { %5495 = vmatpush1.bf16.msra.mxu0 %v5494_v44  ;;  %5623 = vmatpush1.bf16.msra.mxu1 %v5622_v42  ;;  %v3297_v44 = vld [vmem:[#allocation17 + $0xad0] sm:$0xff]  ;;  %v3304_v42 = vld [vmem:[#allocation17 + $0xb08] sm:$0xff] }
 0x4d6   : > { %3640 = vmatprep.mubr.f32.mxu0 %v7919_v7  ;;  %3782 = vmatprep.mubr.f32.mxu1 %v7919_v7  ;;  %v5642_v41 = vpack.c.bf16 %v3297_v44, %v3289_v9  ;;  %v5516_v1 = vpack.c.bf16 %v3312_v50, %v3304_v42  ;;  %v3367_v44 = vld [vmem:[#allocation17 + $0xd00] sm:$0xff] }
 0x4d7   : > { %5497 = vmatprep.subr.bf16.mxu0 %v5496_v21  ;;  %5625 = vmatprep.subr.bf16.mxu1 %v5624_v56  ;;  %v3303_v21 = vld [vmem:[#allocation17 + $0xb00] sm:$0xff] }
 0x4d8   : > { %v3311_v56 = vld [vmem:[#allocation17 + $0xb40] sm:$0xff] }
 0x4d9   : > { %5499 = vmatpush1.bf16.msra.mxu0 %v5498_v23  ;;  %5627 = vmatpush1.bf16.msra.mxu1 %v5626_v10  ;;  %v3313_v23 = vld [vmem:[#allocation17 + $0xb50] sm:$0xff]  ;;  %v3320_v10 = vld [vmem:[#allocation17 + $0xb88] sm:$0xff]  ;;  %v3375_v42 = vld [vmem:[#allocation17 + $0xd40] sm:$0xff] }
 0x4da   : > { %5501 = vmatprep.subr.bf16.mxu0 %v5500_v28  ;;  %5629 = vmatprep.subr.bf16.mxu1 %v5628_v33  ;;  %v3330_v28 = vld [vmem:[#allocation17 + $0xbd8] sm:$0xff]  ;;  %v5518_v33 = vpack.c.bf16 %v3311_v56, %v3303_v21  ;;  %v5646_v31 = vpack.c.bf16 %v3313_v23, %v3305_v57  ;;  %v5520_v14 = vpack.c.bf16 %v3328_v48, %v3320_v10  ;;  %v3392_v21 = vld [vmem:[#allocation17 + $0xdc8] sm:$0xff]  ;;  %v3383_v23 = vld [vmem:[#allocation17 + $0xd80] sm:$0xff] }
 0x4db   : > { %v5648_v2 = vpack.c.bf16 %v3330_v28, %v3322_v43  ;;  %v3386_v56 = vld [vmem:[#allocation17 + $0xd98] sm:$0xff]  ;;  %v3391_v10 = vld [vmem:[#allocation17 + $0xdc0] sm:$0xff]  ;;  %v3385_v28 = vld [vmem:[#allocation17 + $0xd90] sm:$0xff] }
 0x4dd   : > { %5503 = vmatpush1.bf16.msra.mxu0 %v5502_v63  ;;  %5631 = vmatpush1.bf16.msra.mxu1 %v5630_v62  ;;  %v3329_v63 = vld [vmem:[#allocation17 + $0xbd0] sm:$0xff]  ;;  %v3336_v62 = vld [vmem:[#allocation17 + $0xc08] sm:$0xff] }
 0x4de   : > { %5505 = vmatprep.subr.bf16.mxu0 %v5504_v45  ;;  %5633 = vmatprep.subr.bf16.mxu1 %v5632_v13  ;;  %v3346_v45 = vld [vmem:[#allocation17 + $0xc58] sm:$0xff]  ;;  %v5522_v13 = vpack.c.bf16 %v3327_v0, %v3319_v24  ;;  %v5650_v55 = vpack.c.bf16 %v3329_v63, %v3321_v38  ;;  %v5524_v32 = vpack.c.bf16 %v3344_v5, %v3336_v62  ;;  %v3408_v24 = vld [vmem:[#allocation17 + $0xe48] sm:$0xff]  ;;  %v3399_v63 = vld [vmem:[#allocation17 + $0xe00] sm:$0xff] }
 0x4df   : > { %v5652_v39 = vpack.c.bf16 %v3346_v45, %v3338_v22  ;;  %v3402_v0 = vld [vmem:[#allocation17 + $0xe18] sm:$0xff]  ;;  %v3407_v62 = vld [vmem:[#allocation17 + $0xe40] sm:$0xff]  ;;  %v3401_v45 = vld [vmem:[#allocation17 + $0xe10] sm:$0xff] }
 0x4e1   : > { %5507 = vmatpush1.bf16.msra.mxu0 %v5506_v59  ;;  %5635 = vmatpush1.bf16.msra.mxu1 %v5634_v3  ;;  %v3345_v59 = vld [vmem:[#allocation17 + $0xc50] sm:$0xff]  ;;  %v3352_v3 = vld [vmem:[#allocation17 + $0xc88] sm:$0xff] }
 0x4e2   : > { %5509 = vmatprep.subr.bf16.mxu0 %v5508_v60  ;;  %5637 = vmatprep.subr.bf16.mxu1 %v5636_v53  ;;  %v3362_v60 = vld [vmem:[#allocation17 + $0xcd8] sm:$0xff]  ;;  %v5526_v53 = vpack.c.bf16 %v3343_v37, %v3335_v51  ;;  %v5654_v29 = vpack.c.bf16 %v3345_v59, %v3337_v16  ;;  %v5528_v25 = vpack.c.bf16 %v3360_v36, %v3352_v3  ;;  %v3424_v51 = vld [vmem:[#allocation17 + $0xec8] sm:$0xff]  ;;  %v3415_v59 = vld [vmem:[#allocation17 + $0xe80] sm:$0xff] }
 0x4e3   : > { %v5656_v61 = vpack.c.bf16 %v3362_v60, %v3354_v46  ;;  %v3418_v37 = vld [vmem:[#allocation17 + $0xe98] sm:$0xff]  ;;  %v3423_v3 = vld [vmem:[#allocation17 + $0xec0] sm:$0xff]  ;;  %v3417_v60 = vld [vmem:[#allocation17 + $0xe90] sm:$0xff] }
 0x4e5   : > { %5511 = vmatpush1.bf16.msra.mxu0 %v5510_v15  ;;  %5639 = vmatpush1.bf16.msra.mxu1 %v5638_v49  ;;  %v3361_v15 = vld [vmem:[#allocation17 + $0xcd0] sm:$0xff]  ;;  %v3368_v49 = vld [vmem:[#allocation17 + $0xd08] sm:$0xff] }
 0x4e6   : > { %5513 = vmatprep.subr.bf16.mxu0 %v5512_v58  ;;  %5641 = vmatprep.subr.bf16.mxu1 %v5640_v11  ;;  %v3378_v58 = vld [vmem:[#allocation17 + $0xd58] sm:$0xff]  ;;  %v5530_v11 = vpack.c.bf16 %v3359_v54, %v3351_v18  ;;  %v5658_v9 = vpack.c.bf16 %v3361_v15, %v3353_v4  ;;  %v5532_v50 = vpack.c.bf16 %v3376_v35, %v3368_v49  ;;  %v3440_v18 = vld [vmem:[#allocation17 + $0xf48] sm:$0xff]  ;;  %v3431_v15 = vld [vmem:[#allocation17 + $0xf00] sm:$0xff] }
 0x4e7   : > { %v5660_v27 = vpack.c.bf16 %v3378_v58, %v3370_v12  ;;  %v3434_v54 = vld [vmem:[#allocation17 + $0xf18] sm:$0xff]  ;;  %v3439_v49 = vld [vmem:[#allocation17 + $0xf40] sm:$0xff]  ;;  %v3433_v58 = vld [vmem:[#allocation17 + $0xf10] sm:$0xff] }
 0x4e9   : > { %5515 = vmatpush1.bf16.msra.mxu0 %v5514_v26  ;;  %5643 = vmatpush1.bf16.msra.mxu1 %v5642_v41  ;;  %v3377_v26 = vld [vmem:[#allocation17 + $0xd50] sm:$0xff]  ;;  %v3384_v41 = vld [vmem:[#allocation17 + $0xd88] sm:$0xff] }
 0x4ea   : > { %5517 = vmatprep.subr.bf16.mxu0 %v5516_v1  ;;  %5645 = vmatprep.subr.bf16.mxu1 %v5644_v30  ;;  %v3394_v1 = vld [vmem:[#allocation17 + $0xdd8] sm:$0xff]  ;;  %v5534_v30 = vpack.c.bf16 %v3375_v42, %v3367_v44  ;;  %v5662_v57 = vpack.c.bf16 %v3377_v26, %v3369_v17  ;;  %v5536_v48 = vpack.c.bf16 %v3392_v21, %v3384_v41  ;;  %v3456_v44 = vld [vmem:[#allocation17 + $0xfc8] sm:$0xff]  ;;  %v3447_v26 = vld [vmem:[#allocation17 + $0xf80] sm:$0xff] }
 0x4eb   : > { %v5664_v43 = vpack.c.bf16 %v3394_v1, %v3386_v56  ;;  %v3450_v42 = vld [vmem:[#allocation17 + $0xf98] sm:$0xff]  ;;  %v3455_v41 = vld [vmem:[#allocation17 + $0xfc0] sm:$0xff]  ;;  %v2654_v21 = vrot.slane %v7903_v47, %v7373_v20 }
 0x4ed   : > { %5519 = vmatpush1.bf16.msra.mxu0 %v5518_v33  ;;  %5647 = vmatpush1.bf16.msra.mxu1 %v5646_v31  ;;  %v3393_v33 = vld [vmem:[#allocation17 + $0xdd0] sm:$0xff]  ;;  %v3400_v31 = vld [vmem:[#allocation17 + $0xe08] sm:$0xff] }
 0x4ee   : > { %5521 = vmatprep.subr.bf16.mxu0 %v5520_v14  ;;  %5649 = vmatprep.subr.bf16.mxu1 %v5648_v2  ;;  %v3410_v14 = vld [vmem:[#allocation17 + $0xe58] sm:$0xff]  ;;  %v5538_v2 = vpack.c.bf16 %v3391_v10, %v3383_v23  ;;  %v5666_v38 = vpack.c.bf16 %v3393_v33, %v3385_v28  ;;  %v5540_v5 = vpack.c.bf16 %v3408_v24, %v3400_v31  ;;  %v2956_v23 = vld [vmem:[#allocation17 + $0x28] sm:$0xff] }
 0x4ef   : > { %v5668_v22 = vpack.c.bf16 %v3410_v14, %v3402_v0  ;;  %v2964_v10 = vld [vmem:[#allocation17 + $0x68] sm:$0xff]  ;;  %v5554_v28 = vpack.c.bf16 %v3455_v41, %v3447_v26  ;;  %v6070_v31 = vadd.f32 %v7911_v6, %v2654_v21  ;;  %v2955_v0 = vld [vmem:[#allocation17 + $0x20] sm:$0xff]  ;;  %v3022_v41 = vld [vmem:[#allocation17 + $0x238] sm:$0xff] }
 0x4f0   : > { %v5684_v24 = vpack.c.bf16 %v2964_v10, %v2956_v23  ;;  %v2963_v14 = vld [vmem:[#allocation17 + $0x60] sm:$0xff]  ;;  %v3028_v26 = vld [vmem:[#allocation17 + $0x268] sm:$0xff]  ;;  %v3030_v21 = vld [vmem:[#allocation17 + $0x278] sm:$0xff] }
 0x4f1   : > { %5523 = vmatpush1.bf16.msra.mxu0 %v5522_v13  ;;  %5651 = vmatpush1.bf16.msra.mxu1 %v5650_v55  ;;  %v3409_v13 = vld [vmem:[#allocation17 + $0xe50] sm:$0xff]  ;;  %v3416_v55 = vld [vmem:[#allocation17 + $0xe88] sm:$0xff]  ;;  %v3027_v23 = vld [vmem:[#allocation17 + $0x260] sm:$0xff] }
 0x4f2   : > { %5525 = vmatprep.subr.bf16.mxu0 %v5524_v32  ;;  %5653 = vmatprep.subr.bf16.mxu1 %v5652_v39  ;;  %v3426_v32 = vld [vmem:[#allocation17 + $0xed8] sm:$0xff]  ;;  %v5542_v39 = vpack.c.bf16 %v3407_v62, %v3399_v63  ;;  %v5670_v16 = vpack.c.bf16 %v3409_v13, %v3401_v45  ;;  %v5544_v36 = vpack.c.bf16 %v3424_v51, %v3416_v55  ;;  %v2972_v63 = vld [vmem:[#allocation17 + $0xa8] sm:$0xff]  ;;  %v7928_v13 = vmax.f32 %v6070_v31, 0.0  ;;  %v2971_v55 = vld [vmem:[#allocation17 + $0xa0] sm:$0xff] }
 0x4f3   : > { %v5672_v46 = vpack.c.bf16 %v3426_v32, %v3418_v37  ;;  %v2980_v62 = vld [vmem:[#allocation17 + $0xe8] sm:$0xff]  ;;  %v5686_v45 = vpack.c.bf16 %v2963_v14, %v2955_v0  ;;  %v2979_v51 = vld [vmem:[#allocation17 + $0xe0] sm:$0xff]  ;;  %v2973_v37 = vld [vmem:[#allocation17 + $0xb0] sm:$0xff] }
 0x4f4   : > { %v5688_v32 = vpack.c.bf16 %v2980_v62, %v2972_v63  ;;  %v3021_v10 = vld [vmem:[#allocation17 + $0x230] sm:$0xff]  ;;  %v3038_v31 = vld [vmem:[#allocation17 + $0x2b8] sm:$0xff] }
 0x4f5   : > { %5527 = vmatpush1.bf16.msra.mxu0 %v5526_v53  ;;  %5655 = vmatpush1.bf16.msra.mxu1 %v5654_v29  ;;  %v3425_v53 = vld [vmem:[#allocation17 + $0xed0] sm:$0xff]  ;;  %v3432_v29 = vld [vmem:[#allocation17 + $0xf08] sm:$0xff] }
 0x4f6   : > { %5529 = vmatprep.subr.bf16.mxu0 %v5528_v25  ;;  %5657 = vmatprep.subr.bf16.mxu1 %v5656_v61  ;;  %v3442_v25 = vld [vmem:[#allocation17 + $0xf58] sm:$0xff]  ;;  %v5546_v61 = vpack.c.bf16 %v3423_v3, %v3415_v59  ;;  %v5674_v4 = vpack.c.bf16 %v3425_v53, %v3417_v60  ;;  %v5548_v35 = vpack.c.bf16 %v3440_v18, %v3432_v29  ;;  %v2988_v59 = vld [vmem:[#allocation17 + $0x128] sm:$0xff]  ;;  %v2987_v18 = vld [vmem:[#allocation17 + $0x120] sm:$0xff] }
 0x4f7   : > { %v5676_v12 = vpack.c.bf16 %v3442_v25, %v3434_v54  ;;  %v2996_v3 = vld [vmem:[#allocation17 + $0x168] sm:$0xff]  ;;  %v5690_v60 = vpack.c.bf16 %v2979_v51, %v2971_v55  ;;  %v2995_v54 = vld [vmem:[#allocation17 + $0x160] sm:$0xff]  ;;  %v2989_v25 = vld [vmem:[#allocation17 + $0x130] sm:$0xff] }
 0x4f8   : > { %v5692_v29 = vpack.c.bf16 %v2996_v3, %v2988_v59  ;;  %v3037_v63 = vld [vmem:[#allocation17 + $0x2b0] sm:$0xff]  ;;  %v3062_v55 = vld [vmem:[#allocation17 + $0x378] sm:$0xff] }
 0x4f9   : > { %5531 = vmatpush1.bf16.msra.mxu0 %v5530_v11  ;;  %5659 = vmatpush1.bf16.msra.mxu1 %v5658_v9  ;;  %v3441_v11 = vld [vmem:[#allocation17 + $0xf50] sm:$0xff]  ;;  %v3448_v9 = vld [vmem:[#allocation17 + $0xf88] sm:$0xff] }
 0x4fa   : > { %5533 = vmatprep.subr.bf16.mxu0 %v5532_v50  ;;  %5661 = vmatprep.subr.bf16.mxu1 %v5660_v27  ;;  %v3458_v50 = vld [vmem:[#allocation17 + $0xfd8] sm:$0xff]  ;;  %v5550_v27 = vpack.c.bf16 %v3439_v49, %v3431_v15  ;;  %v5678_v17 = vpack.c.bf16 %v3441_v11, %v3433_v58  ;;  %v5552_v56 = vpack.c.bf16 %v3456_v44, %v3448_v9  ;;  %v3004_v15 = vld [vmem:[#allocation17 + $0x1a8] sm:$0xff]  ;;  %v3011_v44 = vld [vmem:[#allocation17 + $0x1e0] sm:$0xff] }
 0x4fb   : > { %v5680_v1 = vpack.c.bf16 %v3458_v50, %v3450_v42  ;;  %v3012_v49 = vld [vmem:[#allocation17 + $0x1e8] sm:$0xff]  ;;  %v5694_v58 = vpack.c.bf16 %v2995_v54, %v2987_v18  ;;  %v3005_v42 = vld [vmem:[#allocation17 + $0x1b0] sm:$0xff] }
 0x4fc   : > { %v5696_v9 = vpack.c.bf16 %v3012_v49, %v3004_v15  ;;  %v3053_v59 = vld [vmem:[#allocation17 + $0x330] sm:$0xff] }
 0x4fd   : > { %5535 = vmatpush1.bf16.msra.mxu0 %v5534_v30  ;;  %5663 = vmatpush1.bf16.msra.mxu1 %v5662_v57  ;;  %v3449_v30 = vld [vmem:[#allocation17 + $0xf90] sm:$0xff] }
 0x4fe   : > { %5537 = vmatprep.subr.bf16.mxu0 %v5536_v48  ;;  %5665 = vmatprep.subr.bf16.mxu1 %v5664_v43  ;;  %v3457_v57 = vld [vmem:[#allocation17 + $0xfd0] sm:$0xff]  ;;  %v2958_v48 = vld [vmem:[#allocation17 + $0x38] sm:$0xff] }
 0x4ff   : > { %v2966_v43 = vld [vmem:[#allocation17 + $0x78] sm:$0xff]  ;;  %v5682_v33 = vpack.c.bf16 %v3457_v57, %v3449_v30  ;;  %v3019_v57 = vld [vmem:[#allocation17 + $0x220] sm:$0xff]  ;;  %v3069_v15 = vld [vmem:[#allocation17 + $0x3b0] sm:$0xff] }
 0x500   : > { %v5812_v47 = vpack.c.bf16 %v2966_v43, %v2958_v48  ;;  %v5828_v48 = vpack.c.bf16 %v3030_v21, %v3022_v41  ;;  %v3029_v43 = vld [vmem:[#allocation17 + $0x270] sm:$0xff]  ;;  %v3100_v21 = vld [vmem:[#allocation17 + $0x4a8] sm:$0xff] }
 0x501   : > { %5539 = vmatpush1.bf16.msra.mxu0 %v5538_v2  ;;  %5667 = vmatpush1.bf16.msra.mxu1 %v5666_v38  ;;  %v2957_v2 = vld [vmem:[#allocation17 + $0x30] sm:$0xff]  ;;  %v5830_v0 = vpack.c.bf16 %v3029_v43, %v3021_v10  ;;  %v3107_v43 = vld [vmem:[#allocation17 + $0x4e0] sm:$0xff] }
 0x502   : > { %5541 = vmatprep.subr.bf16.mxu0 %v5540_v5  ;;  %5669 = vmatprep.subr.bf16.mxu1 %v5668_v22  ;;  %v2965_v38 = vld [vmem:[#allocation17 + $0x70] sm:$0xff]  ;;  %v2974_v5 = vld [vmem:[#allocation17 + $0xb8] sm:$0xff] }
 0x503   : > { %v2982_v22 = vld [vmem:[#allocation17 + $0xf8] sm:$0xff]  ;;  %v5814_v6 = vpack.c.bf16 %v2965_v38, %v2957_v2  ;;  %v3035_v2 = vld [vmem:[#allocation17 + $0x2a0] sm:$0xff]  ;;  %v3093_v41 = vld [vmem:[#allocation17 + $0x470] sm:$0xff] }
 0x504   : > { %v3043_v38 = vld [vmem:[#allocation17 + $0x2e0] sm:$0xff] }
 0x505   : > { %5543 = vmatpush1.bf16.msra.mxu0 %v5542_v39  ;;  %5671 = vmatpush1.bf16.msra.mxu1 %v5670_v16  ;;  %v5816_v39 = vpack.c.bf16 %v2982_v22, %v2974_v5  ;;  %v2981_v16 = vld [vmem:[#allocation17 + $0xf0] sm:$0xff]  ;;  %v3052_v22 = vld [vmem:[#allocation17 + $0x328] sm:$0xff]  ;;  %v5706_v51 = vpack.c.bf16 %v3043_v38, %v3035_v2 }
 0x506   : > { %5545 = vmatprep.subr.bf16.mxu0 %v5544_v36  ;;  %5673 = vmatprep.subr.bf16.mxu1 %v5672_v46  ;;  %v2990_v36 = vld [vmem:[#allocation17 + $0x138] sm:$0xff]  ;;  %v5818_v53 = vpack.c.bf16 %v2981_v16, %v2973_v37  ;;  %v3045_v5 = vld [vmem:[#allocation17 + $0x2f0] sm:$0xff]  ;;  %v3059_v16 = vld [vmem:[#allocation17 + $0x360] sm:$0xff] }
 0x507   : > { %v2998_v46 = vld [vmem:[#allocation17 + $0x178] sm:$0xff]  ;;  %v5834_v37 = vpack.c.bf16 %v3045_v5, %v3037_v63  ;;  %v3123_v5 = vld [vmem:[#allocation17 + $0x560] sm:$0xff] }
 0x509   : > { %5547 = vmatpush1.bf16.msra.mxu0 %v5546_v61  ;;  %5675 = vmatpush1.bf16.msra.mxu1 %v5674_v4  ;;  %v5820_v61 = vpack.c.bf16 %v2998_v46, %v2990_v36  ;;  %v2997_v4 = vld [vmem:[#allocation17 + $0x170] sm:$0xff]  ;;  %v3068_v46 = vld [vmem:[#allocation17 + $0x3a8] sm:$0xff] }
 0x50a   : > { %5549 = vmatprep.subr.bf16.mxu0 %v5548_v35  ;;  %5677 = vmatprep.subr.bf16.mxu1 %v5676_v12  ;;  %v3006_v35 = vld [vmem:[#allocation17 + $0x1b8] sm:$0xff]  ;;  %v5822_v11 = vpack.c.bf16 %v2997_v4, %v2989_v25  ;;  %v3061_v36 = vld [vmem:[#allocation17 + $0x370] sm:$0xff]  ;;  %v3075_v4 = vld [vmem:[#allocation17 + $0x3e0] sm:$0xff] }
 0x50b   : > { %v3014_v12 = vld [vmem:[#allocation17 + $0x1f8] sm:$0xff]  ;;  %v5838_v54 = vpack.c.bf16 %v3061_v36, %v3053_v59  ;;  %v3139_v36 = vld [vmem:[#allocation17 + $0x5e0] sm:$0xff] }
 0x50c   : > { %v5824_v50 = vpack.c.bf16 %v3014_v12, %v3006_v35  ;;  %v3077_v35 = vld [vmem:[#allocation17 + $0x3f0] sm:$0xff]  ;;  %v3084_v12 = vld [vmem:[#allocation17 + $0x428] sm:$0xff] }
 0x50d   : > { %5551 = vmatpush1.bf16.msra.mxu0 %v5550_v27  ;;  %5679 = vmatpush1.bf16.msra.mxu1 %v5678_v17  ;;  %v3013_v27 = vld [vmem:[#allocation17 + $0x1f0] sm:$0xff]  ;;  %v3020_v17 = vld [vmem:[#allocation17 + $0x228] sm:$0xff] }
 0x50e   : > { %5553 = vmatprep.subr.bf16.mxu0 %v5552_v56  ;;  %5681 = vmatprep.subr.bf16.mxu1 %v5680_v1  ;;  %v5826_v1 = vpack.c.bf16 %v3013_v27, %v3005_v42  ;;  %v5700_v30 = vpack.c.bf16 %v3028_v26, %v3020_v17  ;;  %v3091_v27 = vld [vmem:[#allocation17 + $0x460] sm:$0xff]  ;;  %v3085_v17 = vld [vmem:[#allocation17 + $0x430] sm:$0xff] }
 0x511   : > { %5555 = vmatpush1.bf16.msra.mxu0 %v5554_v28  ;;  %5683 = vmatpush1.bf16.msra.mxu1 %v5682_v33  ;;  %v3036_v28 = vld [vmem:[#allocation17 + $0x2a8] sm:$0xff] }
 0x512   : > { %5685 = vmatprep.subr.bf16.mxu0 %v5684_v24  ;;  %5813 = vmatprep.subr.bf16.mxu1 %v5812_v47  ;;  %v3044_v33 = vld [vmem:[#allocation17 + $0x2e8] sm:$0xff]  ;;  %v3046_v24 = vld [vmem:[#allocation17 + $0x2f8] sm:$0xff]  ;;  %v5702_v47 = vpack.c.bf16 %v3027_v23, %v3019_v57  ;;  %v5846_v23 = vpack.c.bf16 %v3093_v41, %v3085_v17  ;;  %v3171_v41 = vld [vmem:[#allocation17 + $0x6e0] sm:$0xff] }
 0x513   : > { %v5704_v14 = vpack.c.bf16 %v3044_v33, %v3036_v28  ;;  %v5832_v62 = vpack.c.bf16 %v3046_v24, %v3038_v31  ;;  %v3101_v28 = vld [vmem:[#allocation17 + $0x4b0] sm:$0xff]  ;;  %v3116_v24 = vld [vmem:[#allocation17 + $0x528] sm:$0xff] }
 0x514   : > { %3641 = vmatmul.mubr.f32.vlgmr.msra.gmra.mrb[24].mxu0 %v7928_v13  ;;  %3783 = vmatmul.mubr.f32.vlgmr.msra.gmra.mrb[24].mxu1 %v7928_v13  ;;  %v3109_v31 = vld [vmem:[#allocation17 + $0x4f0] sm:$0xff] }
 0x515   : > { %5687 = vmatpush1.bf16.msra.mxu0 %v5686_v45  ;;  %3853 = vmatprep.mubr.f32.mxu0 %v7913_v34  ;;  %v3060_v45 = vld [vmem:[#allocation17 + $0x368] sm:$0xff]  ;;  %v5850_v38 = vpack.c.bf16 %v3109_v31, %v3101_v28  ;;  %v3187_v31 = vld [vmem:[#allocation17 + $0x760] sm:$0xff] }
 0x516   : > { %5815 = vmatpush1.bf16.msra.mxu1 %v5814_v6  ;;  %3995 = vmatprep.mubr.f32.mxu1 %v7913_v34  ;;  %v3003_v34 = vld [vmem:[#allocation17 + $0x1a0] sm:$0xff]  ;;  %v3054_v6 = vld [vmem:[#allocation17 + $0x338] sm:$0xff] }
 0x517   : > { %5689 = vmatprep.subr.bf16.mxu0 %v5688_v32  ;;  %5817 = vmatprep.subr.bf16.mxu1 %v5816_v39  ;;  %v5698_v56 = vpack.c.bf16 %v3011_v44, %v3003_v34  ;;  %v5708_v32 = vpack.c.bf16 %v3060_v45, %v3052_v22  ;;  %v3051_v39 = vld [vmem:[#allocation17 + $0x320] sm:$0xff]  ;;  %v5836_v3 = vpack.c.bf16 %v3062_v55, %v3054_v6  ;;  %v3117_v22 = vld [vmem:[#allocation17 + $0x530] sm:$0xff]  ;;  %v3132_v55 = vld [vmem:[#allocation17 + $0x5a8] sm:$0xff] }
 0x518   : > { %v5710_v18 = vpack.c.bf16 %v3059_v16, %v3051_v39  ;;  %v5842_v44 = vpack.c.bf16 %v3077_v35, %v3069_v15  ;;  %v3125_v6 = vld [vmem:[#allocation17 + $0x570] sm:$0xff]  ;;  %v3155_v35 = vld [vmem:[#allocation17 + $0x660] sm:$0xff] }
 0x519   : > { %5691 = vmatpush1.bf16.msra.mxu0 %v5690_v60  ;;  %v3076_v60 = vld [vmem:[#allocation17 + $0x3e8] sm:$0xff]  ;;  %v5854_v16 = vpack.c.bf16 %v3125_v6, %v3117_v22  ;;  %v3203_v6 = vld [vmem:[#allocation17 + $0x7e0] sm:$0xff] }
 0x51a   : > { %5819 = vmatpush1.bf16.msra.mxu1 %v5818_v53  ;;  %5693 = vmatprep.subr.bf16.mxu0 %v5692_v29  ;;  %v3070_v53 = vld [vmem:[#allocation17 + $0x3b8] sm:$0xff]  ;;  %v5712_v25 = vpack.c.bf16 %v3076_v60, %v3068_v46  ;;  %v3133_v46 = vld [vmem:[#allocation17 + $0x5b0] sm:$0xff] }
 0x51b   : > { %5821 = vmatprep.subr.bf16.mxu1 %v5820_v61  ;;  %v3078_v29 = vld [vmem:[#allocation17 + $0x3f8] sm:$0xff]  ;;  %v3067_v61 = vld [vmem:[#allocation17 + $0x3a0] sm:$0xff] }
 0x51c   : > { %v5840_v49 = vpack.c.bf16 %v3078_v29, %v3070_v53  ;;  %v5714_v34 = vpack.c.bf16 %v3075_v4, %v3067_v61  ;;  %v3141_v53 = vld [vmem:[#allocation17 + $0x5f0] sm:$0xff]  ;;  %v3148_v29 = vld [vmem:[#allocation17 + $0x628] sm:$0xff] }
 0x51d   : > { %5695 = vmatpush1.bf16.msra.mxu0 %v5694_v58  ;;  %v3092_v58 = vld [vmem:[#allocation17 + $0x468] sm:$0xff]  ;;  %v5858_v4 = vpack.c.bf16 %v3141_v53, %v3133_v46  ;;  %v3219_v53 = vld [vmem:[#allocation17 + $0x860] sm:$0xff] }
 0x51e   : > { %5823 = vmatpush1.bf16.msra.mxu1 %v5822_v11  ;;  %5697 = vmatprep.subr.bf16.mxu0 %v5696_v9  ;;  %v3086_v11 = vld [vmem:[#allocation17 + $0x438] sm:$0xff]  ;;  %v5716_v42 = vpack.c.bf16 %v3092_v58, %v3084_v12  ;;  %v3149_v12 = vld [vmem:[#allocation17 + $0x630] sm:$0xff] }
 0x51f   : > { %5825 = vmatprep.subr.bf16.mxu1 %v5824_v50  ;;  %v3094_v9 = vld [vmem:[#allocation17 + $0x478] sm:$0xff]  ;;  %v3083_v50 = vld [vmem:[#allocation17 + $0x420] sm:$0xff] }
 0x520   : > { %v5844_v26 = vpack.c.bf16 %v3094_v9, %v3086_v11  ;;  %v5718_v57 = vpack.c.bf16 %v3091_v27, %v3083_v50  ;;  %v3157_v11 = vld [vmem:[#allocation17 + $0x670] sm:$0xff]  ;;  %v3164_v9 = vld [vmem:[#allocation17 + $0x6a8] sm:$0xff] }
 0x521   : > { %5699 = vmatpush1.bf16.msra.mxu0 %v5698_v56  ;;  %v3108_v56 = vld [vmem:[#allocation17 + $0x4e8] sm:$0xff]  ;;  %v5862_v27 = vpack.c.bf16 %v3157_v11, %v3149_v12  ;;  %v3227_v12 = vld [vmem:[#allocation17 + $0x8a0] sm:$0xff]  ;;  %v3229_v11 = vld [vmem:[#allocation17 + $0x8b0] sm:$0xff] }
 0x522   : > { %5827 = vmatpush1.bf16.msra.mxu1 %v5826_v1  ;;  %5701 = vmatprep.subr.bf16.mxu0 %v5700_v30  ;;  %v3102_v1 = vld [vmem:[#allocation17 + $0x4b8] sm:$0xff]  ;;  %v5720_v10 = vpack.c.bf16 %v3108_v56, %v3100_v21  ;;  %v3165_v21 = vld [vmem:[#allocation17 + $0x6b0] sm:$0xff] }
 0x523   : > { %5829 = vmatprep.subr.bf16.mxu1 %v5828_v48  ;;  %v3110_v30 = vld [vmem:[#allocation17 + $0x4f8] sm:$0xff]  ;;  %v3099_v48 = vld [vmem:[#allocation17 + $0x4a0] sm:$0xff] }
 0x524   : > { %v5848_v33 = vpack.c.bf16 %v3110_v30, %v3102_v1  ;;  %v5722_v2 = vpack.c.bf16 %v3107_v43, %v3099_v48  ;;  %v3173_v1 = vld [vmem:[#allocation17 + $0x6f0] sm:$0xff]  ;;  %v3180_v30 = vld [vmem:[#allocation17 + $0x728] sm:$0xff] }
 0x525   : > { %5703 = vmatpush1.bf16.msra.mxu0 %v5702_v47  ;;  %v3124_v47 = vld [vmem:[#allocation17 + $0x568] sm:$0xff]  ;;  %v5866_v43 = vpack.c.bf16 %v3173_v1, %v3165_v21  ;;  %v3251_v1 = vld [vmem:[#allocation17 + $0x960] sm:$0xff] }
 0x526   : > { %5831 = vmatpush1.bf16.msra.mxu1 %v5830_v0  ;;  %5705 = vmatprep.subr.bf16.mxu0 %v5704_v14  ;;  %v3118_v0 = vld [vmem:[#allocation17 + $0x538] sm:$0xff]  ;;  %v5724_v63 = vpack.c.bf16 %v3124_v47, %v3116_v24  ;;  %v3181_v24 = vld [vmem:[#allocation17 + $0x730] sm:$0xff] }
 0x527   : > { %5833 = vmatprep.subr.bf16.mxu1 %v5832_v62  ;;  %v3126_v14 = vld [vmem:[#allocation17 + $0x578] sm:$0xff]  ;;  %v3115_v62 = vld [vmem:[#allocation17 + $0x520] sm:$0xff] }
 0x528   : > { %v5852_v45 = vpack.c.bf16 %v3126_v14, %v3118_v0  ;;  %v5726_v39 = vpack.c.bf16 %v3123_v5, %v3115_v62  ;;  %v3189_v0 = vld [vmem:[#allocation17 + $0x770] sm:$0xff]  ;;  %v3196_v14 = vld [vmem:[#allocation17 + $0x7a8] sm:$0xff] }
 0x529   : > { %5707 = vmatpush1.bf16.msra.mxu0 %v5706_v51  ;;  %v3140_v51 = vld [vmem:[#allocation17 + $0x5e8] sm:$0xff]  ;;  %v5870_v5 = vpack.c.bf16 %v3189_v0, %v3181_v24  ;;  %v3259_v24 = vld [vmem:[#allocation17 + $0x9a0] sm:$0xff]  ;;  %v3261_v0 = vld [vmem:[#allocation17 + $0x9b0] sm:$0xff] }
 0x52a   : > { %5835 = vmatpush1.bf16.msra.mxu1 %v5834_v37  ;;  %5709 = vmatprep.subr.bf16.mxu0 %v5708_v32  ;;  %v3134_v37 = vld [vmem:[#allocation17 + $0x5b8] sm:$0xff]  ;;  %v5728_v59 = vpack.c.bf16 %v3140_v51, %v3132_v55  ;;  %v3197_v55 = vld [vmem:[#allocation17 + $0x7b0] sm:$0xff] }
 0x52b   : > { %5837 = vmatprep.subr.bf16.mxu1 %v5836_v3  ;;  %v3142_v32 = vld [vmem:[#allocation17 + $0x5f8] sm:$0xff]  ;;  %v3131_v3 = vld [vmem:[#allocation17 + $0x5a0] sm:$0xff] }
 0x52c   : > { %v5856_v60 = vpack.c.bf16 %v3142_v32, %v3134_v37  ;;  %v5730_v61 = vpack.c.bf16 %v3139_v36, %v3131_v3  ;;  %v3205_v37 = vld [vmem:[#allocation17 + $0x7f0] sm:$0xff]  ;;  %v3212_v32 = vld [vmem:[#allocation17 + $0x828] sm:$0xff] }
 0x52d   : > { %5711 = vmatpush1.bf16.msra.mxu0 %v5710_v18  ;;  %v3156_v18 = vld [vmem:[#allocation17 + $0x668] sm:$0xff]  ;;  %v5874_v36 = vpack.c.bf16 %v3205_v37, %v3197_v55  ;;  %v3283_v55 = vld [vmem:[#allocation17 + $0xa60] sm:$0xff] }
 0x52e   : > { %5839 = vmatpush1.bf16.msra.mxu1 %v5838_v54  ;;  %5713 = vmatprep.subr.bf16.mxu0 %v5712_v25  ;;  %v3150_v54 = vld [vmem:[#allocation17 + $0x638] sm:$0xff]  ;;  %v5732_v15 = vpack.c.bf16 %v3156_v18, %v3148_v29  ;;  %v3213_v18 = vld [vmem:[#allocation17 + $0x830] sm:$0xff] }
 0x52f   : > { %5841 = vmatprep.subr.bf16.mxu1 %v5840_v49  ;;  %v3158_v25 = vld [vmem:[#allocation17 + $0x678] sm:$0xff]  ;;  %v3147_v49 = vld [vmem:[#allocation17 + $0x620] sm:$0xff] }
 0x530   : > { %v5860_v58 = vpack.c.bf16 %v3158_v25, %v3150_v54  ;;  %v5734_v50 = vpack.c.bf16 %v3155_v35, %v3147_v49  ;;  %v3221_v54 = vld [vmem:[#allocation17 + $0x870] sm:$0xff]  ;;  %v3228_v25 = vld [vmem:[#allocation17 + $0x8a8] sm:$0xff]  ;;  %v3238_v49 = vld [vmem:[#allocation17 + $0x8f8] sm:$0xff] }
 0x531   : > { %5715 = vmatpush1.bf16.msra.mxu0 %v5714_v34  ;;  %v3172_v34 = vld [vmem:[#allocation17 + $0x6e8] sm:$0xff]  ;;  %v5878_v35 = vpack.c.bf16 %v3221_v54, %v3213_v18  ;;  %v3293_v18 = vld [vmem:[#allocation17 + $0xab0] sm:$0xff] }
 0x532   : > { %5843 = vmatpush1.bf16.msra.mxu1 %v5842_v44  ;;  %5717 = vmatprep.subr.bf16.mxu0 %v5716_v42  ;;  %v3166_v44 = vld [vmem:[#allocation17 + $0x6b8] sm:$0xff]  ;;  %v5736_v17 = vpack.c.bf16 %v3172_v34, %v3164_v9  ;;  %v3237_v34 = vld [vmem:[#allocation17 + $0x8f0] sm:$0xff] }
 0x533   : > { %5845 = vmatprep.subr.bf16.mxu1 %v5844_v26  ;;  %v3174_v42 = vld [vmem:[#allocation17 + $0x6f8] sm:$0xff]  ;;  %v3163_v26 = vld [vmem:[#allocation17 + $0x6a0] sm:$0xff] }
 0x534   : > { %v5864_v56 = vpack.c.bf16 %v3174_v42, %v3166_v44  ;;  %v5738_v48 = vpack.c.bf16 %v3171_v41, %v3163_v26  ;;  %v3244_v44 = vld [vmem:[#allocation17 + $0x928] sm:$0xff]  ;;  %v5882_v41 = vpack.c.bf16 %v3237_v34, %v3229_v11  ;;  %v3307_v11 = vld [vmem:[#allocation17 + $0xb20] sm:$0xff]  ;;  %v3309_v34 = vld [vmem:[#allocation17 + $0xb30] sm:$0xff] }
 0x535   : > { %5719 = vmatpush1.bf16.msra.mxu0 %v5718_v57  ;;  %v3188_v57 = vld [vmem:[#allocation17 + $0x768] sm:$0xff] }
 0x536   : > { %5847 = vmatpush1.bf16.msra.mxu1 %v5846_v23  ;;  %5721 = vmatprep.subr.bf16.mxu0 %v5720_v10  ;;  %v3182_v23 = vld [vmem:[#allocation17 + $0x738] sm:$0xff]  ;;  %v5740_v28 = vpack.c.bf16 %v3188_v57, %v3180_v30  ;;  %v3252_v42 = vld [vmem:[#allocation17 + $0x968] sm:$0xff]  ;;  %v3245_v30 = vld [vmem:[#allocation17 + $0x930] sm:$0xff] }
 0x537   : > { %5849 = vmatprep.subr.bf16.mxu1 %v5848_v33  ;;  %v3190_v10 = vld [vmem:[#allocation17 + $0x778] sm:$0xff]  ;;  %v3179_v33 = vld [vmem:[#allocation17 + $0x720] sm:$0xff]  ;;  %v5756_v21 = vpack.c.bf16 %v3252_v42, %v3244_v44  ;;  %v3317_v42 = vld [vmem:[#allocation17 + $0xb70] sm:$0xff] }
 0x538   : > { %v5868_v47 = vpack.c.bf16 %v3190_v10, %v3182_v23  ;;  %v5742_v62 = vpack.c.bf16 %v3187_v31, %v3179_v33  ;;  %v3253_v23 = vld [vmem:[#allocation17 + $0x970] sm:$0xff]  ;;  %v3260_v10 = vld [vmem:[#allocation17 + $0x9a8] sm:$0xff] }
 0x539   : > { %5723 = vmatpush1.bf16.msra.mxu0 %v5722_v2  ;;  %v3204_v2 = vld [vmem:[#allocation17 + $0x7e8] sm:$0xff]  ;;  %v5886_v33 = vpack.c.bf16 %v3253_v23, %v3245_v30  ;;  %v3331_v30 = vld [vmem:[#allocation17 + $0xbe0] sm:$0xff] }
 0x53a   : > { %5851 = vmatpush1.bf16.msra.mxu1 %v5850_v38  ;;  %5725 = vmatprep.subr.bf16.mxu0 %v5724_v63  ;;  %v3198_v38 = vld [vmem:[#allocation17 + $0x7b8] sm:$0xff]  ;;  %v5744_v22 = vpack.c.bf16 %v3204_v2, %v3196_v14  ;;  %v3276_v2 = vld [vmem:[#allocation17 + $0xa28] sm:$0xff] }
 0x53b   : > { %5853 = vmatprep.subr.bf16.mxu1 %v5852_v45  ;;  %v3206_v63 = vld [vmem:[#allocation17 + $0x7f8] sm:$0xff]  ;;  %v3195_v45 = vld [vmem:[#allocation17 + $0x7a0] sm:$0xff] }
 0x53c   : > { %v5872_v51 = vpack.c.bf16 %v3206_v63, %v3198_v38  ;;  %v5746_v3 = vpack.c.bf16 %v3203_v6, %v3195_v45  ;;  %v3284_v38 = vld [vmem:[#allocation17 + $0xa68] sm:$0xff]  ;;  %v3278_v63 = vld [vmem:[#allocation17 + $0xa38] sm:$0xff]  ;;  %v3275_v6 = vld [vmem:[#allocation17 + $0xa20] sm:$0xff] }
 0x53d   : > { %5727 = vmatpush1.bf16.msra.mxu0 %v5726_v39  ;;  %v3220_v39 = vld [vmem:[#allocation17 + $0x868] sm:$0xff]  ;;  %v5764_v45 = vpack.c.bf16 %v3284_v38, %v3276_v2  ;;  %v3349_v2 = vld [vmem:[#allocation17 + $0xc70] sm:$0xff] }
 0x53e   : > { %5855 = vmatpush1.bf16.msra.mxu1 %v5854_v16  ;;  %5729 = vmatprep.subr.bf16.mxu0 %v5728_v59  ;;  %v3214_v16 = vld [vmem:[#allocation17 + $0x838] sm:$0xff]  ;;  %v5748_v46 = vpack.c.bf16 %v3220_v39, %v3212_v32  ;;  %v3285_v32 = vld [vmem:[#allocation17 + $0xa70] sm:$0xff]  ;;  %v3292_v39 = vld [vmem:[#allocation17 + $0xaa8] sm:$0xff] }
 0x53f   : > { %5857 = vmatprep.subr.bf16.mxu1 %v5856_v60  ;;  %v3222_v59 = vld [vmem:[#allocation17 + $0x878] sm:$0xff]  ;;  %v3211_v60 = vld [vmem:[#allocation17 + $0x820] sm:$0xff]  ;;  %v3356_v38 = vld [vmem:[#allocation17 + $0xca8] sm:$0xff] }
 0x540   : > { %v5876_v29 = vpack.c.bf16 %v3222_v59, %v3214_v16  ;;  %v3300_v16 = vld [vmem:[#allocation17 + $0xae8] sm:$0xff]  ;;  %v3294_v59 = vld [vmem:[#allocation17 + $0xab8] sm:$0xff] }
 0x541   : > { %5731 = vmatpush1.bf16.msra.mxu0 %v5730_v61  ;;  %v3236_v61 = vld [vmem:[#allocation17 + $0x8e8] sm:$0xff] }
 0x542   : > { %5859 = vmatpush1.bf16.msra.mxu1 %v5858_v4  ;;  %5733 = vmatprep.subr.bf16.mxu0 %v5732_v15  ;;  %v5750_v4 = vpack.c.bf16 %v3219_v53, %v3211_v60  ;;  %v3230_v15 = vld [vmem:[#allocation17 + $0x8b8] sm:$0xff]  ;;  %v5752_v9 = vpack.c.bf16 %v3236_v61, %v3228_v25  ;;  %v5768_v60 = vpack.c.bf16 %v3300_v16, %v3292_v39  ;;  %v3291_v53 = vld [vmem:[#allocation17 + $0xaa0] sm:$0xff]  ;;  %v3301_v25 = vld [vmem:[#allocation17 + $0xaf0] sm:$0xff] }
 0x543   : > { %5861 = vmatprep.subr.bf16.mxu1 %v5860_v58  ;;  %v3235_v58 = vld [vmem:[#allocation17 + $0x8e0] sm:$0xff]  ;;  %v3308_v61 = vld [vmem:[#allocation17 + $0xb28] sm:$0xff]  ;;  %v3365_v39 = vld [vmem:[#allocation17 + $0xcf0] sm:$0xff] }
 0x544   : > { %v5754_v26 = vpack.c.bf16 %v3235_v58, %v3227_v12  ;;  %v5898_v12 = vpack.c.bf16 %v3301_v25, %v3293_v18  ;;  %v3372_v16 = vld [vmem:[#allocation17 + $0xd28] sm:$0xff]  ;;  %v3379_v18 = vld [vmem:[#allocation17 + $0xd60] sm:$0xff] }
 0x545   : > { %5735 = vmatpush1.bf16.msra.mxu0 %v5734_v50  ;;  %v5880_v50 = vpack.c.bf16 %v3238_v49, %v3230_v15  ;;  %v3310_v15 = vld [vmem:[#allocation17 + $0xb38] sm:$0xff] }
 0x546   : > { %5863 = vmatpush1.bf16.msra.mxu1 %v5862_v27  ;;  %5737 = vmatprep.subr.bf16.mxu0 %v5736_v17  ;;  %v3246_v27 = vld [vmem:[#allocation17 + $0x938] sm:$0xff] }
 0x547   : > { %5865 = vmatprep.subr.bf16.mxu1 %v5864_v56  ;;  %v3254_v17 = vld [vmem:[#allocation17 + $0x978] sm:$0xff]  ;;  %v3243_v56 = vld [vmem:[#allocation17 + $0x920] sm:$0xff] }
 0x548   : > { %v5884_v57 = vpack.c.bf16 %v3254_v17, %v3246_v27  ;;  %v3318_v49 = vld [vmem:[#allocation17 + $0xb78] sm:$0xff]  ;;  %v3332_v27 = vld [vmem:[#allocation17 + $0xbe8] sm:$0xff] }
 0x549   : > { %5739 = vmatpush1.bf16.msra.mxu0 %v5738_v48  ;;  %v3268_v48 = vld [vmem:[#allocation17 + $0x9e8] sm:$0xff]  ;;  %v5900_v44 = vpack.c.bf16 %v3318_v49, %v3310_v15  ;;  %v3326_v17 = vld [vmem:[#allocation17 + $0xbb8] sm:$0xff] }
 0x54a   : > { %5867 = vmatpush1.bf16.msra.mxu1 %v5866_v43  ;;  %5741 = vmatprep.subr.bf16.mxu0 %v5740_v28  ;;  %v3262_v43 = vld [vmem:[#allocation17 + $0x9b8] sm:$0xff]  ;;  %v5758_v28 = vpack.c.bf16 %v3251_v1, %v3243_v56  ;;  %v5760_v31 = vpack.c.bf16 %v3268_v48, %v3260_v10  ;;  %v3323_v1 = vld [vmem:[#allocation17 + $0xba0] sm:$0xff]  ;;  %v3333_v10 = vld [vmem:[#allocation17 + $0xbf0] sm:$0xff] }
 0x54b   : > { %5869 = vmatprep.subr.bf16.mxu1 %v5868_v47  ;;  %v3267_v47 = vld [vmem:[#allocation17 + $0x9e0] sm:$0xff]  ;;  %v3340_v48 = vld [vmem:[#allocation17 + $0xc28] sm:$0xff]  ;;  %v3390_v49 = vld [vmem:[#allocation17 + $0xdb8] sm:$0xff] }
 0x54c   : > { %v3396_v15 = vld [vmem:[#allocation17 + $0xde8] sm:$0xff] }
 0x54d   : > { %5743 = vmatpush1.bf16.msra.mxu0 %v5742_v62  ;;  %v3286_v62 = vld [vmem:[#allocation17 + $0xa78] sm:$0xff] }
 0x54e   : > { %5871 = vmatpush1.bf16.msra.mxu1 %v5870_v5  ;;  %5745 = vmatprep.subr.bf16.mxu0 %v5744_v22  ;;  %v5762_v5 = vpack.c.bf16 %v3267_v47, %v3259_v24  ;;  %v5892_v37 = vpack.c.bf16 %v3286_v62, %v3278_v63  ;;  %v3339_v47 = vld [vmem:[#allocation17 + $0xc20] sm:$0xff]  ;;  %v3364_v63 = vld [vmem:[#allocation17 + $0xce8] sm:$0xff]  ;;  %v3358_v62 = vld [vmem:[#allocation17 + $0xcb8] sm:$0xff] }
 0x54f   : > { %5873 = vmatprep.subr.bf16.mxu1 %v5872_v51  ;;  %v3277_v51 = vld [vmem:[#allocation17 + $0xa30] sm:$0xff] }
 0x551   : > { %5747 = vmatpush1.bf16.msra.mxu0 %v5746_v3  ;;  %v3302_v3 = vld [vmem:[#allocation17 + $0xaf8] sm:$0xff] }
 0x552   : > { %5875 = vmatpush1.bf16.msra.mxu1 %v5874_v36  ;;  %5749 = vmatprep.subr.bf16.mxu0 %v5748_v46  ;;  %v5766_v36 = vpack.c.bf16 %v3283_v55, %v3275_v6  ;;  %v5894_v46 = vpack.c.bf16 %v3285_v32, %v3277_v51  ;;  %v5896_v54 = vpack.c.bf16 %v3302_v3, %v3294_v59  ;;  %v3355_v55 = vld [vmem:[#allocation17 + $0xca0] sm:$0xff]  ;;  %v3380_v59 = vld [vmem:[#allocation17 + $0xd68] sm:$0xff]  ;;  %v3374_v3 = vld [vmem:[#allocation17 + $0xd38] sm:$0xff] }
 0x553   : > { %5877 = vmatprep.subr.bf16.mxu1 %v5876_v29  ;;  %v3299_v29 = vld [vmem:[#allocation17 + $0xae0] sm:$0xff]  ;;  %v5784_v6 = vpack.c.bf16 %v3364_v63, %v3356_v38  ;;  %v3429_v38 = vld [vmem:[#allocation17 + $0xef0] sm:$0xff]  ;;  %v3436_v63 = vld [vmem:[#allocation17 + $0xf28] sm:$0xff] }
 0x554   : > { %3854 = vmatmul.mubr.f32.vlgmr.msra.gmra.mrb[26].mxu0 %v7915_v40  ;;  %v3363_v51 = vld [vmem:[#allocation17 + $0xce0] sm:$0xff] }
 0x555   : > { %3996 = vmatmul.mubr.f32.vlgmr.msra.gmra.mrb[26].mxu1 %v7915_v40  ;;  %5751 = vmatpush1.bf16.msra.mxu0 %v5750_v4  ;;  %v3270_v40 = vld [vmem:[#allocation17 + $0x9f8] sm:$0xff]  ;;  %v3316_v4 = vld [vmem:[#allocation17 + $0xb68] sm:$0xff] }
 0x556   : > { %3924 = vmatprep.mubr.f32.mxu0 %v7919_v7  ;;  %5879 = vmatpush1.bf16.msra.mxu1 %v5878_v35  ;;  %v5888_v14 = vpack.c.bf16 %v3270_v40, %v3262_v43  ;;  %v5770_v35 = vpack.c.bf16 %v3299_v29, %v3291_v53  ;;  %v5772_v58 = vpack.c.bf16 %v3316_v4, %v3308_v61  ;;  %v3348_v43 = vld [vmem:[#allocation17 + $0xc68] sm:$0xff]  ;;  %v3342_v40 = vld [vmem:[#allocation17 + $0xc38] sm:$0xff]  ;;  %v3371_v29 = vld [vmem:[#allocation17 + $0xd20] sm:$0xff] }
 0x557   : > { %4066 = vmatprep.mubr.f32.mxu1 %v7919_v7  ;;  %5753 = vmatprep.subr.bf16.mxu0 %v5752_v9  ;;  %v3269_v7 = vld [vmem:[#allocation17 + $0x9f0] sm:$0xff]  ;;  %v3315_v9 = vld [vmem:[#allocation17 + $0xb60] sm:$0xff]  ;;  %v5780_v24 = vpack.c.bf16 %v3348_v43, %v3340_v48  ;;  %v5788_v53 = vpack.c.bf16 %v3380_v59, %v3372_v16  ;;  %v3388_v4 = vld [vmem:[#allocation17 + $0xda8] sm:$0xff] }
 0x558   : > { %5881 = vmatprep.subr.bf16.mxu1 %v5880_v50  ;;  %v5890_v22 = vpack.c.bf16 %v3269_v7, %v3261_v0  ;;  %v3324_v50 = vld [vmem:[#allocation17 + $0xba8] sm:$0xff]  ;;  %v3347_v0 = vld [vmem:[#allocation17 + $0xc60] sm:$0xff]  ;;  %v3381_v61 = vld [vmem:[#allocation17 + $0xd70] sm:$0xff] }
 0x559   : > { %5755 = vmatpush1.bf16.msra.mxu0 %v5754_v26  ;;  %v3334_v26 = vld [vmem:[#allocation17 + $0xbf8] sm:$0xff]  ;;  %v5776_v56 = vpack.c.bf16 %v3332_v27, %v3324_v50  ;;  %v3397_v50 = vld [vmem:[#allocation17 + $0xdf0] sm:$0xff]  ;;  %v3404_v27 = vld [vmem:[#allocation17 + $0xe28] sm:$0xff] }
 0x55a   : > { %5883 = vmatpush1.bf16.msra.mxu1 %v5882_v41  ;;  %5757 = vmatprep.subr.bf16.mxu0 %v5756_v21  ;;  %v5774_v41 = vpack.c.bf16 %v3315_v9, %v3307_v11  ;;  %v5902_v21 = vpack.c.bf16 %v3317_v42, %v3309_v34  ;;  %v5904_v23 = vpack.c.bf16 %v3334_v26, %v3326_v17  ;;  %v3387_v9 = vld [vmem:[#allocation17 + $0xda0] sm:$0xff]  ;;  %v3412_v17 = vld [vmem:[#allocation17 + $0xe68] sm:$0xff]  ;;  %v3406_v26 = vld [vmem:[#allocation17 + $0xe38] sm:$0xff] }
 0x55b   : > { %5885 = vmatprep.subr.bf16.mxu1 %v5884_v57  ;;  %v3325_v57 = vld [vmem:[#allocation17 + $0xbb0] sm:$0xff]  ;;  %v5792_v11 = vpack.c.bf16 %v3396_v15, %v3388_v4  ;;  %v3395_v34 = vld [vmem:[#allocation17 + $0xde0] sm:$0xff]  ;;  %v3420_v43 = vld [vmem:[#allocation17 + $0xea8] sm:$0xff] }
 0x55c   : > { %v3413_v48 = vld [vmem:[#allocation17 + $0xe70] sm:$0xff]  ;;  %v3452_v59 = vld [vmem:[#allocation17 + $0xfa8] sm:$0xff] }
 0x55d   : > { %5759 = vmatpush1.bf16.msra.mxu0 %v5758_v28  ;;  %v3350_v28 = vld [vmem:[#allocation17 + $0xc78] sm:$0xff]  ;;  %v3445_v16 = vld [vmem:[#allocation17 + $0xf70] sm:$0xff]  ;;  %v4097_v15 = vld [vmem:[#allocation20 + $0x80] sm:$0xff] }
 0x55e   : > { %5887 = vmatpush1.bf16.msra.mxu1 %v5886_v33  ;;  %5761 = vmatprep.subr.bf16.mxu0 %v5760_v31  ;;  %v5778_v33 = vpack.c.bf16 %v3331_v30, %v3323_v1  ;;  %v5906_v31 = vpack.c.bf16 %v3333_v10, %v3325_v57  ;;  %v5908_v7 = vpack.c.bf16 %v3350_v28, %v3342_v40  ;;  %v3403_v30 = vld [vmem:[#allocation17 + $0xe20] sm:$0xff]  ;;  %v3428_v40 = vld [vmem:[#allocation17 + $0xee8] sm:$0xff]  ;;  %v3422_v28 = vld [vmem:[#allocation17 + $0xeb8] sm:$0xff] }
 0x55f   : > { %5889 = vmatprep.subr.bf16.mxu1 %v5888_v14  ;;  %v3341_v14 = vld [vmem:[#allocation17 + $0xc30] sm:$0xff]  ;;  %v5796_v1 = vpack.c.bf16 %v3412_v17, %v3404_v27  ;;  %v3411_v57 = vld [vmem:[#allocation17 + $0xe60] sm:$0xff]  ;;  %v4099_v17 = vld [vmem:[#allocation20 + $0x90] sm:$0xff] }
 0x560   : > { %v3461_v4 = vld [vmem:[#allocation17 + $0xff0] sm:$0xff] }
 0x561   : > { %5763 = vmatpush1.bf16.msra.mxu0 %v5762_v5  ;;  %v3366_v5 = vld [vmem:[#allocation17 + $0xcf8] sm:$0xff]  ;;  %v4114_v27 = vld [vmem:[#allocation20 + $0x108] sm:$0xff] }
 0x562   : > { %5891 = vmatpush1.bf16.msra.mxu1 %v5890_v22  ;;  %5765 = vmatprep.subr.bf16.mxu0 %v5764_v45  ;;  %v5782_v22 = vpack.c.bf16 %v3347_v0, %v3339_v47  ;;  %v5910_v45 = vpack.c.bf16 %v3349_v2, %v3341_v14  ;;  %v5912_v32 = vpack.c.bf16 %v3366_v5, %v3358_v62  ;;  %v3419_v0 = vld [vmem:[#allocation17 + $0xea0] sm:$0xff]  ;;  %v3444_v62 = vld [vmem:[#allocation17 + $0xf68] sm:$0xff]  ;;  %v3438_v5 = vld [vmem:[#allocation17 + $0xf38] sm:$0xff] }
 0x563   : > { %5893 = vmatprep.subr.bf16.mxu1 %v5892_v37  ;;  %v3357_v37 = vld [vmem:[#allocation17 + $0xcb0] sm:$0xff]  ;;  %v5800_v47 = vpack.c.bf16 %v3428_v40, %v3420_v43  ;;  %v3427_v14 = vld [vmem:[#allocation17 + $0xee0] sm:$0xff]  ;;  %v4101_v40 = vld [vmem:[#allocation20 + $0xa0] sm:$0xff] }
 0x564   : > { %v4116_v43 = vld [vmem:[#allocation20 + $0x118] sm:$0xff] }
 0x565   : > { %5767 = vmatpush1.bf16.msra.mxu0 %v5766_v36  ;;  %v3382_v36 = vld [vmem:[#allocation17 + $0xd78] sm:$0xff] }
 0x566   : > { %5895 = vmatpush1.bf16.msra.mxu1 %v5894_v46  ;;  %5769 = vmatprep.subr.bf16.mxu0 %v5768_v60  ;;  %v5786_v46 = vpack.c.bf16 %v3363_v51, %v3355_v55  ;;  %v5914_v60 = vpack.c.bf16 %v3365_v39, %v3357_v37  ;;  %v5916_v25 = vpack.c.bf16 %v3382_v36, %v3374_v3  ;;  %v3435_v51 = vld [vmem:[#allocation17 + $0xf20] sm:$0xff]  ;;  %v3460_v3 = vld [vmem:[#allocation17 + $0xfe8] sm:$0xff]  ;;  %v3454_v36 = vld [vmem:[#allocation17 + $0xfb8] sm:$0xff] }
 0x567   : > { %5897 = vmatprep.subr.bf16.mxu1 %v5896_v54  ;;  %v3373_v54 = vld [vmem:[#allocation17 + $0xd30] sm:$0xff]  ;;  %v5804_v55 = vpack.c.bf16 %v3444_v62, %v3436_v63  ;;  %v3443_v37 = vld [vmem:[#allocation17 + $0xf60] sm:$0xff]  ;;  %v4103_v62 = vld [vmem:[#allocation20 + $0xb0] sm:$0xff] }
 0x568   : > { %v4118_v63 = vld [vmem:[#allocation20 + $0x128] sm:$0xff] }
 0x569   : > { %5771 = vmatpush1.bf16.msra.mxu0 %v5770_v35  ;;  %v3398_v35 = vld [vmem:[#allocation17 + $0xdf8] sm:$0xff] }
 0x56a   : > { %5899 = vmatpush1.bf16.msra.mxu1 %v5898_v12  ;;  %5773 = vmatprep.subr.bf16.mxu0 %v5772_v58  ;;  %v5790_v12 = vpack.c.bf16 %v3379_v18, %v3371_v29  ;;  %v5918_v58 = vpack.c.bf16 %v3381_v61, %v3373_v54  ;;  %v5920_v42 = vpack.c.bf16 %v3398_v35, %v3390_v49  ;;  %v3451_v18 = vld [vmem:[#allocation17 + $0xfa0] sm:$0xff]  ;;  %v4098_v49 = vld [vmem:[#allocation20 + $0x88] sm:$0xff]  ;;  %v4129_v35 = vld [vmem:[#allocation20 + $0x180] sm:$0xff] }
 0x56b   : > { %5901 = vmatprep.subr.bf16.mxu1 %v5900_v44  ;;  %v3389_v44 = vld [vmem:[#allocation17 + $0xdb0] sm:$0xff]  ;;  %v5808_v29 = vpack.c.bf16 %v3460_v3, %v3452_v59  ;;  %v3459_v54 = vld [vmem:[#allocation17 + $0xfe0] sm:$0xff]  ;;  %v4105_v59 = vld [vmem:[#allocation20 + $0xc0] sm:$0xff] }
 0x56c   : > { %v4106_v3 = vld [vmem:[#allocation20 + $0xc8] sm:$0xff] }
 0x56d   : > { %5775 = vmatpush1.bf16.msra.mxu0 %v5774_v41  ;;  %v3414_v41 = vld [vmem:[#allocation17 + $0xe78] sm:$0xff] }
 0x56e   : > { %5903 = vmatpush1.bf16.msra.mxu1 %v5902_v21  ;;  %5777 = vmatprep.subr.bf16.mxu0 %v5776_v56  ;;  %v5794_v21 = vpack.c.bf16 %v3395_v34, %v3387_v9  ;;  %v5922_v56 = vpack.c.bf16 %v3397_v50, %v3389_v44  ;;  %v5924_v10 = vpack.c.bf16 %v3414_v41, %v3406_v26  ;;  %v4081_v34 = vld [vmem:[#allocation20] sm:$0xff]  ;;  %v4082_v44 = vld [vmem:[#allocation20 + $0x8] sm:$0xff]  ;;  %v4100_v26 = vld [vmem:[#allocation20 + $0x98] sm:$0xff] }
 0x56f   : > { %5905 = vmatprep.subr.bf16.mxu1 %v5904_v23  ;;  %v3405_v23 = vld [vmem:[#allocation17 + $0xe30] sm:$0xff]  ;;  %v5940_v9 = vpack.c.bf16 %v4098_v49, %v4097_v15  ;;  %v4131_v41 = vld [vmem:[#allocation20 + $0x190] sm:$0xff]  ;;  %v4108_v49 = vld [vmem:[#allocation20 + $0xd8] sm:$0xff] }
 0x570   : > { %v4107_v15 = vld [vmem:[#allocation20 + $0xd0] sm:$0xff] }
 0x571   : > { %5779 = vmatpush1.bf16.msra.mxu0 %v5778_v33  ;;  %v3430_v33 = vld [vmem:[#allocation17 + $0xef8] sm:$0xff] }
 0x572   : > { %5907 = vmatpush1.bf16.msra.mxu1 %v5906_v31  ;;  %5781 = vmatprep.subr.bf16.mxu0 %v5780_v24  ;;  %v5798_v31 = vpack.c.bf16 %v3411_v57, %v3403_v30  ;;  %v5926_v24 = vpack.c.bf16 %v3413_v48, %v3405_v23  ;;  %v5928_v2 = vpack.c.bf16 %v3430_v33, %v3422_v28  ;;  %v4083_v57 = vld [vmem:[#allocation20 + $0x10] sm:$0xff]  ;;  %v4084_v23 = vld [vmem:[#allocation20 + $0x18] sm:$0xff]  ;;  %v4102_v28 = vld [vmem:[#allocation20 + $0xa8] sm:$0xff] }
 0x573   : > { %5909 = vmatprep.subr.bf16.mxu1 %v5908_v7  ;;  %v3421_v7 = vld [vmem:[#allocation17 + $0xeb0] sm:$0xff]  ;;  %v5944_v30 = vpack.c.bf16 %v4100_v26, %v4099_v17  ;;  %v4133_v33 = vld [vmem:[#allocation20 + $0x1a0] sm:$0xff] }
 0x574   : > { %v4109_v17 = vld [vmem:[#allocation20 + $0xe0] sm:$0xff]  ;;  %v4110_v26 = vld [vmem:[#allocation20 + $0xe8] sm:$0xff] }
 0x575   : > { %5783 = vmatpush1.bf16.msra.mxu0 %v5782_v22  ;;  %v3446_v22 = vld [vmem:[#allocation17 + $0xf78] sm:$0xff] }
 0x576   : > { %5911 = vmatpush1.bf16.msra.mxu1 %v5910_v45  ;;  %5785 = vmatprep.subr.bf16.mxu0 %v5784_v6  ;;  %v5802_v45 = vpack.c.bf16 %v3427_v14, %v3419_v0  ;;  %v5930_v6 = vpack.c.bf16 %v3429_v38, %v3421_v7  ;;  %v5932_v39 = vpack.c.bf16 %v3446_v22, %v3438_v5  ;;  %v4085_v14 = vld [vmem:[#allocation20 + $0x20] sm:$0xff]  ;;  %v4086_v7 = vld [vmem:[#allocation20 + $0x28] sm:$0xff]  ;;  %v4104_v5 = vld [vmem:[#allocation20 + $0xb8] sm:$0xff] }
 0x577   : > { %5913 = vmatprep.subr.bf16.mxu1 %v5912_v32  ;;  %v3437_v32 = vld [vmem:[#allocation17 + $0xf30] sm:$0xff]  ;;  %v5948_v0 = vpack.c.bf16 %v4102_v28, %v4101_v40  ;;  %v4135_v22 = vld [vmem:[#allocation20 + $0x1b0] sm:$0xff]  ;;  %v4112_v28 = vld [vmem:[#allocation20 + $0xf8] sm:$0xff] }
 0x578   : > { %v4111_v40 = vld [vmem:[#allocation20 + $0xf0] sm:$0xff] }
 0x579   : > { %5787 = vmatpush1.bf16.msra.mxu0 %v5786_v46  ;;  %v3462_v46 = vld [vmem:[#allocation17 + $0xff8] sm:$0xff] }
 0x57a   : > { %5915 = vmatpush1.bf16.msra.mxu1 %v5914_v60  ;;  %5789 = vmatprep.subr.bf16.mxu0 %v5788_v53  ;;  %v5806_v60 = vpack.c.bf16 %v3443_v37, %v3435_v51  ;;  %v5934_v53 = vpack.c.bf16 %v3445_v16, %v3437_v32  ;;  %v5936_v61 = vpack.c.bf16 %v3462_v46, %v3454_v36  ;;  %v4087_v51 = vld [vmem:[#allocation20 + $0x30] sm:$0xff]  ;;  %v4088_v37 = vld [vmem:[#allocation20 + $0x38] sm:$0xff]  ;;  %v4137_v36 = vld [vmem:[#allocation20 + $0x1c0] sm:$0xff] }
 0x57b   : > { %5917 = vmatprep.subr.bf16.mxu1 %v5916_v25  ;;  %v3453_v25 = vld [vmem:[#allocation17 + $0xfb0] sm:$0xff]  ;;  %v4119_v32 = vld [vmem:[#allocation20 + $0x130] sm:$0xff]  ;;  %v4120_v16 = vld [vmem:[#allocation20 + $0x138] sm:$0xff] }
 0x57c   : > { %v4138_v46 = vld [vmem:[#allocation20 + $0x1c8] sm:$0xff] }
 0x57d   : > { %5791 = vmatpush1.bf16.msra.mxu0 %v5790_v12  ;;  %v4130_v12 = vld [vmem:[#allocation20 + $0x188] sm:$0xff] }
 0x57e   : > { %5919 = vmatpush1.bf16.msra.mxu1 %v5918_v58  ;;  %5793 = vmatprep.subr.bf16.mxu0 %v5792_v11  ;;  %v5810_v58 = vpack.c.bf16 %v3459_v54, %v3451_v18  ;;  %v5938_v11 = vpack.c.bf16 %v3461_v4, %v3453_v25  ;;  %v5972_v50 = vpack.c.bf16 %v4130_v12, %v4129_v35  ;;  %v4089_v18 = vld [vmem:[#allocation20 + $0x40] sm:$0xff]  ;;  %v4090_v54 = vld [vmem:[#allocation20 + $0x48] sm:$0xff]  ;;  %v4139_v35 = vld [vmem:[#allocation20 + $0x1d0] sm:$0xff] }
 0x57f   : > { %5921 = vmatprep.subr.bf16.mxu1 %v5920_v42  ;;  %v4113_v42 = vld [vmem:[#allocation20 + $0x100] sm:$0xff]  ;;  %v4122_v4 = vld [vmem:[#allocation20 + $0x148] sm:$0xff]  ;;  %v4140_v12 = vld [vmem:[#allocation20 + $0x1d8] sm:$0xff] }
 0x580   : > { %v4121_v25 = vld [vmem:[#allocation20 + $0x140] sm:$0xff] }
 0x581   : > { %5795 = vmatpush1.bf16.msra.mxu0 %v5794_v21  ;;  %v4132_v21 = vld [vmem:[#allocation20 + $0x198] sm:$0xff] }
 0x582   : > { %5923 = vmatpush1.bf16.msra.mxu1 %v5922_v56  ;;  %5797 = vmatprep.subr.bf16.mxu0 %v5796_v1  ;;  %v5942_v56 = vpack.c.bf16 %v4082_v44, %v4081_v34  ;;  %v5974_v1 = vpack.c.bf16 %v4114_v27, %v4113_v42  ;;  %v5976_v48 = vpack.c.bf16 %v4132_v21, %v4131_v41  ;;  %v4091_v34 = vld [vmem:[#allocation20 + $0x50] sm:$0xff]  ;;  %v4092_v44 = vld [vmem:[#allocation20 + $0x58] sm:$0xff]  ;;  %v4141_v41 = vld [vmem:[#allocation20 + $0x1e0] sm:$0xff] }
 0x583   : > { %5925 = vmatprep.subr.bf16.mxu1 %v5924_v10  ;;  %v4115_v10 = vld [vmem:[#allocation20 + $0x110] sm:$0xff]  ;;  %v4124_v27 = vld [vmem:[#allocation20 + $0x158] sm:$0xff]  ;;  %v4142_v21 = vld [vmem:[#allocation20 + $0x1e8] sm:$0xff] }
 0x584   : > { %v4123_v42 = vld [vmem:[#allocation20 + $0x150] sm:$0xff] }
 0x585   : > { %5799 = vmatpush1.bf16.msra.mxu0 %v5798_v31  ;;  %v4134_v31 = vld [vmem:[#allocation20 + $0x1a8] sm:$0xff] }
 0x586   : > { %5927 = vmatpush1.bf16.msra.mxu1 %v5926_v24  ;;  %5801 = vmatprep.subr.bf16.mxu0 %v5800_v47  ;;  %v5946_v24 = vpack.c.bf16 %v4084_v23, %v4083_v57  ;;  %v5978_v47 = vpack.c.bf16 %v4116_v43, %v4115_v10  ;;  %v5980_v38 = vpack.c.bf16 %v4134_v31, %v4133_v33  ;;  %v4093_v57 = vld [vmem:[#allocation20 + $0x60] sm:$0xff]  ;;  %v4094_v23 = vld [vmem:[#allocation20 + $0x68] sm:$0xff]  ;;  %v4143_v33 = vld [vmem:[#allocation20 + $0x1f0] sm:$0xff] }
 0x587   : > { %5929 = vmatprep.subr.bf16.mxu1 %v5928_v2  ;;  %v4117_v2 = vld [vmem:[#allocation20 + $0x120] sm:$0xff]  ;;  %v4126_v43 = vld [vmem:[#allocation20 + $0x168] sm:$0xff]  ;;  %v4144_v31 = vld [vmem:[#allocation20 + $0x1f8] sm:$0xff] }
 0x588   : > { %v4125_v10 = vld [vmem:[#allocation20 + $0x160] sm:$0xff] }
 0x589   : > { %5803 = vmatpush1.bf16.msra.mxu0 %v5802_v45  ;;  %v4136_v45 = vld [vmem:[#allocation20 + $0x1b8] sm:$0xff] }
 0x58a   : > { %5931 = vmatpush1.bf16.msra.mxu1 %v5930_v6  ;;  %5805 = vmatprep.subr.bf16.mxu0 %v5804_v55  ;;  %v5950_v6 = vpack.c.bf16 %v4086_v7, %v4085_v14  ;;  %v5952_v55 = vpack.c.bf16 %v4104_v5, %v4103_v62  ;;  %v4095_v14 = vld [vmem:[#allocation20 + $0x70] sm:$0xff]  ;;  %v4096_v7 = vld [vmem:[#allocation20 + $0x78] sm:$0xff]  ;;  %v4161_v62 = vld [vmem:[#allocation20 + $0x280] sm:$0xff] }
 0x58b   : > { %5933 = vmatprep.subr.bf16.mxu1 %v5932_v39  ;;  %v5984_v39 = vpack.c.bf16 %v4136_v45, %v4135_v22  ;;  %v4162_v5 = vld [vmem:[#allocation20 + $0x288] sm:$0xff]  ;;  %v4193_v22 = vld [vmem:[#allocation20 + $0x380] sm:$0xff] }
 0x58c   : > { %v4194_v45 = vld [vmem:[#allocation20 + $0x388] sm:$0xff] }
 0x58d   : > { %5807 = vmatpush1.bf16.msra.mxu0 %v5806_v60  ;;  %v5954_v60 = vpack.c.bf16 %v4088_v37, %v4087_v51  ;;  %v6036_v51 = vpack.c.bf16 %v4194_v45, %v4193_v22  ;;  %v7940_v37 = vld [vmem:[#allocation19] sm:$0xff]  ;;  %v4170_v22 = vld [vmem:[#allocation20 + $0x2c8] sm:$0xff]  ;;  %v4201_v45 = vld [vmem:[#allocation20 + $0x3c0] sm:$0xff] }
 0x58e   : > { %5935 = vmatpush1.bf16.msra.mxu1 %v5934_v53  ;;  %5809 = vmatprep.subr.bf16.mxu0 %v5808_v29  ;;  %v5986_v53 = vpack.c.bf16 %v4120_v16, %v4119_v32  ;;  %v5956_v29 = vpack.c.bf16 %v4106_v3, %v4105_v59  ;;  %v3468_v32 = vrot.slane %v7940_v37, %v7317_v52  ;;  %v4163_v52 = vld [vmem:[#allocation20 + $0x290] sm:$0xff] }
 0x58f   : > { %5937 = vmatprep.subr.bf16.mxu1 %v5936_v61  ;;  %v5988_v61 = vpack.c.bf16 %v4138_v46, %v4137_v36  ;;  %v3472_v16 = vrot.slane %v7940_v37, %v8154_v8  ;;  %v3480_v59 = vrot.slane %v7940_v37, %v7370_v19  ;;  %v4145_v46 = vld [vmem:[#allocation20 + $0x200] sm:$0xff] }
 0x591   : > { %5811 = vmatpush1.bf16.msra.mxu0 %v5810_v58  ;;  %v5958_v58 = vpack.c.bf16 %v4090_v54, %v4089_v18 }
 0x592   : > { %5939 = vmatpush1.bf16.msra.mxu1 %v5938_v11  ;;  %5941 = vmatprep.subr.bf16.mxu0 %v5940_v9  ;;  %v5990_v11 = vpack.c.bf16 %v4122_v4, %v4121_v25  ;;  %v5960_v9 = vpack.c.bf16 %v4108_v49, %v4107_v15  ;;  %v4177_v25 = vld [vmem:[#allocation20 + $0x300] sm:$0xff]  ;;  %v4195_v49 = vld [vmem:[#allocation20 + $0x390] sm:$0xff] }
 0x593   : > { %5973 = vmatprep.subr.bf16.mxu1 %v5972_v50  ;;  %v5992_v50 = vpack.c.bf16 %v4140_v12, %v4139_v35  ;;  %v4196_v35 = vld [vmem:[#allocation20 + $0x398] sm:$0xff] }
 0x594   : > { %3925 = vmatmul.mubr.f32.vlgmr.msra.gmra.mrb[26].mxu0 %v7928_v13 }
 0x595   : > { %4067 = vmatmul.mubr.f32.vlgmr.msra.gmra.mrb[26].mxu1 %v7928_v13  ;;  %5943 = vmatpush3.bf16.msra.mxu0 %v5942_v56  ;;  %v5982_v13 = vpack.c.bf16 %v4118_v63, %v4117_v2  ;;  %v5962_v56 = vpack.c.bf16 %v4092_v44, %v4091_v34  ;;  %v4127_v2 = vld [vmem:[#allocation20 + $0x170] sm:$0xff]  ;;  %v4128_v63 = vld [vmem:[#allocation20 + $0x178] sm:$0xff] }
 0x596   : > { %5975 = vmatpush3.bf16.msra.mxu1 %v5974_v1  ;;  %5945 = vmatprep.subr.bf16.mxu0 %v5944_v30  ;;  %v5994_v1 = vpack.c.bf16 %v4124_v27, %v4123_v42  ;;  %v5964_v30 = vpack.c.bf16 %v4110_v26, %v4109_v17  ;;  %v4179_v27 = vld [vmem:[#allocation20 + $0x310] sm:$0xff]  ;;  %v4180_v17 = vld [vmem:[#allocation20 + $0x318] sm:$0xff]  ;;  %v4165_v26 = vld [vmem:[#allocation20 + $0x2a0] sm:$0xff] }
 0x597   : > { %5977 = vmatprep.subr.bf16.mxu1 %v5976_v48  ;;  %v5996_v48 = vpack.c.bf16 %v4142_v21, %v4141_v41  ;;  %v4166_v41 = vld [vmem:[#allocation20 + $0x2a8] sm:$0xff]  ;;  %v4197_v21 = vld [vmem:[#allocation20 + $0x3a0] sm:$0xff] }
 0x599   : > { %5947 = vmatpush3.bf16.msra.mxu0 %v5946_v24  ;;  %v5966_v24 = vpack.c.bf16 %v4094_v23, %v4093_v57  ;;  %v4149_v57 = vld [vmem:[#allocation20 + $0x220] sm:$0xff]  ;;  %v4150_v23 = vld [vmem:[#allocation20 + $0x228] sm:$0xff] }
 0x59a   : > { %5979 = vmatpush3.bf16.msra.mxu1 %v5978_v47  ;;  %5949 = vmatprep.subr.bf16.mxu0 %v5948_v0  ;;  %v5998_v47 = vpack.c.bf16 %v4126_v43, %v4125_v10  ;;  %v5968_v0 = vpack.c.bf16 %v4112_v28, %v4111_v40  ;;  %v6012_v10 = vpack.c.bf16 %v4166_v41, %v4165_v26  ;;  %v4181_v43 = vld [vmem:[#allocation20 + $0x320] sm:$0xff]  ;;  %v4182_v40 = vld [vmem:[#allocation20 + $0x328] sm:$0xff]  ;;  %v4167_v28 = vld [vmem:[#allocation20 + $0x2b0] sm:$0xff] }
 0x59b   : > { %5981 = vmatprep.subr.bf16.mxu1 %v5980_v38  ;;  %v6000_v38 = vpack.c.bf16 %v4144_v31, %v4143_v33  ;;  %v4168_v33 = vld [vmem:[#allocation20 + $0x2b8] sm:$0xff]  ;;  %v4199_v31 = vld [vmem:[#allocation20 + $0x3b0] sm:$0xff] }
 0x59c   : > { %v4208_v26 = vld [vmem:[#allocation20 + $0x3f8] sm:$0xff] }
 0x59d   : > { %5951 = vmatpush3.bf16.msra.mxu0 %v5950_v6  ;;  %v5970_v6 = vpack.c.bf16 %v4096_v7, %v4095_v14  ;;  %v4151_v14 = vld [vmem:[#allocation20 + $0x230] sm:$0xff]  ;;  %v4152_v7 = vld [vmem:[#allocation20 + $0x238] sm:$0xff] }
 0x59e   : > { %5983 = vmatpush3.bf16.msra.mxu1 %v5982_v13  ;;  %5953 = vmatprep.subr.bf16.mxu0 %v5952_v55  ;;  %v6002_v13 = vpack.c.bf16 %v4128_v63, %v4127_v2  ;;  %v6004_v55 = vpack.c.bf16 %v4162_v5, %v4161_v62  ;;  %v6016_v2 = vpack.c.bf16 %v4168_v33, %v4167_v28  ;;  %v4183_v63 = vld [vmem:[#allocation20 + $0x330] sm:$0xff]  ;;  %v4184_v62 = vld [vmem:[#allocation20 + $0x338] sm:$0xff]  ;;  %v4169_v5 = vld [vmem:[#allocation20 + $0x2c0] sm:$0xff] }
 0x59f   : > { %5985 = vmatprep.subr.bf16.mxu1 %v5984_v39  ;;  %v3476_v39 = vrot.slane %v7940_v37, %v7373_v20  ;;  %v4164_v20 = vld [vmem:[#allocation20 + $0x298] sm:$0xff] }
 0x5a0   : > { %v6008_v42 = vpack.c.bf16 %v4164_v20, %v4163_v52  ;;  %v4173_v20 = vld [vmem:[#allocation20 + $0x2e0] sm:$0xff] }
 0x5a1   : > { %5955 = vmatpush3.bf16.msra.mxu0 %v5954_v60  ;;  %v4146_v60 = vld [vmem:[#allocation20 + $0x208] sm:$0xff] }
 0x5a2   : > { %5987 = vmatpush3.bf16.msra.mxu1 %v5986_v53  ;;  %5957 = vmatprep.subr.bf16.mxu0 %v5956_v29 }
 0x5a3   : > { %5989 = vmatprep.subr.bf16.mxu1 %v5988_v61  ;;  %v4178_v61 = vld [vmem:[#allocation20 + $0x308] sm:$0xff] }
 0x5a4   : > { %v6038_v19 = vpack.c.bf16 %v4178_v61, %v4177_v25  ;;  %v4156_v25 = vld [vmem:[#allocation20 + $0x258] sm:$0xff] }
 0x5a5   : > { %5959 = vmatpush3.bf16.msra.mxu0 %v5958_v58  ;;  %v6006_v58 = vpack.c.bf16 %v4146_v60, %v4145_v46  ;;  %v4172_v46 = vld [vmem:[#allocation20 + $0x2d8] sm:$0xff]  ;;  %v4203_v60 = vld [vmem:[#allocation20 + $0x3d0] sm:$0xff] }
 0x5a6   : > { %5991 = vmatpush3.bf16.msra.mxu1 %v5990_v11  ;;  %5961 = vmatprep.subr.bf16.mxu0 %v5960_v9  ;;  %v4147_v11 = vld [vmem:[#allocation20 + $0x210] sm:$0xff]  ;;  %v4148_v9 = vld [vmem:[#allocation20 + $0x218] sm:$0xff] }
 0x5a7   : > { %5993 = vmatprep.subr.bf16.mxu1 %v5992_v50  ;;  %v6040_v50 = vpack.c.bf16 %v4196_v35, %v4195_v49  ;;  %v4174_v49 = vld [vmem:[#allocation20 + $0x2e8] sm:$0xff]  ;;  %v4205_v35 = vld [vmem:[#allocation20 + $0x3e0] sm:$0xff] }
 0x5a9   : > { %5963 = vmatpush3.bf16.msra.mxu0 %v5962_v56  ;;  %v4198_v56 = vld [vmem:[#allocation20 + $0x3a8] sm:$0xff] }
 0x5aa   : > { %5995 = vmatpush3.bf16.msra.mxu1 %v5994_v1  ;;  %5965 = vmatprep.subr.bf16.mxu0 %v5964_v30  ;;  %v6010_v1 = vpack.c.bf16 %v4148_v9, %v4147_v11  ;;  %v6042_v30 = vpack.c.bf16 %v4180_v17, %v4179_v27  ;;  %v4158_v11 = vld [vmem:[#allocation20 + $0x268] sm:$0xff]  ;;  %v6028_v9 = vpack.c.bf16 %v4174_v49, %v4173_v20  ;;  %v4176_v27 = vld [vmem:[#allocation20 + $0x2f8] sm:$0xff]  ;;  %v4207_v17 = vld [vmem:[#allocation20 + $0x3f0] sm:$0xff] }
 0x5ab   : > { %5997 = vmatprep.subr.bf16.mxu1 %v5996_v48  ;;  %v6044_v48 = vpack.c.bf16 %v4198_v56, %v4197_v21  ;;  %v4159_v56 = vld [vmem:[#allocation20 + $0x270] sm:$0xff] }
 0x5ad   : > { %5967 = vmatpush3.bf16.msra.mxu0 %v5966_v24  ;;  %v4200_v24 = vld [vmem:[#allocation20 + $0x3b8] sm:$0xff] }
 0x5ae   : > { %5999 = vmatpush3.bf16.msra.mxu1 %v5998_v47  ;;  %5969 = vmatprep.subr.bf16.mxu0 %v5968_v0  ;;  %v6014_v47 = vpack.c.bf16 %v4150_v23, %v4149_v57  ;;  %v6046_v0 = vpack.c.bf16 %v4182_v40, %v4181_v43  ;;  %v4160_v57 = vld [vmem:[#allocation20 + $0x278] sm:$0xff]  ;;  %v4191_v23 = vld [vmem:[#allocation20 + $0x370] sm:$0xff]  ;;  %v8155_v40 = vld [vmem:[#allocation35_spill] sm:$0xff] }
 0x5af   : > { %6001 = vmatprep.subr.bf16.mxu1 %v6000_v38  ;;  %v6048_v38 = vpack.c.bf16 %v4200_v24, %v4199_v31  ;;  %v3483_v28 = vsub.s32 4, %v8155_v40  ;;  %v3491_v33 = vsub.s32 6, %v8155_v40  ;;  %v3487_v31 = vsub.s32 5, %v8155_v40 }
 0x5b0   : > { %v3495_v24 = vsub.s32 7, %v8155_v40 }
 0x5b1   : > { %5971 = vmatpush3.bf16.msra.mxu0 %v5970_v6  ;;  %v4202_v6 = vld [vmem:[#allocation20 + $0x3c8] sm:$0xff] }
 0x5b2   : > { %6003 = vmatpush3.bf16.msra.mxu1 %v6002_v13  ;;  %6005 = vmatprep.subr.bf16.mxu0 %v6004_v55  ;;  %v6018_v13 = vpack.c.bf16 %v4152_v7, %v4151_v14  ;;  %v6050_v55 = vpack.c.bf16 %v4184_v62, %v4183_v63  ;;  %v3488_v14 = vrot.slane %v7940_v37, %v3487_v31 }
 0x5b3   : > { %6037 = vmatprep.subr.bf16.mxu1 %v6036_v51  ;;  %v4153_v51 = vld [vmem:[#allocation20 + $0x240] sm:$0xff]  ;;  %v3496_v7 = vrot.slane %v7940_v37, %v3495_v24 }
 0x5e7   : > { %v3642_v3 = vpop.f32.mrb[24].mxu0  ;;  %v3784_v36 = vpop.f32.mrb[24].mxu1 }
 0x5e8   : > { %v6072_v53 = vadd.f32 %v3642_v3, %v3468_v32  ;;  %v6074_v29 = vadd.f32 %v3784_v36, %v3476_v39  ;;  %v3644_v18 = vpop.f32.mrb[25].mxu0  ;;  %v3786_v54 = vpop.f32.mrb[25].mxu1  ;;  %v4154_v32 = vld [vmem:[#allocation20 + $0x248] sm:$0xff]  ;;  %v6020_v39 = vpack.c.bf16 %v4170_v22, %v4169_v5  ;;  %v4171_v36 = vld [vmem:[#allocation20 + $0x2d0] sm:$0xff] }
 0x5e9   : > { %v6073_v4 = vadd.f32 %v3644_v18, %v3472_v16  ;;  %v6075_v15 = vadd.f32 %v3786_v54, %v3480_v59  ;;  %v6052_v16 = vpack.c.bf16 %v4202_v6, %v4201_v45  ;;  %v4185_v59 = vld [vmem:[#allocation20 + $0x340] sm:$0xff]  ;;  %v4186_v3 = vld [vmem:[#allocation20 + $0x348] sm:$0xff]  ;;  %v4155_v54 = vld [vmem:[#allocation20 + $0x250] sm:$0xff]  ;;  %v6024_v61 = vpack.c.bf16 %v4172_v46, %v4171_v36 }
 0x5ea   : > { %v4073_v34 = vmax.f32 %v6072_v53, 0.0  ;;  %v4075_v44 = vmax.f32 %v6074_v29, 0.0  ;;  %v4204_v53 = vld [vmem:[#allocation20 + $0x3d8] sm:$0xff]  ;;  %v6022_v29 = vpack.c.bf16 %v4154_v32, %v4153_v51  ;;  %v6054_v18 = vpack.c.bf16 %v4186_v3, %v4185_v59  ;;  %v4209_v59 = vld [vmem:[#allocation22] sm:$0x1] }
 0x5eb   : > { %v4074_v8 = vmax.f32 %v6073_v4, 0.0  ;;  %v4076_v12 = vmax.f32 %v6075_v15, 0.0  ;;  %v6056_v52 = vpack.c.bf16 %v4204_v53, %v4203_v60  ;;  %v4187_v4 = vld [vmem:[#allocation20 + $0x350] sm:$0xff]  ;;  %v4188_v15 = vld [vmem:[#allocation20 + $0x358] sm:$0xff] }
 0x5ed   : > { %4274 = vmatprep.mubr.f32.mxu0 %v4074_v8  ;;  %4344 = vmatprep.mubr.f32.mxu1 %v4076_v12  ;;  %v4206_v8 = vld [vmem:[#allocation20 + $0x3e8] sm:$0xff]  ;;  %v6026_v12 = vpack.c.bf16 %v4156_v25, %v4155_v54  ;;  %v8156_v25 = vlaneseq }
 0x5ee   : > { %4275 = vmatmul.mubr.f32.vlgmr.msra.gmra.mrb[28].mxu0 %v4073_v34  ;;  %4345 = vmatmul.mubr.f32.vlgmr.msra.gmra.mrb[28].mxu1 %v4075_v44  ;;  %v6060_v34 = vpack.c.bf16 %v4206_v8, %v4205_v35  ;;  %v4189_v44 = vld [vmem:[#allocation20 + $0x360] sm:$0xff] }
 0x5ef   : > { %6007 = vmatpush3.bf16.msra.mxu0 %v6006_v58  ;;  %6039 = vmatpush3.bf16.msra.mxu1 %v6038_v19  ;;  %v6058_v58 = vpack.c.bf16 %v4188_v15, %v4187_v4  ;;  %v4157_v19 = vld [vmem:[#allocation20 + $0x260] sm:$0xff] }
 0x5f0   : > { %6009 = vmatprep.subr.bf16.mxu0 %v6008_v42  ;;  %6041 = vmatprep.subr.bf16.mxu1 %v6040_v50  ;;  %v4190_v42 = vld [vmem:[#allocation20 + $0x368] sm:$0xff]  ;;  %v4175_v50 = vld [vmem:[#allocation20 + $0x2f0] sm:$0xff]  ;;  %v6030_v41 = vpack.c.bf16 %v4158_v11, %v4157_v19 }
 0x5f1   : > { %v6062_v21 = vpack.c.bf16 %v4190_v42, %v4189_v44 }
 0x5f3   : > { %6011 = vmatpush3.bf16.msra.mxu0 %v6010_v1  ;;  %6043 = vmatpush3.bf16.msra.mxu1 %v6042_v30  ;;  %v6032_v1 = vpack.c.bf16 %v4176_v27, %v4175_v50  ;;  %v6064_v30 = vpack.c.bf16 %v4208_v26, %v4207_v17 }
 0x5f4   : > { %6013 = vmatprep.subr.bf16.mxu0 %v6012_v10  ;;  %6045 = vmatprep.subr.bf16.mxu1 %v6044_v48  ;;  %v4192_v10 = vld [vmem:[#allocation20 + $0x378] sm:$0xff]  ;;  %v6034_v48 = vpack.c.bf16 %v4160_v57, %v4159_v56 }
 0x5f5   : > { %v6066_v43 = vpack.c.bf16 %v4192_v10, %v4191_v23 }
 0x5f7   : > { %6015 = vmatpush3.bf16.msra.mxu0 %v6014_v47  ;;  %6047 = vmatpush3.bf16.msra.mxu1 %v6046_v0  ;;  %v3484_v47 = vrot.slane %v7940_v37, %v3483_v28  ;;  %v3492_v0 = vrot.slane %v7940_v37, %v3491_v33 }
 0x5f8   : > { %6017 = vmatprep.subr.bf16.mxu0 %v6016_v2  ;;  %6049 = vmatprep.subr.bf16.mxu1 %v6048_v38 }
 0x5fb   : > { %6019 = vmatpush3.bf16.msra.mxu0 %v6018_v13  ;;  %6051 = vmatpush3.bf16.msra.mxu1 %v6050_v55 }
 0x5fc   : > { %6021 = vmatprep.subr.bf16.mxu0 %v6020_v39  ;;  %6053 = vmatprep.subr.bf16.mxu1 %v6052_v16 }
 0x5ff   : > { %6023 = vmatpush3.bf16.msra.mxu0 %v6022_v29  ;;  %6055 = vmatpush3.bf16.msra.mxu1 %v6054_v18 }
 0x600   : > { %6025 = vmatprep.subr.bf16.mxu0 %v6024_v61  ;;  %6057 = vmatprep.subr.bf16.mxu1 %v6056_v52  ;;  %v4491_v61 = vand.u32 127, %v8156_v25 }
 0x602   : > { %vm4492_vm3 = vcmp.lt.s32.totalorder %v4491_v61, 10 }
 0x603   : > { %6027 = vmatpush3.bf16.msra.mxu0 %v6026_v12  ;;  %6059 = vmatpush3.bf16.msra.mxu1 %v6058_v58 }
 0x604   : > { %6029 = vmatprep.subr.bf16.mxu0 %v6028_v9  ;;  %6061 = vmatprep.subr.bf16.mxu1 %v6060_v34 }
 0x607   : > { %6031 = vmatpush3.bf16.msra.mxu0 %v6030_v41  ;;  %6063 = vmatpush3.bf16.msra.mxu1 %v6062_v21 }
 0x608   : > { %6033 = vmatprep.subr.bf16.mxu0 %v6032_v1  ;;  %6065 = vmatprep.subr.bf16.mxu1 %v6064_v30 }
 0x60b   : > { %6035 = vmatpush3.bf16.msra.mxu0 %v6034_v48  ;;  %6067 = vmatpush3.bf16.msra.mxu1 %v6066_v43 }
 0x667   : > { %v3926_v2 = vpop.f32.mrb[26].mxu0 }
 0x668   : > { %v6076_v38 = vadd.f32 %v3926_v2, %v3484_v47  ;;  %v4068_v63 = vpop.f32.mrb[26].mxu1  ;;  %v3928_v62 = vpop.f32.mrb[27].mxu0 }
 0x669   : > { %v6078_v5 = vadd.f32 %v4068_v63, %v3492_v0  ;;  %v6077_v22 = vadd.f32 %v3928_v62, %v3488_v14  ;;  %v4070_v45 = vpop.f32.mrb[27].mxu1 }
 0x66a   : > { %v6079_v6 = vadd.f32 %v4070_v45, %v3496_v7  ;;  %v4077_v55 = vmax.f32 %v6076_v38, 0.0 }
 0x66b   : > { %v4078_v13 = vmax.f32 %v6077_v22, 0.0  ;;  %v4079_v32 = vmax.f32 %v6078_v5, 0.0 }
 0x66c   : > { %v4080_v51 = vmax.f32 %v6079_v6, 0.0 }
 0x66d   : > { %4414 = vmatprep.mubr.f32.mxu0 %v4078_v13 }
 0x66e   : > { %4484 = vmatprep.mubr.f32.mxu1 %v4080_v51  ;;  %4415 = vmatmul.mubr.f32.vlgmr.msra.gmra.mrb[30].mxu0 %v4077_v55 }
 0x66f   : > { %4485 = vmatmul.mubr.f32.vlgmr.msra.gmra.mrb[30].mxu1 %v4079_v32 }
 0x6c1   : > { %v4792_v39 = vpop.f32.mrb[28].mxu0  ;;  %v4827_v16 = vpop.f32.mrb[28].mxu1 }
 0x6c2   : > { %v4793_v37 = vpop.f32.mrb[29].mxu0  ;;  %v4828_v3 = vpop.f32.mrb[29].mxu1 }
 0x6c3   : > { %v4794_v36 = vadd.f32 %v4793_v37, %v4792_v39  ;;  %v4829_v46 = vadd.f32 %v4828_v3, %v4827_v16 }
 0x6c5   : > { %v4277_v60 = vadd.f32 %v4794_v36, %v4209_v59 }
 0x6c7   : > { %v4347_v53 = vadd.f32 %v4829_v46, %v4277_v60 }
 0x741   : > { %v4862_v29 = vpop.f32.mrb[30].mxu0 }
 0x742   : > { %v4897_v18 = vpop.f32.mrb[30].mxu1  ;;  %v4863_v54 = vpop.f32.mrb[31].mxu0 }
 0x743   : > { %v4864_v52 = vadd.f32 %v4863_v54, %v4862_v29  ;;  %v4898_v4 = vpop.f32.mrb[31].mxu1 }
 0x744   : > { %v4899_v15 = vadd.f32 %v4898_v4, %v4897_v18 }
 0x745   : > { %v4417_v20 = vadd.f32 %v4864_v52, %v4347_v53 }
 0x747   : > { %v4487_v49 = vadd.f32 %v4899_v15, %v4417_v20 }
 0x749   : > { %v4493_v35 = vsel %vm4492_vm3, %v4487_v49, -1e+30 }
 0x74a   : > { %v4495_v8 = vsel %vm4494_vm4, %v4493_v35, -inf }
 0x74b   : > { %4496 = vmax.xlane.f32.xlu0 %v4495_v8 }
 0x7d8   : > { %v4497_v12 = vpop.xlane.xlu0 %4496 }
 0x7d9   : > { %v4498_v58 = vsub.f32 %v4493_v35, %v4497_v12 }
 0x7db   : > { %v4499_v19 = vmul.f32 1.442695, %v4498_v58 }
 0x7dd   : > { %6299 = vpow2.f32 %v4499_v19 }
 0x7e7   : > { %v6300_v11 = vpop.eup %6299 }
 0x7e8   : > { %v4501_v9 = vsel %vm4492_vm3, %v6300_v11, 0.0 }
 0x7e9   : > { %v4502_v34 = vsel %vm4494_vm4, %v4501_v9, 0.0 }
 0x7ea   : > { %4503 = vadd.xlane.f32.xlu0 %v4502_v34 }
 0x877   : > { %v4504_v44 = vpop.xlane.xlu0 %4503 }
 0x878   : > { %6301 = vlog2.f32 %v4504_v44 }
 0x882   : > { %v6302_v42 = vpop.eup %6301 }
 0x883   : > { %v4506_v50 = vmul.f32 0.6931472, %v6302_v42 }
 0x885   : > { %v4507_v27 = vadd.f32 %v4506_v50, %v4497_v12 }
 0x887   : > { %v4508_v17 = vsub.f32 %v4493_v35, %v4507_v27 }
 0x889   : > { %v4509_v26 = vsel %vm4492_vm3, %v4508_v17, 0.0 }
 0x88a   : > { %4510 = vst [vmem:[%s651_s25] sm:$0x1] %v4509_v26 }
 0x88b   : > { %6682 = shalt.err (!%p6679_p6)
}
 0x88c   : > { %s6683_s29 = scalar_lea.hbm %s7966_s18, 16  ;;  %s6687_s26 = scalar_lea.hbm %s8157_s14, 32 }
 0x88d   : > { %p6684_p12 = scmp.ne.s32.totalorder %s7966_s18, %s6683_s29  ;;  %p6688_p4 = scmp.lt.u32.totalorder %s7966_s18, %s8157_s14 }
 0x88e   : > { %p6689_p1 = scmp.lt.u32.totalorder %s6687_s26, %s6683_s29  ;;  %p6691_p9 = scmp.lt.u32.totalorder %s6683_s29, %s7966_s18 }
 0x88f   : > { %p6685_p5 = pnand %p6684_p12, %p8158_p13 }
 0x890   : > { %p6690_p3 = por %p6689_p1, %p6688_p4 }
 0x891   : > { %p6686_p7 = pneg %p6685_p5 }
 0x892   : > { %p6692_p0 = por %p6691_p9, %p6690_p3 }
 0x894   : > { %p6693_p2 = pnand %p6692_p0, %p6686_p7 }
 0x896   : > { %6696 = shalt.err (!%p6693_p2)
}
 0x897   : > { %6174 = dma.vmem_to_hbm [thread:$0]  (%p8158_p13), %s7968_s28, 16, %s7966_s18, %s4512_s21  }
 0x898 PF: > { %s8159_s23 = sld [smem:[#allocation32_spill]]  ;;  %p8160_p8 = scmp.ne.s32.totalorder %s8075_s19, 0 }
 0x899   : > { %p8161_p10 = scmp.ge.s32.totalorder %s6759_s16, 2 }
 0x89b   : > { %p6218_p11 = pnand %p8161_p10, %p8160_p8 }
 0x89e   : > { %s4536_s17 = sand.u32 1, %s8159_s23  }
 0x89f   : > { %s4537_s2 = scalar_lea.sflag [#allocation4], %s4536_s17 }
 0x8a0   : > { %6742 = dma.done.wait (!%p6218_p11), %s4537_s2, 16  }
 0x8a1   : > { %6744 = vsyncadd (!%p6218_p11), %s4537_s2, 4294967280  ;;  %p33_p6 = scmp.ge.s32.totalorder %s7166_s27, 4   ;;  %s8162_s29 = smov %s6751_s30 }
 0x8a2   : > { %s8163_s30 = smov %s6755_s15  ;;  %s8164_s15 = smov %s7177_s24 }
 0x8a3   : > { %s8165_s16 = smov %s7166_s27  ;;  %35 = sbr.rel (!%p33_p6) target bundleno = 17 (0x11), region = 172 }
 0x8aa   :  { %4541 = vsyncpa [#allocation3], 1 }
 0x8ab   :  { %4543 = vsyncpa [#allocation3 + $0x1], 1 }
 0x8ac   :  { %4544 = vsyncpa [#allocation6], 1 }
 0x8ad   :  { %4545 = vsyncpa [#allocation9], 1 }
 0x8ae   :  { %4546 = vsyncpa [#allocation12], 1 }
 0x8af   :  { %4547 = vsyncpa [#allocation15], 1 }
 0x8b0   :  { %4548 = vsyncpa [#allocation18], 1 }
 0x8b1   :  { %4549 = vsyncpa [#allocation21], 1 }
 0x8b2   :  { %4550 = vsyncpa [#allocation4], 1 }
 0x8b3   :  { %4552 = vsyncpa [#allocation4 + $0x1], 1 }

</bundles_post_ra>
